<compile_context>
chip_gen: v6e
topology: v6e:2x2x1
jax: 0.10.0
libtpu: 0.0.40
codegen_flags: <defaults>
</compile_context>

<pallas_src>
from functools import partial

import jax
import jax.numpy as jnp
from jax.experimental import pallas as pl
from jax.experimental.pallas import tpu as pltpu

# Model hyper-parameters (match the PyTorch __init__ defaults)
IN_CHANNELS = 4
N_CLASSES = 13
NUM_FILTERS = 64
FILTER_LEN = 25
BLOCK_K = 3
NUM_CONV_LAYERS = 2
DENSE_HIDDEN = 256
BN_EPS = 1e-5

K1C_PAD = 128          # im2col contraction (25*4=100) padded to full lane width
OUT_PAD = 128          # output classes (13) padded to full lane width


def _model_kernel(xcol_ref, w1_ref, b1_ref, w2_ref, b2_ref,
                  wd1_ref, bd1_ref, wd2_ref, bd2_ref, wo_ref, bo_ref,
                  o_ref, *, lo1):
    bt = o_ref.shape[0]            # batch elements in this grid step
    M = xcol_ref.shape[0]          # bt * lo1p rows (flat, sublane-aligned)
    lo1p = M // bt
    F = NUM_FILTERS

    # In-element row index, full lane width (no (M,1) layouts, no integer mod).
    jpos = jax.lax.broadcasted_iota(jnp.int32, (bt, lo1p, F), 1).reshape(M, F)

    # ---- conv_layer1 (k=25 valid, im2col) + BN(folded) + ReLU: one matmul ----
    h = jnp.dot(xcol_ref[...], w1_ref[...], preferred_element_type=jnp.float32)
    h = jnp.maximum(h + b1_ref[...], 0.0)
    h = jnp.where(jpos < lo1, h, 0.0)          # zero separator / pad rows

    w2 = w2_ref[...]                           # (3, F, F) bf16, BN folded
    b2 = b2_ref[...]                           # (1, F)    f32
    lcur = lo1
    for _ in range(NUM_CONV_LAYERS):           # same module reused in PyTorch
        # Dropout (inference) = identity.
        # Conv1d(k=3, pad=1): sublane rolls; zero separator rows act as the
        # conv zero-padding, so one matmul per tap covers all bt elements.
        prev_tap = pltpu.roll(h, 1, axis=0)        # row r-1
        next_tap = pltpu.roll(h, M - 1, axis=0)    # row r+1
        acc = jnp.dot(prev_tap.astype(jnp.bfloat16), w2[0],
                      preferred_element_type=jnp.float32)
        acc = acc + jnp.dot(h.astype(jnp.bfloat16), w2[1],
                            preferred_element_type=jnp.float32)
        acc = acc + jnp.dot(next_tap.astype(jnp.bfloat16), w2[2],
                            preferred_element_type=jnp.float32)
        g = jnp.maximum(acc + b2, 0.0)             # BN folded; ReLU
        # MaxPool1d(3, stride=1): valid output rows are j < lcur - 2.
        pooled = jnp.maximum(jnp.maximum(g, pltpu.roll(g, M - 1, axis=0)),
                             pltpu.roll(g, M - 2, axis=0))
        lcur = lcur - 2
        h = jnp.where(jpos < lcur, pooled, 0.0)    # re-zero pad rows

    # ---- F.max_pool1d over full length: per-element segment max ----
    # Pad rows are exactly 0 and post-ReLU values are >= 0, so they are inert.
    seq_max = jnp.max(h.reshape(bt, lo1p, F), axis=1)         # (bt, F)

    # ---- dense_block1: (Dropout=id, Linear+BN folded, ReLU) x 2, batched ----
    d1 = jnp.maximum(
        jnp.dot(seq_max.astype(jnp.bfloat16), wd1_ref[...],
                preferred_element_type=jnp.float32) + bd1_ref[...], 0.0)
    d2 = jnp.maximum(
        jnp.dot(d1.astype(jnp.bfloat16), wd2_ref[...],
                preferred_element_type=jnp.float32) + bd2_ref[...], 0.0)

    # ---- linear_no_logit + Sigmoid (return_logits=False path) ----
    logits = jnp.dot(d2.astype(jnp.bfloat16), wo_ref[...],
                     preferred_element_type=jnp.float32) + bo_ref[...]
    o_ref[...] = jax.nn.sigmoid(logits)            # (bt, OUT_PAD) lane-dense


def init_params(key):
    """Deterministic, shape-faithful parameter init (Xavier-uniform style)."""
    ks = jax.random.split(key, 8)

    def xavier(k, shape, fan_in, fan_out):
        bound = (6.0 / (fan_in + fan_out)) ** 0.5
        return jax.random.uniform(k, shape, jnp.float32, -bound, bound)

    # conv_layer1: torch weight (F, CIN, K1) stored here as (K1, CIN, F)
    w1 = xavier(ks[0], (FILTER_LEN, IN_CHANNELS, NUM_FILTERS),
                IN_CHANNELS * FILTER_LEN, NUM_FILTERS * FILTER_LEN)
    b1 = jax.random.uniform(ks[1], (1, NUM_FILTERS), jnp.float32, -0.1, 0.1)
    # conv_block1 conv: torch weight (F, F, K2) stored as (K2, F, F)
    w2 = xavier(ks[2], (BLOCK_K, NUM_FILTERS, NUM_FILTERS),
                NUM_FILTERS * BLOCK_K, NUM_FILTERS * BLOCK_K)
    b2 = jax.random.uniform(ks[3], (1, NUM_FILTERS), jnp.float32, -0.1, 0.1)
    # dense_block1 linears (stored as (in, out)); init_weights -> bias = 0.01
    wd1 = xavier(ks[4], (NUM_FILTERS, DENSE_HIDDEN), NUM_FILTERS, DENSE_HIDDEN)
    bd1 = jnp.full((1, DENSE_HIDDEN), 0.01, jnp.float32)
    wd2 = xavier(ks[5], (DENSE_HIDDEN, DENSE_HIDDEN), DENSE_HIDDEN, DENSE_HIDDEN)
    bd2 = jnp.full((1, DENSE_HIDDEN), 0.01, jnp.float32)
    # linear_no_logit
    wo = xavier(ks[6], (DENSE_HIDDEN, N_CLASSES), DENSE_HIDDEN, N_CLASSES)
    bo = jax.random.uniform(ks[7], (1, N_CLASSES), jnp.float32, -0.05, 0.05)

    # BatchNorm (inference): gamma=1, beta=0, running_mean=0, running_var=1
    bn_scale = 1.0 / (1.0 + BN_EPS) ** 0.5
    s1 = jnp.full((1, NUM_FILTERS), bn_scale, jnp.float32)
    t1 = jnp.zeros((1, NUM_FILTERS), jnp.float32)
    s2 = jnp.full((1, NUM_FILTERS), bn_scale, jnp.float32)
    t2 = jnp.zeros((1, NUM_FILTERS), jnp.float32)
    # BatchNorm1d(1) in the dense block is a scalar affine; broadcast to width
    sd1 = jnp.full((1, DENSE_HIDDEN), bn_scale, jnp.float32)
    td1 = jnp.zeros((1, DENSE_HIDDEN), jnp.float32)
    sd2 = jnp.full((1, DENSE_HIDDEN), bn_scale, jnp.float32)
    td2 = jnp.zeros((1, DENSE_HIDDEN), jnp.float32)

    return dict(w1=w1, b1=b1, s1=s1, t1=t1, w2=w2, b2=b2, s2=s2, t2=t2,
                wd1=wd1, bd1=bd1, sd1=sd1, td1=td1,
                wd2=wd2, bd2=bd2, sd2=sd2, td2=td2, wo=wo, bo=bo)


def raw_seq_model_forward(x_ncw, p):
    # layout: x_ncw follows PyTorch NCW (N, C, L); kernel uses NWC + im2col.
    x = jnp.transpose(x_ncw, (0, 2, 1)).astype(jnp.float32)     # (B, L, CIN)
    B, L, _ = x.shape
    lo1 = L - FILTER_LEN + 1
    assert lo1 >= 2 * NUM_CONV_LAYERS + 1, "sequence too short"
    # Per-element stride: multiple of 8 with >= 1 zero separator row so the
    # flat (BT*lo1p, 128) collapse is layout-free and rolls never cross elems.
    lo1p = ((lo1 + 8) // 8) * 8

    # ---- fold BatchNorm affine into conv / linear weights (inference) ----
    w1f = (p["w1"] * p["s1"]).reshape(FILTER_LEN * IN_CHANNELS, NUM_FILTERS)
    w1f = jnp.pad(w1f, ((0, K1C_PAD - FILTER_LEN * IN_CHANNELS), (0, 0)))
    b1f = p["b1"] * p["s1"] + p["t1"]
    w2f = p["w2"] * p["s2"]
    b2f = p["b2"] * p["s2"] + p["t2"]
    wd1f = p["wd1"] * p["sd1"]
    bd1f = p["bd1"] * p["sd1"] + p["td1"]
    wd2f = p["wd2"] * p["sd2"]
    bd2f = p["bd2"] * p["sd2"] + p["td2"]
    wof = jnp.pad(p["wo"], ((0, 0), (0, OUT_PAD - N_CLASSES)))
    bof = jnp.pad(p["bo"], ((0, 0), (0, OUT_PAD - N_CLASSES)))

    # ---- im2col for conv_layer1: (B, lo1, 25*4) padded to 128 lanes ----
    patches = jnp.stack([x[:, k:k + lo1, :] for k in range(FILTER_LEN)],
                        axis=2)                                  # (B,lo1,K1,CIN)
    xcol = patches.reshape(B, lo1, FILTER_LEN * IN_CHANNELS)

    # ---- batch tiling: VMEM-budgeted BT, >=2 grid steps when possible ----
    # per-element: double-buffered bf16 input block + f32 activation temps
    per_elem_vmem = lo1p * (2 * K1C_PAD * 2 + 12 * NUM_FILTERS * 4)
    bt_budget = max(1, min(128, (12 << 20) // per_elem_vmem))
    BT = min(bt_budget, (B + 1) // 2)          # aim for >= 2 steps (megacore)
    BT = ((BT + 7) // 8) * 8                   # sublane-aligned blocks
    G = pl.cdiv(B, BT)
    Bp = G * BT

    xcol = jnp.pad(xcol, ((0, Bp - B), (0, lo1p - lo1),
                          (0, K1C_PAD - FILTER_LEN * IN_CHANNELS)))
    # Flatten in the wrapper so the kernel block is already lane/sublane dense.
    xflat = xcol.reshape(Bp * lo1p, K1C_PAD).astype(jnp.bfloat16)

    param_args = [w1f.astype(jnp.bfloat16), b1f,
                  w2f.astype(jnp.bfloat16), b2f,
                  wd1f.astype(jnp.bfloat16), bd1f,
                  wd2f.astype(jnp.bfloat16), bd2f,
                  wof.astype(jnp.bfloat16), bof]

    def full_spec(a):
        nd = a.ndim
        return pl.BlockSpec(a.shape, lambda g, _nd=nd: (0,) * _nd)

    in_specs = [pl.BlockSpec((BT * lo1p, K1C_PAD), lambda g: (g, 0))]
    in_specs += [full_spec(a) for a in param_args]

    flops_per_elem = (2 * lo1p * K1C_PAD * NUM_FILTERS
                      + NUM_CONV_LAYERS * BLOCK_K * 2 * lo1p
                      * NUM_FILTERS * NUM_FILTERS
                      + 2 * NUM_FILTERS * DENSE_HIDDEN
                      + 2 * DENSE_HIDDEN * DENSE_HIDDEN
                      + 2 * DENSE_HIDDEN * OUT_PAD)
    bytes_accessed = (2 * xflat.size
                      + sum(int(a.size) * a.dtype.itemsize for a in param_args)
                      + 4 * Bp * OUT_PAD)

    out = pl.pallas_call(
        partial(_model_kernel, lo1=lo1),
        out_shape=jax.ShapeDtypeStruct((Bp, OUT_PAD), jnp.float32),
        grid=(G,),
        in_specs=in_specs,
        out_specs=pl.BlockSpec((BT, OUT_PAD), lambda g: (g, 0)),
        compiler_params=pltpu.CompilerParams(
            dimension_semantics=("parallel",),
            vmem_limit_bytes=32 * 1024 * 1024),
        cost_estimate=pl.CostEstimate(
            flops=int(Bp * flops_per_elem),
            transcendentals=int(Bp * OUT_PAD),
            bytes_accessed=int(bytes_accessed)),
    )(xflat, *param_args)

    # un-pad batch and lanes; match PyTorch output shape (B, 1, n_classes)
    return out[:B, :N_CLASSES].reshape(B, 1, N_CLASSES)


if __name__ == "__main__":
    key = jax.random.PRNGKey(0)
    pkey, xkey = jax.random.split(key)
    params = init_params(pkey)

    B, L = 2, 64                                     # small synthetic shapes
    x = jax.random.normal(xkey, (B, IN_CHANNELS, L), jnp.float32)  # NCW input

    out = jax.jit(raw_seq_model_forward)(x, params)
    out = jax.block_until_ready(out)

    assert out.shape == (B, 1, N_CLASSES), out.shape
    assert bool(jnp.all(jnp.isfinite(out)))
    assert bool(jnp.all((out >= 0.0) & (out <= 1.0)))   # sigmoid output
    print("KERNEL_OK")
</pallas_src>

<mosaic_0001>
module attributes {stable_mosaic.version = 11 : i64} {
  func.func @_model_kernel(%arg0: i32, %arg1: memref<384x128xbf16, #tpu.memory_space<vmem>>, %arg2: memref<128x64xbf16, #tpu.memory_space<vmem>>, %arg3: memref<1x64xf32, #tpu.memory_space<vmem>>, %arg4: memref<3x64x64xbf16, #tpu.memory_space<vmem>>, %arg5: memref<1x64xf32, #tpu.memory_space<vmem>>, %arg6: memref<64x256xbf16, #tpu.memory_space<vmem>>, %arg7: memref<1x256xf32, #tpu.memory_space<vmem>>, %arg8: memref<256x256xbf16, #tpu.memory_space<vmem>>, %arg9: memref<1x256xf32, #tpu.memory_space<vmem>>, %arg10: memref<256x128xbf16, #tpu.memory_space<vmem>>, %arg11: memref<1x128xf32, #tpu.memory_space<vmem>>, %arg12: memref<8x128xf32, #tpu.memory_space<vmem>>) attributes {dimension_semantics = [#tpu.dimension_semantics<parallel>], iteration_bounds = array<i64: 1>, scalar_prefetch = 0 : i64, scratch_operands = 0 : i64, tpu.core_type = #tpu.core_type<tc>, window_params = [{transform_indices = @transform_0, window_bounds = array<i64: 384, 128>}, {pipeline_mode = #tpu.pipeline_mode<synchronous>, transform_indices = @transform_1, window_bounds = array<i64: 128, 64>}, {pipeline_mode = #tpu.pipeline_mode<synchronous>, transform_indices = @transform_2, window_bounds = array<i64: 1, 64>}, {pipeline_mode = #tpu.pipeline_mode<synchronous>, transform_indices = @transform_3, window_bounds = array<i64: 3, 64, 64>}, {pipeline_mode = #tpu.pipeline_mode<synchronous>, transform_indices = @transform_4, window_bounds = array<i64: 1, 64>}, {pipeline_mode = #tpu.pipeline_mode<synchronous>, transform_indices = @transform_5, window_bounds = array<i64: 64, 256>}, {pipeline_mode = #tpu.pipeline_mode<synchronous>, transform_indices = @transform_6, window_bounds = array<i64: 1, 256>}, {pipeline_mode = #tpu.pipeline_mode<synchronous>, transform_indices = @transform_7, window_bounds = array<i64: 256, 256>}, {pipeline_mode = #tpu.pipeline_mode<synchronous>, transform_indices = @transform_8, window_bounds = array<i64: 1, 256>}, {pipeline_mode = #tpu.pipeline_mode<synchronous>, transform_indices = @transform_9, window_bounds = array<i64: 256, 128>}, {pipeline_mode = #tpu.pipeline_mode<synchronous>, transform_indices = @transform_10, window_bounds = array<i64: 1, 128>}, {transform_indices = @transform_11, window_bounds = array<i64: 8, 128>}]} {
    %0 = tpu.iota {dimensions = array<i32: 1>} : vector<8x48x64xi32>
    %1 = vector.shape_cast %0 : vector<8x48x64xi32> to vector<384x64xi32>
    %c0 = arith.constant 0 : index
    %c0_0 = arith.constant 0 : index
    %2 = vector.load %arg1[%c0, %c0_0] : memref<384x128xbf16, #tpu.memory_space<vmem>>, vector<384x128xbf16>
    %c0_1 = arith.constant 0 : index
    %c0_2 = arith.constant 0 : index
    %3 = vector.load %arg2[%c0_1, %c0_2] : memref<128x64xbf16, #tpu.memory_space<vmem>>, vector<128x64xbf16>
    %cst = arith.constant dense<0.000000e+00> : vector<384x64xf32>
    %4 = tpu.matmul %2, %3, %cst {dimension_numbers = #tpu.dot_dimension_numbers<[1], [0], [0], [1], [0, 0, 1, 1], [], []>} : vector<384x128xbf16>, vector<128x64xbf16>, vector<384x64xf32> -> vector<384x64xf32>
    %c0_3 = arith.constant 0 : index
    %c0_4 = arith.constant 0 : index
    %5 = vector.load %arg3[%c0_3, %c0_4] : memref<1x64xf32, #tpu.memory_space<vmem>>, vector<1x64xf32>
    %6 = vector.broadcast %5 : vector<1x64xf32> to vector<384x64xf32>
    %7 = arith.addf %4, %6 : vector<384x64xf32>
    %cst_5 = arith.constant 0.000000e+00 : f32
    %8 = vector.broadcast %cst_5 : f32 to vector<384x64xf32>
    %9 = arith.maximumf %7, %8 : vector<384x64xf32>
    %c40_i32 = arith.constant 40 : i32
    %10 = vector.broadcast %c40_i32 : i32 to vector<384x64xi32>
    %11 = arith.cmpi slt, %1, %10 : vector<384x64xi32>
    %cst_6 = arith.constant 0.000000e+00 : f32
    %12 = vector.broadcast %cst_6 : f32 to vector<384x64xf32>
    %13 = arith.select %11, %9, %12 : vector<384x64xi1>, vector<384x64xf32>
    %c0_7 = arith.constant 0 : index
    %c0_8 = arith.constant 0 : index
    %c0_9 = arith.constant 0 : index
    %14 = vector.load %arg4[%c0_7, %c0_8, %c0_9] : memref<3x64x64xbf16, #tpu.memory_space<vmem>>, vector<3x64x64xbf16>
    %c0_10 = arith.constant 0 : index
    %c0_11 = arith.constant 0 : index
    %15 = vector.load %arg5[%c0_10, %c0_11] : memref<1x64xf32, #tpu.memory_space<vmem>>, vector<1x64xf32>
    %c1_i32 = arith.constant 1 : i32
    %16 = tpu.dynamic_rotate %13 by %c1_i32 dim 0 : vector<384x64xf32>, i32 -> vector<384x64xf32>
    %c383_i32 = arith.constant 383 : i32
    %17 = tpu.dynamic_rotate %13 by %c383_i32 dim 0 : vector<384x64xf32>, i32 -> vector<384x64xf32>
    %18 = arith.truncf %16 : vector<384x64xf32> to vector<384x64xbf16>
    %19 = vector.extract_strided_slice %14 {offsets = [0, 0, 0], sizes = [1, 64, 64], strides = [1, 1, 1]} : vector<3x64x64xbf16> to vector<1x64x64xbf16>
    %20 = vector.shape_cast %19 : vector<1x64x64xbf16> to vector<64x64xbf16>
    %cst_12 = arith.constant dense<0.000000e+00> : vector<384x64xf32>
    %21 = tpu.matmul %18, %20, %cst_12 {dimension_numbers = #tpu.dot_dimension_numbers<[1], [0], [0], [1], [0, 0, 1, 1], [], []>} : vector<384x64xbf16>, vector<64x64xbf16>, vector<384x64xf32> -> vector<384x64xf32>
    %22 = arith.truncf %13 : vector<384x64xf32> to vector<384x64xbf16>
    %23 = vector.extract_strided_slice %14 {offsets = [1, 0, 0], sizes = [1, 64, 64], strides = [1, 1, 1]} : vector<3x64x64xbf16> to vector<1x64x64xbf16>
    %24 = vector.shape_cast %23 : vector<1x64x64xbf16> to vector<64x64xbf16>
    %cst_13 = arith.constant dense<0.000000e+00> : vector<384x64xf32>
    %25 = tpu.matmul %22, %24, %cst_13 {dimension_numbers = #tpu.dot_dimension_numbers<[1], [0], [0], [1], [0, 0, 1, 1], [], []>} : vector<384x64xbf16>, vector<64x64xbf16>, vector<384x64xf32> -> vector<384x64xf32>
    %26 = arith.addf %21, %25 : vector<384x64xf32>
    %27 = arith.truncf %17 : vector<384x64xf32> to vector<384x64xbf16>
    %28 = vector.extract_strided_slice %14 {offsets = [2, 0, 0], sizes = [1, 64, 64], strides = [1, 1, 1]} : vector<3x64x64xbf16> to vector<1x64x64xbf16>
    %29 = vector.shape_cast %28 : vector<1x64x64xbf16> to vector<64x64xbf16>
    %cst_14 = arith.constant dense<0.000000e+00> : vector<384x64xf32>
    %30 = tpu.matmul %27, %29, %cst_14 {dimension_numbers = #tpu.dot_dimension_numbers<[1], [0], [0], [1], [0, 0, 1, 1], [], []>} : vector<384x64xbf16>, vector<64x64xbf16>, vector<384x64xf32> -> vector<384x64xf32>
    %31 = arith.addf %26, %30 : vector<384x64xf32>
    %32 = vector.broadcast %15 : vector<1x64xf32> to vector<384x64xf32>
    %33 = arith.addf %31, %32 : vector<384x64xf32>
    %cst_15 = arith.constant 0.000000e+00 : f32
    %34 = vector.broadcast %cst_15 : f32 to vector<384x64xf32>
    %35 = arith.maximumf %33, %34 : vector<384x64xf32>
    %c383_i32_16 = arith.constant 383 : i32
    %36 = tpu.dynamic_rotate %35 by %c383_i32_16 dim 0 : vector<384x64xf32>, i32 -> vector<384x64xf32>
    %37 = arith.maximumf %35, %36 : vector<384x64xf32>
    %c382_i32 = arith.constant 382 : i32
    %38 = tpu.dynamic_rotate %35 by %c382_i32 dim 0 : vector<384x64xf32>, i32 -> vector<384x64xf32>
    %39 = arith.maximumf %37, %38 : vector<384x64xf32>
    %c38_i32 = arith.constant 38 : i32
    %40 = vector.broadcast %c38_i32 : i32 to vector<384x64xi32>
    %41 = arith.cmpi slt, %1, %40 : vector<384x64xi32>
    %cst_17 = arith.constant 0.000000e+00 : f32
    %42 = vector.broadcast %cst_17 : f32 to vector<384x64xf32>
    %43 = arith.select %41, %39, %42 : vector<384x64xi1>, vector<384x64xf32>
    %c1_i32_18 = arith.constant 1 : i32
    %44 = tpu.dynamic_rotate %43 by %c1_i32_18 dim 0 : vector<384x64xf32>, i32 -> vector<384x64xf32>
    %c383_i32_19 = arith.constant 383 : i32
    %45 = tpu.dynamic_rotate %43 by %c383_i32_19 dim 0 : vector<384x64xf32>, i32 -> vector<384x64xf32>
    %46 = arith.truncf %44 : vector<384x64xf32> to vector<384x64xbf16>
    %47 = vector.extract_strided_slice %14 {offsets = [0, 0, 0], sizes = [1, 64, 64], strides = [1, 1, 1]} : vector<3x64x64xbf16> to vector<1x64x64xbf16>
    %48 = vector.shape_cast %47 : vector<1x64x64xbf16> to vector<64x64xbf16>
    %cst_20 = arith.constant dense<0.000000e+00> : vector<384x64xf32>
    %49 = tpu.matmul %46, %48, %cst_20 {dimension_numbers = #tpu.dot_dimension_numbers<[1], [0], [0], [1], [0, 0, 1, 1], [], []>} : vector<384x64xbf16>, vector<64x64xbf16>, vector<384x64xf32> -> vector<384x64xf32>
    %50 = arith.truncf %43 : vector<384x64xf32> to vector<384x64xbf16>
    %51 = vector.extract_strided_slice %14 {offsets = [1, 0, 0], sizes = [1, 64, 64], strides = [1, 1, 1]} : vector<3x64x64xbf16> to vector<1x64x64xbf16>
    %52 = vector.shape_cast %51 : vector<1x64x64xbf16> to vector<64x64xbf16>
    %cst_21 = arith.constant dense<0.000000e+00> : vector<384x64xf32>
    %53 = tpu.matmul %50, %52, %cst_21 {dimension_numbers = #tpu.dot_dimension_numbers<[1], [0], [0], [1], [0, 0, 1, 1], [], []>} : vector<384x64xbf16>, vector<64x64xbf16>, vector<384x64xf32> -> vector<384x64xf32>
    %54 = arith.addf %49, %53 : vector<384x64xf32>
    %55 = arith.truncf %45 : vector<384x64xf32> to vector<384x64xbf16>
    %56 = vector.extract_strided_slice %14 {offsets = [2, 0, 0], sizes = [1, 64, 64], strides = [1, 1, 1]} : vector<3x64x64xbf16> to vector<1x64x64xbf16>
    %57 = vector.shape_cast %56 : vector<1x64x64xbf16> to vector<64x64xbf16>
    %cst_22 = arith.constant dense<0.000000e+00> : vector<384x64xf32>
    %58 = tpu.matmul %55, %57, %cst_22 {dimension_numbers = #tpu.dot_dimension_numbers<[1], [0], [0], [1], [0, 0, 1, 1], [], []>} : vector<384x64xbf16>, vector<64x64xbf16>, vector<384x64xf32> -> vector<384x64xf32>
    %59 = arith.addf %54, %58 : vector<384x64xf32>
    %60 = vector.broadcast %15 : vector<1x64xf32> to vector<384x64xf32>
    %61 = arith.addf %59, %60 : vector<384x64xf32>
    %cst_23 = arith.constant 0.000000e+00 : f32
    %62 = vector.broadcast %cst_23 : f32 to vector<384x64xf32>
    %63 = arith.maximumf %61, %62 : vector<384x64xf32>
    %c383_i32_24 = arith.constant 383 : i32
    %64 = tpu.dynamic_rotate %63 by %c383_i32_24 dim 0 : vector<384x64xf32>, i32 -> vector<384x64xf32>
    %65 = arith.maximumf %63, %64 : vector<384x64xf32>
    %c382_i32_25 = arith.constant 382 : i32
    %66 = tpu.dynamic_rotate %63 by %c382_i32_25 dim 0 : vector<384x64xf32>, i32 -> vector<384x64xf32>
    %67 = arith.maximumf %65, %66 : vector<384x64xf32>
    %c36_i32 = arith.constant 36 : i32
    %68 = vector.broadcast %c36_i32 : i32 to vector<384x64xi32>
    %69 = arith.cmpi slt, %1, %68 : vector<384x64xi32>
    %cst_26 = arith.constant 0.000000e+00 : f32
    %70 = vector.broadcast %cst_26 : f32 to vector<384x64xf32>
    %71 = arith.select %69, %67, %70 : vector<384x64xi1>, vector<384x64xf32>
    %72 = vector.shape_cast %71 : vector<384x64xf32> to vector<8x48x64xf32>
    %cst_27 = arith.constant dense<0xFF800000> : vector<8x64xf32>
    %73 = vector.multi_reduction <maximumf>, %72, %cst_27 [1] : vector<8x48x64xf32> to vector<8x64xf32>
    %74 = arith.truncf %73 : vector<8x64xf32> to vector<8x64xbf16>
    %c0_28 = arith.constant 0 : index
    %c0_29 = arith.constant 0 : index
    %75 = vector.load %arg6[%c0_28, %c0_29] : memref<64x256xbf16, #tpu.memory_space<vmem>>, vector<64x256xbf16>
    %cst_30 = arith.constant dense<0.000000e+00> : vector<8x256xf32>
    %76 = tpu.matmul %74, %75, %cst_30 {dimension_numbers = #tpu.dot_dimension_numbers<[1], [0], [0], [1], [0, 0, 1, 1], [], []>} : vector<8x64xbf16>, vector<64x256xbf16>, vector<8x256xf32> -> vector<8x256xf32>
    %c0_31 = arith.constant 0 : index
    %c0_32 = arith.constant 0 : index
    %77 = vector.load %arg7[%c0_31, %c0_32] : memref<1x256xf32, #tpu.memory_space<vmem>>, vector<1x256xf32>
    %78 = vector.broadcast %77 : vector<1x256xf32> to vector<8x256xf32>
    %79 = arith.addf %76, %78 : vector<8x256xf32>
    %cst_33 = arith.constant 0.000000e+00 : f32
    %80 = vector.broadcast %cst_33 : f32 to vector<8x256xf32>
    %81 = arith.maximumf %79, %80 : vector<8x256xf32>
    %82 = arith.truncf %81 : vector<8x256xf32> to vector<8x256xbf16>
    %c0_34 = arith.constant 0 : index
    %c0_35 = arith.constant 0 : index
    %83 = vector.load %arg8[%c0_34, %c0_35] : memref<256x256xbf16, #tpu.memory_space<vmem>>, vector<256x256xbf16>
    %cst_36 = arith.constant dense<0.000000e+00> : vector<8x256xf32>
    %84 = tpu.matmul %82, %83, %cst_36 {dimension_numbers = #tpu.dot_dimension_numbers<[1], [0], [0], [1], [0, 0, 1, 1], [], []>} : vector<8x256xbf16>, vector<256x256xbf16>, vector<8x256xf32> -> vector<8x256xf32>
    %c0_37 = arith.constant 0 : index
    %c0_38 = arith.constant 0 : index
    %85 = vector.load %arg9[%c0_37, %c0_38] : memref<1x256xf32, #tpu.memory_space<vmem>>, vector<1x256xf32>
    %86 = vector.broadcast %85 : vector<1x256xf32> to vector<8x256xf32>
    %87 = arith.addf %84, %86 : vector<8x256xf32>
    %cst_39 = arith.constant 0.000000e+00 : f32
    %88 = vector.broadcast %cst_39 : f32 to vector<8x256xf32>
    %89 = arith.maximumf %87, %88 : vector<8x256xf32>
    %90 = arith.truncf %89 : vector<8x256xf32> to vector<8x256xbf16>
    %c0_40 = arith.constant 0 : index
    %c0_41 = arith.constant 0 : index
    %91 = vector.load %arg10[%c0_40, %c0_41] : memref<256x128xbf16, #tpu.memory_space<vmem>>, vector<256x128xbf16>
    %cst_42 = arith.constant dense<0.000000e+00> : vector<8x128xf32>
    %92 = tpu.matmul %90, %91, %cst_42 {dimension_numbers = #tpu.dot_dimension_numbers<[1], [0], [0], [1], [0, 0, 1, 1], [], []>} : vector<8x256xbf16>, vector<256x128xbf16>, vector<8x128xf32> -> vector<8x128xf32>
    %c0_43 = arith.constant 0 : index
    %c0_44 = arith.constant 0 : index
    %93 = vector.load %arg11[%c0_43, %c0_44] : memref<1x128xf32, #tpu.memory_space<vmem>>, vector<1x128xf32>
    %94 = vector.broadcast %93 : vector<1x128xf32> to vector<8x128xf32>
    %95 = arith.addf %92, %94 : vector<8x128xf32>
    %96 = arith.negf %95 : vector<8x128xf32>
    %97 = math.exp %96 : vector<8x128xf32>
    %cst_45 = arith.constant 1.000000e+00 : f32
    %98 = vector.broadcast %cst_45 : f32 to vector<8x128xf32>
    %99 = arith.addf %98, %97 : vector<8x128xf32>
    %100 = arith.divf %98, %99 : vector<8x128xf32>
    %c0_46 = arith.constant 0 : index
    %c0_47 = arith.constant 0 : index
    %101 = vector.load %arg12[%c0_46, %c0_47] : memref<8x128xf32, #tpu.memory_space<vmem>>, vector<8x128xf32>
    tpu.vector_store %arg12[%c0_46, %c0_47], %100 {strides = array<i32>} : memref<8x128xf32, #tpu.memory_space<vmem>>, vector<8x128xf32>,
    return
  }
  func.func @transform_0(%arg0: i32) -> (i32, i32) {
    %c0_i32 = arith.constant 0 : i32
    %c0_i32_0 = arith.constant 0 : i32
    return %arg0, %c0_i32 : i32, i32
  }
  func.func @transform_1(%arg0: i32) -> (i32, i32) {
    %c0_i32 = arith.constant 0 : i32
    %c0_i32_0 = arith.constant 0 : i32
    %c0_i32_1 = arith.constant 0 : i32
    return %c0_i32, %c0_i32_0 : i32, i32
  }
  func.func @transform_2(%arg0: i32) -> (i32, i32) {
    %c0_i32 = arith.constant 0 : i32
    %c0_i32_0 = arith.constant 0 : i32
    %c0_i32_1 = arith.constant 0 : i32
    return %c0_i32, %c0_i32_0 : i32, i32
  }
  func.func @transform_3(%arg0: i32) -> (i32, i32, i32) {
    %c0_i32 = arith.constant 0 : i32
    %c0_i32_0 = arith.constant 0 : i32
    %c0_i32_1 = arith.constant 0 : i32
    %c0_i32_2 = arith.constant 0 : i32
    return %c0_i32, %c0_i32_0, %c0_i32_1 : i32, i32, i32
  }
  func.func @transform_4(%arg0: i32) -> (i32, i32) {
    %c0_i32 = arith.constant 0 : i32
    %c0_i32_0 = arith.constant 0 : i32
    %c0_i32_1 = arith.constant 0 : i32
    return %c0_i32, %c0_i32_0 : i32, i32
  }
  func.func @transform_5(%arg0: i32) -> (i32, i32) {
    %c0_i32 = arith.constant 0 : i32
    %c0_i32_0 = arith.constant 0 : i32
    %c0_i32_1 = arith.constant 0 : i32
    return %c0_i32, %c0_i32_0 : i32, i32
  }
  func.func @transform_6(%arg0: i32) -> (i32, i32) {
    %c0_i32 = arith.constant 0 : i32
    %c0_i32_0 = arith.constant 0 : i32
    %c0_i32_1 = arith.constant 0 : i32
    return %c0_i32, %c0_i32_0 : i32, i32
  }
  func.func @transform_7(%arg0: i32) -> (i32, i32) {
    %c0_i32 = arith.constant 0 : i32
    %c0_i32_0 = arith.constant 0 : i32
    %c0_i32_1 = arith.constant 0 : i32
    return %c0_i32, %c0_i32_0 : i32, i32
  }
  func.func @transform_8(%arg0: i32) -> (i32, i32) {
    %c0_i32 = arith.constant 0 : i32
    %c0_i32_0 = arith.constant 0 : i32
    %c0_i32_1 = arith.constant 0 : i32
    return %c0_i32, %c0_i32_0 : i32, i32
  }
  func.func @transform_9(%arg0: i32) -> (i32, i32) {
    %c0_i32 = arith.constant 0 : i32
    %c0_i32_0 = arith.constant 0 : i32
    %c0_i32_1 = arith.constant 0 : i32
    return %c0_i32, %c0_i32_0 : i32, i32
  }
  func.func @transform_10(%arg0: i32) -> (i32, i32) {
    %c0_i32 = arith.constant 0 : i32
    %c0_i32_0 = arith.constant 0 : i32
    %c0_i32_1 = arith.constant 0 : i32
    return %c0_i32, %c0_i32_0 : i32, i32
  }
  func.func @transform_11(%arg0: i32) -> (i32, i32) {
    %c0_i32 = arith.constant 0 : i32
    %c0_i32_0 = arith.constant 0 : i32
    return %arg0, %c0_i32 : i32, i32
  }
}

</mosaic_0001>

<bundles_post_ra>
// kernel: raw_seq_model_forward.1
= control target key start
LH: loop header
LB: loop body
LE: loop exit
PB: predicated region body
PF: predicated region fallthrough
CT: control target
= control target key end

     0   :  { %v39_v43 = vlaneseq  ;;  %v9139_v56 = vmov 0.0   ;;  %vm927_vm2 = vcmask 523264   ;;  %vm4205_vm6 = vcmask 1041409   ;;  %s9125_s1 = inlined_call_operand.vmem [shape: bf16[128,64], index: 1, kind: input, shape index: {}]   ;;  %s9126_s0 = inlined_call_operand.vmem [shape: bf16[384,128], index: 0, kind: input, shape index: {}]   ;;  %s9127_s3 = inlined_call_operand.vmem [shape: bf16[3,64,64], index: 3, kind: input, shape index: {}]   ;;  %s9128_s2 = inlined_call_operand.vmem [shape: f32[1,64], index: 2, kind: input, shape index: {}]   ;;  %s9129_s4 = inlined_call_operand.vmem [shape: f32[1,64], index: 4, kind: input, shape index: {}]   ;;  %s9130_s5 = inlined_call_operand.vmem [shape: bf16[64,256], index: 5, kind: input, shape index: {}]   ;;  %s9131_s7 = inlined_call_operand.vmem [shape: bf16[256,256], index: 7, kind: input, shape index: {}]   ;;  %s9132_s9 = inlined_call_operand.vmem [shape: bf16[256,128], index: 9, kind: input, shape index: {}]   ;;  %s9133_s6 = inlined_call_operand.vmem [shape: f32[1,256], index: 6, kind: input, shape index: {}]   ;;  %s9134_s8 = inlined_call_operand.vmem [shape: f32[1,256], index: 8, kind: input, shape index: {}]   ;;  %s9135_s10 = inlined_call_operand.vmem [shape: f32[1,128], index: 10, kind: input, shape index: {}]   ;;  %s9136_s11 = inlined_call_operand.vmem [shape: f32[8,128], index: 11, kind: output, shape index: {}]  }
   0x1   :  { %v5617_v0 = vld [vmem:[%s9125_s1 + $0x38] sm:$0xff]   ;;  %v5618_v1 = vld [vmem:[%s9125_s1 + $0x30] sm:$0xff]   ;;  %v5619_v2 = vld [vmem:[%s9125_s1 + $0x28] sm:$0xff]   ;;  %v5977_v57 = vrot.slane %v9139_v56, 7  ;;  %vm4207_vm7 = vcmask 1042434   ;;  %vm4209_vm8 = vcmask 1043459  }
   0x2   :  { %5214 = vmatprep.subr.bf16.mxu0 %v5617_v0  ;;  %v5620_v3 = vld [vmem:[%s9125_s1 + $0x20] sm:$0xff]   ;;  %v5621_v5 = vld [vmem:[%s9125_s1 + $0x18] sm:$0xff]   ;;  %v5622_v6 = vld [vmem:[%s9125_s1 + $0x10] sm:$0xff]   ;;  %v5966_v47 = vshrl.u32 %v39_v43, 7  ;;  %vm4211_vm9 = vcmask 1044484   ;;  %vm4213_vm10 = vcmask 1045509  }
   0x3   :  { %5215 = vmatpush3.bf16.msra.mxu0 %v5617_v0  ;;  %v5625_v4 = vld [vmem:[%s9126_s0] sm:$0xff]   ;;  %v5623_v7 = vld [vmem:[%s9125_s1 + $0x8] sm:$0xff]   ;;  %v5627_v10 = vld [vmem:[%s9126_s0 + $0x10] sm:$0xff]   ;;  %vm4215_vm11 = vcmask 1046534   ;;  %vm4217_vm12 = vcmask 1047559  }
   0x4   :  { %5216 = vmatprep.subr.bf16.mxu0 %v5618_v1  ;;  %5230 = vmatprep.mubr.bf16.mxu0 %v5625_v4  ;;  %v5624_v8 = vld [vmem:[%s9125_s1] sm:$0xff]   ;;  %v5626_v9 = vld [vmem:[%s9126_s0 + $0x8] sm:$0xff]   ;;  %v5848_v11 = vld [vmem:[%s9127_s3 + $0x38] sm:$0xff]   ;;  %9179 = vst [vmem:[#allocation2_spill] sm:$0xff] %v5966_v47  ;;  %vm709_vm0 = vcmp.lt.s32.totalorder %v5966_v47, 1  ;;  %vm806_vm1 = vcmp.lt.s32.totalorder %v5966_v47, 7 }
   0x5   :  { %5278 = vmatprep.subr.bf16.mxu1 %v5848_v11  ;;  %v5628_v12 = vld [vmem:[%s9126_s0 + $0x18] sm:$0xff]   ;;  %v5629_v13 = vld [vmem:[%s9126_s0 + $0x20] sm:$0xff]   ;;  %v5630_v14 = vld [vmem:[%s9126_s0 + $0x28] sm:$0xff]   ;;  %vm2233_vm3 = vcmp.lt.s32.totalorder %v5966_v47, 6 }
   0x6   :  { %5279 = vmatpush3.bf16.msra.mxu1 %v5848_v11  ;;  %v5631_v15 = vld [vmem:[%s9126_s0 + $0x30] sm:$0xff]   ;;  %v5632_v16 = vld [vmem:[%s9126_s0 + $0x38] sm:$0xff]   ;;  %v5633_v17 = vld [vmem:[%s9126_s0 + $0x40] sm:$0xff]  }
   0x7   :  { %5217 = vmatpush3.bf16.msra.mxu0 %v5618_v1  ;;  %v5634_v18 = vld [vmem:[%s9126_s0 + $0x48] sm:$0xff]   ;;  %v5635_v19 = vld [vmem:[%s9126_s0 + $0x50] sm:$0xff]   ;;  %v5636_v20 = vld [vmem:[%s9126_s0 + $0x58] sm:$0xff]  }
   0x8   :  { %5218 = vmatprep.subr.bf16.mxu0 %v5619_v2  ;;  %v5637_v21 = vld [vmem:[%s9126_s0 + $0x60] sm:$0xff]   ;;  %v5638_v22 = vld [vmem:[%s9126_s0 + $0x68] sm:$0xff]   ;;  %v5639_v23 = vld [vmem:[%s9126_s0 + $0x70] sm:$0xff]  }
   0x9   :  { %v5640_v24 = vld [vmem:[%s9126_s0 + $0x78] sm:$0xff]   ;;  %v5641_v25 = vld [vmem:[%s9126_s0 + $0x80] sm:$0xff]   ;;  %v5642_v26 = vld [vmem:[%s9126_s0 + $0x88] sm:$0xff]  }
   0xa   :  { %v5643_v27 = vld [vmem:[%s9126_s0 + $0x90] sm:$0xff]   ;;  %v5909_v29 = vld [vmem:[%s9127_s3 + $0x58] sm:$0xff]   ;;  %v5919_v31 = vld [vmem:[%s9127_s3 + $0x28] sm:$0xff]  }
   0xb   :  { %5219 = vmatpush3.bf16.msra.mxu0 %v5619_v2  ;;  %v5903_v28 = vld [vmem:[%s9127_s3 + $0x30] sm:$0xff]   ;;  %v5644_v30 = vld [vmem:[%s9126_s0 + $0x98] sm:$0xff]   ;;  %v5645_v32 = vld [vmem:[%s9126_s0 + $0xa0] sm:$0xff]  }
   0xc   :  { %5220 = vmatprep.subr.bf16.mxu0 %v5620_v3  ;;  %5280 = vmatprep.subr.bf16.mxu1 %v5903_v28  ;;  %v5653_v33 = vld [vmem:[%s9127_s3 + $0x50] sm:$0xff]   ;;  %v5933_v34 = vld [vmem:[%s9127_s3 + $0x20] sm:$0xff]   ;;  %v5655_v35 = vld [vmem:[%s9127_s3 + $0x48] sm:$0xff]  }
   0xd   :  { %5281 = vmatpush3.bf16.msra.mxu1 %v5903_v28  ;;  %v5646_v36 = vld [vmem:[%s9126_s0 + $0xa8] sm:$0xff]   ;;  %v5647_v37 = vld [vmem:[%s9126_s0 + $0xb0] sm:$0xff]   ;;  %v5657_v38 = vld [vmem:[%s9127_s3 + $0x40] sm:$0xff]  }
   0xe   :  { %5282 = vmatprep.subr.bf16.mxu1 %v5919_v31  ;;  %v5952_v39 = vld [vmem:[%s9127_s3 + $0x18] sm:$0xff]   ;;  %v5962_v41 = vld [vmem:[%s9128_s2] ss:$0 sm:$0xff] }
   0xf   :  { %5221 = vmatpush3.bf16.msra.mxu0 %v5620_v3  ;;  %v5648_v40 = vld [vmem:[%s9126_s0 + $0xb8] sm:$0xff]  }
  0x10   :  { %5222 = vmatprep.subr.bf16.mxu0 %v5621_v5 }
  0x11   :  { %5283 = vmatpush3.bf16.msra.mxu1 %v5919_v31 }
  0x12   :  { %5284 = vmatprep.subr.bf16.mxu1 %v5933_v34 }
  0x13   :  { %5223 = vmatpush3.bf16.msra.mxu0 %v5621_v5 }
  0x14   :  { %5224 = vmatprep.subr.bf16.mxu0 %v5622_v6 }
  0x15   :  { %5285 = vmatpush3.bf16.msra.mxu1 %v5933_v34 }
  0x16   :  { %5334 = vmatprep.subr.bf16.mxu1 %v5952_v39 }
  0x17   :  { %5225 = vmatpush3.bf16.msra.mxu0 %v5622_v6 }
  0x18   :  { %5226 = vmatprep.subr.bf16.mxu0 %v5623_v7 }
  0x1b   :  { %5227 = vmatpush3.bf16.msra.mxu0 %v5623_v7 }
  0x1c   :  { %5228 = vmatprep.subr.bf16.mxu0 %v5624_v8 }
  0x1f   :  { %5229 = vmatpush3.bf16.msra.mxu0 %v5624_v8 }
  0x20   :  { %5390 = vmatprep.subr.bf16.mxu0 %v5909_v29 }
  0x22   :  { %5231 = vmatmul.mubr.bf16.vlgmr.msra.gmra.mxu0 %v5626_v9 }
  0x23   :  { %5234 = vmatprep.mubr.bf16.mxu0 %v5627_v10  ;;  %5391 = vmatpush3.bf16.msra.mxu0 %v5909_v29 }
  0x24   :  { %5392 = vmatprep.subr.bf16.mxu0 %v5653_v33 }
  0x27   :  { %5393 = vmatpush3.bf16.msra.mxu0 %v5653_v33 }
  0x28   :  { %5394 = vmatprep.subr.bf16.mxu0 %v5655_v35 }
  0x2a   :  { %5235 = vmatmul.mubr.bf16.gmra.mxu0 %v5628_v12 }
  0x2b   :  { %5238 = vmatprep.mubr.bf16.mxu0 %v5629_v13  ;;  %5395 = vmatpush3.bf16.msra.mxu0 %v5655_v35 }
  0x2c   :  { %5396 = vmatprep.subr.bf16.mxu0 %v5657_v38 }
  0x2f   :  { %5397 = vmatpush3.bf16.msra.mxu0 %v5657_v38  ;;  %v6037_v38 = vld [vmem:[%s9127_s3 + $0x8] sm:$0xff]  }
  0x30   :  { %5502 = vmatprep.subr.bf16.mxu0 %v5952_v39 }
  0x32   :  { %5239 = vmatmul.mubr.bf16.gmra.mxu0 %v5630_v14 }
  0x33   :  { %5242 = vmatprep.mubr.bf16.mxu0 %v5631_v15 }
  0x3a   :  { %5243 = vmatmul.mubr.bf16.gmra.mxu0 %v5632_v16  ;;  %v6007_v16 = vld [vmem:[%s9127_s3 + $0x10] sm:$0xff]  }
  0x3b   :  { %5246 = vmatprep.mubr.bf16.mxu0 %v5633_v17 }
  0x42   :  { %5247 = vmatmul.mubr.bf16.gmra.mxu0 %v5634_v18 }
  0x43   :  { %5250 = vmatprep.mubr.bf16.mxu0 %v5635_v19 }
  0x4a   :  { %5251 = vmatmul.mubr.bf16.gmra.mxu0 %v5636_v20 }
  0x4b   :  { %5254 = vmatprep.mubr.bf16.mxu0 %v5637_v21  ;;  %v6014_v21 = vrot.slane %v9139_v56, 1 }
  0x4d   :  { %9180 = vst [vmem:[#allocation3_spill] sm:$0xff] %v6014_v21 }
  0x52   :  { %5255 = vmatmul.mubr.bf16.gmra.mxu0 %v5638_v22 }
  0x53   :  { %5258 = vmatprep.mubr.bf16.mxu0 %v5639_v23 }
  0x5a   :  { %5259 = vmatmul.mubr.bf16.gmra.mxu0 %v5640_v24 }
  0x5b   :  { %5262 = vmatprep.mubr.bf16.mxu0 %v5641_v25 }
  0x62   :  { %5263 = vmatmul.mubr.bf16.gmra.mxu0 %v5642_v26 }
  0x63   :  { %5266 = vmatprep.mubr.bf16.mxu0 %v5643_v27 }
  0x6a   :  { %5267 = vmatmul.mubr.bf16.gmra.mxu0 %v5644_v30 }
  0x6b   :  { %5270 = vmatprep.mubr.bf16.mxu0 %v5645_v32 }
  0x72   :  { %5271 = vmatmul.mubr.bf16.gmra.mxu0 %v5646_v36 }
  0x73   :  { %5274 = vmatprep.mubr.bf16.mxu0 %v5647_v37 }
  0x7a   :  { %5275 = vmatmul.mubr.bf16.gmra.mxu0 %v5648_v40 }
  0xe2   :  { %v5232_v42 = vpop.f32.mrf.mxu0 }
  0xe3   :  { %v352_v44 = vadd.f32 %v5232_v42, %v5962_v41 }
  0xe4   :  { %v343_v45 = vpop.f32.mrf.mxu0 }
  0xe5   :  { %v344_v46 = vadd.f32 %v5962_v41, %v343_v45  ;;  %v536_v49 = vmax.f32 %v352_v44, 0.0 }
  0xe6   :  { %v5233_v48 = vpop.f32.mrf.mxu0 }
  0xe7   :  { %v355_v50 = vadd.f32 %v5233_v48, %v5962_v41  ;;  %v5969_v51 = vmax.f32 %v344_v46, 0.0  ;;  %v663_v58 = vrot.slane %v536_v49, 7  ;;  %v760_v61 = vrot.slane %v536_v49, 1 }
  0xe8   :  { %v346_v52 = vpop.f32.mrf.mxu0 }
  0xe9   :  { %v5971_v53 = vmax.f32 %v355_v50, 0.0  ;;  %v347_v54 = vadd.f32 %v5962_v41, %v346_v52  ;;  %v661_v62 = vrot.slane %v5969_v51, 7  ;;  %v9137_v63 = vrot.slane %v5969_v51, 1 }
  0xea   :  { %v5236_v55 = vpop.f32.mrf.mxu0 }
  0xeb   :  { %v664_v59 = vrot.slane %v5971_v53, 7  ;;  %v535_v60 = vmax.f32 %v347_v54, 0.0  ;;  %v368_v0 = vadd.f32 %v5236_v55, %v5962_v41  ;;  %v761_v3 = vrot.slane %v5971_v53, 1 }
  0xec   :  { %v359_v1 = vpop.f32.mrf.mxu0  ;;  %v880_v6 = vpack.c.bf16 %v5971_v53, %v536_v49  ;;  %v6026_v32 = vsel %vm709_vm0, %v5977_v57, %v661_v62 }
  0xed   :  { %v5985_v2 = vsel %vm709_vm0, %v663_v58, %v664_v59  ;;  %v662_v4 = vrot.slane %v535_v60, 7  ;;  %v759_v5 = vrot.slane %v535_v60, 1  ;;  %v5989_v7 = vmax.f32 %v368_v0, 0.0 }
  0xee   :  { %v360_v8 = vadd.f32 %v5962_v41, %v359_v1  ;;  %v5237_v9 = vpop.f32.mrf.mxu0  ;;  %v879_v10 = vpack.c.bf16 %v535_v60, %v5969_v51  ;;  %v851_v33 = vsel %vm806_vm1, %v760_v61, %v761_v3 }
  0xef   :  { %v5995_v12 = vsel %vm709_vm0, %v662_v4, %v663_v58  ;;  %v371_v13 = vadd.f32 %v5237_v9, %v5962_v41  ;;  %v852_v14 = vsel %vm806_vm1, %v759_v5, %v760_v61  ;;  %v853_v15 = vsel %vm806_vm1, %v9137_v63, %v759_v5 }
  0xf0   :  { %v764_v18 = vrot.slane %v5989_v7, 1  ;;  %v538_v19 = vmax.f32 %v360_v8, 0.0  ;;  %5286 = vmatprep.mubr.msk.bf16.mxu1 %vm927_vm2, %v879_v10  ;;  %v362_v20 = vpop.f32.mrf.mxu0  ;;  %v1546_v23 = vpack.c.bf16 %v852_v14, %v853_v15  ;;  %v6019_v24 = vsel %vm709_vm0, %v661_v62, %v662_v4  ;;  %v6073_v62 = vld [vmem:[%s9127_s3] sm:$0xff]  }
  0xf1   :  { %v541_v22 = vmax.f32 %v371_v13, 0.0  ;;  %5287 = vmatmul.mubr.msk.bf16.vlgmr.msra.gmra.mxu1 %vm927_vm2, %v880_v6  ;;  %v667_v35 = vrot.slane %v5989_v7, 7 }
  0xf2   :  { %v665_v25 = vrot.slane %v538_v19, 7  ;;  %v762_v26 = vrot.slane %v538_v19, 1  ;;  %v881_v27 = vpack.c.bf16 %v9139_v56, %v538_v19  ;;  %5335 = vmatpush3.bf16.msra.mxu1 %v5952_v39  ;;  %v5240_v30 = vpop.f32.mrf.mxu0  ;;  %5398 = vmatprep.mubr.msk.bf16.mxu0 %vm927_vm2, %v1546_v23  ;;  %v848_v43 = vsel %vm806_vm1, %v6014_v21, %v764_v18 }
  0xf3   :  { %v668_v36 = vrot.slane %v541_v22, 7  ;;  %v384_v37 = vadd.f32 %v5240_v30, %v5962_v41  ;;  %5336 = vmatprep.subr.bf16.mxu1 %v6007_v16  ;;  %v765_v52 = vrot.slane %v541_v22, 1  ;;  %v882_v60 = vpack.c.bf16 %v541_v22, %v5989_v7 }
  0xf4   :  { %v850_v40 = vsel %vm806_vm1, %v761_v3, %v762_v26  ;;  %5290 = vmatprep.mubr.msk.bf16.mxu1 %vm927_vm2, %v881_v27  ;;  %v375_v42 = vpop.f32.mrf.mxu0  ;;  %v849_v44 = vsel %vm806_vm1, %v762_v26, %v6014_v21  ;;  %v6054_v50 = vsel %vm709_vm0, %v665_v25, %v5977_v57  ;;  %v6061_v55 = vsel %vm709_vm0, %v664_v59, %v665_v25 }
  0xf5   :  { %v1547_v46 = vpack.c.bf16 %v850_v40, %v851_v33  ;;  %v376_v48 = vadd.f32 %v5962_v41, %v375_v42  ;;  %v1548_v49 = vpack.c.bf16 %v848_v43, %v849_v44  ;;  %v6056_v53 = vmax.f32 %v384_v37, 0.0 }
  0xf6   :  { %v5241_v54 = vpop.f32.mrf.mxu0  ;;  %5337 = vmatpush3.bf16.msra.mxu1 %v6007_v16  ;;  %v6065_v58 = vsel %vm709_vm0, %v667_v35, %v668_v36  ;;  %v6078_v59 = vsel %vm709_vm0, %v5977_v57, %v667_v35  ;;  %v847_v9 = vsel %vm806_vm1, %v764_v18, %v765_v52 }
  0xf7   :  { %v542_v61 = vmax.f32 %v376_v48, 0.0  ;;  %5399 = vmatmul.mubr.msk.bf16.vlgmr.msra.gmra.mxu0 %vm927_vm2, %v1547_v46  ;;  %5338 = vmatprep.subr.bf16.mxu1 %v6037_v38  ;;  %v671_v7 = vrot.slane %v6056_v53, 7  ;;  %v768_v18 = vrot.slane %v6056_v53, 1  ;;  %v884_v25 = vpack.c.bf16 %v9139_v56, %v6056_v53 }
  0xf8   :  { %5402 = vmatprep.mubr.msk.bf16.mxu0 %vm927_vm2, %v1548_v49  ;;  %v378_v0 = vpop.f32.mrf.mxu0  ;;  %5503 = vmatpush3.bf16.msra.mxu0 %v5952_v39 }
  0xf9   :  { %v669_v4 = vrot.slane %v542_v61, 7  ;;  %v766_v5 = vrot.slane %v542_v61, 1  ;;  %v379_v6 = vadd.f32 %v5962_v41, %v378_v0  ;;  %5291 = vmatmul.mubr.msk.bf16.gmra.mxu1 %vm927_vm2, %v882_v60  ;;  %5504 = vmatprep.subr.bf16.mxu0 %v6007_v16  ;;  %v6118_v35 = vsel %vm709_vm0, %v671_v7, %v5977_v57 }
  0xfa   :  { %v5244_v8 = vpop.f32.mrf.mxu0  ;;  %5339 = vmatpush3.bf16.msra.mxu1 %v6037_v38 }
  0xfb   :  { %v543_v10 = vmax.f32 %v379_v6, 0.0  ;;  %v400_v13 = vadd.f32 %v5244_v8, %v5962_v41  ;;  %v846_v39 = vsel %vm806_vm1, %v765_v52, %v766_v5  ;;  %5340 = vmatprep.subr.bf16.mxu1 %v6073_v62  ;;  %v6099_v14 = vsel %vm709_vm0, %v668_v36, %v669_v4 }
  0xfc   :  { %v391_v15 = vpop.f32.mrf.mxu0  ;;  %v1549_v19 = vpack.c.bf16 %v846_v39, %v847_v9  ;;  %5505 = vmatpush3.bf16.msra.mxu0 %v6007_v16 }
  0xfd   :  { %v670_v20 = vrot.slane %v543_v10, 7  ;;  %v767_v22 = vrot.slane %v543_v10, 1  ;;  %v883_v23 = vpack.c.bf16 %v543_v10, %v542_v61  ;;  %5506 = vmatprep.subr.bf16.mxu0 %v6037_v38  ;;  %v392_v26 = vadd.f32 %v5962_v41, %v391_v15 }
  0xfe   :  { %v5245_v27 = vpop.f32.mrf.mxu0  ;;  %5341 = vmatpush3.bf16.msra.mxu1 %v6073_v62  ;;  %v6108_v30 = vmax.f32 %v400_v13, 0.0 }
  0xff   :  { %v403_v33 = vadd.f32 %v5245_v27, %v5962_v41  ;;  %5403 = vmatmul.mubr.msk.bf16.gmra.mxu0 %vm927_vm2, %v1549_v19  ;;  %5294 = vmatprep.mubr.msk.bf16.mxu1 %vm927_vm2, %v883_v23  ;;  %v844_v16 = vsel %vm806_vm1, %v767_v22, %v768_v18  ;;  %v546_v36 = vmax.f32 %v392_v26, 0.0  ;;  %v845_v40 = vsel %vm806_vm1, %v766_v5, %v767_v22 }
 0x100   :  { %v394_v37 = vpop.f32.mrf.mxu0  ;;  %v6124_v42 = vsel %vm709_vm0, %v669_v4, %v670_v20  ;;  %v6128_v43 = vsel %vm709_vm0, %v670_v20, %v671_v7  ;;  %5446 = vmatprep.subr.bf16.mxu1 %v5848_v11  ;;  %5507 = vmatpush3.bf16.msra.mxu0 %v6037_v38  ;;  %v1550_v48 = vpack.c.bf16 %v844_v16, %v845_v40  ;;  %v675_v54 = vrot.slane %v6108_v30, 7 }
 0x101   :  { %v6132_v44 = vmax.f32 %v403_v33, 0.0  ;;  %v395_v46 = vadd.f32 %v5962_v41, %v394_v37  ;;  %5295 = vmatmul.mubr.msk.bf16.gmra.mxu1 %vm927_vm2, %v884_v25  ;;  %5508 = vmatprep.subr.bf16.mxu0 %v6073_v62  ;;  %v770_v52 = vrot.slane %v546_v36, 1  ;;  %v843_v11 = vsel %vm806_vm1, %v768_v18, %v6014_v21 }
 0x102   :  { %v5248_v53 = vpop.f32.mrf.mxu0  ;;  %v772_v60 = vrot.slane %v6108_v30, 1  ;;  %5406 = vmatprep.mubr.msk.bf16.mxu0 %vm927_vm2, %v1550_v48  ;;  %v673_v4 = vrot.slane %v546_v36, 7 }
 0x103   :  { %v676_v61 = vrot.slane %v6132_v44, 7  ;;  %v547_v0 = vmax.f32 %v395_v46, 0.0  ;;  %v773_v5 = vrot.slane %v6132_v44, 1  ;;  %v416_v6 = vadd.f32 %v5248_v53, %v5962_v41 }
 0x104   :  { %v407_v7 = vpop.f32.mrf.mxu0  ;;  %v842_v8 = vsel %vm806_vm1, %v6014_v21, %v770_v52  ;;  %5509 = vmatpush3.bf16.msra.mxu0 %v6073_v62  ;;  %v886_v15 = vpack.c.bf16 %v6132_v44, %v6108_v30 }
 0x105   :  { %v674_v9 = vrot.slane %v547_v0, 7  ;;  %v771_v10 = vrot.slane %v547_v0, 1  ;;  %v885_v13 = vpack.c.bf16 %v547_v0, %v546_v36  ;;  %v408_v39 = vadd.f32 %v5962_v41, %v407_v7 }
 0x106   :  { %v552_v19 = vmax.f32 %v416_v6, 0.0  ;;  %v5249_v18 = vpop.f32.mrf.mxu0  ;;  %v1551_v20 = vpack.c.bf16 %v842_v8, %v843_v11  ;;  %v6159_v22 = vsel %vm709_vm0, %v675_v54, %v676_v61  ;;  %v6175_v36 = vsel %vm709_vm0, %v5977_v57, %v673_v4 }
 0x107   :  { %v550_v23 = vmax.f32 %v408_v39, 0.0  ;;  %v419_v25 = vadd.f32 %v5249_v18, %v5962_v41  ;;  %5298 = vmatprep.mubr.msk.bf16.mxu1 %vm927_vm2, %v885_v13  ;;  %v840_v62 = vsel %vm806_vm1, %v771_v10, %v772_v60  ;;  %v841_v26 = vsel %vm806_vm1, %v770_v52, %v771_v10 }
 0x108   :  { %v776_v27 = vrot.slane %v552_v19, 1  ;;  %5407 = vmatmul.mubr.msk.bf16.gmra.mxu0 %vm927_vm2, %v1551_v20  ;;  %v410_v30 = vpop.f32.mrf.mxu0  ;;  %v1552_v33 = vpack.c.bf16 %v840_v62, %v841_v26  ;;  %v6170_v16 = vsel %vm709_vm0, %v673_v4, %v674_v9  ;;  %v6184_v53 = vsel %vm709_vm0, %v674_v9, %v675_v54 }
 0x109   :  { %v677_v37 = vrot.slane %v550_v23, 7  ;;  %v774_v40 = vrot.slane %v550_v23, 1  ;;  %v887_v44 = vpack.c.bf16 %v9139_v56, %v550_v23  ;;  %v553_v46 = vmax.f32 %v419_v25, 0.0  ;;  %5299 = vmatmul.mubr.msk.bf16.gmra.mxu1 %vm927_vm2, %v886_v15 }
 0x10a   :  { %v5252_v48 = vpop.f32.mrf.mxu0  ;;  %5410 = vmatprep.mubr.msk.bf16.mxu0 %vm927_vm2, %v1552_v33  ;;  %v679_v11 = vrot.slane %v552_v19, 7  ;;  %v839_v6 = vsel %vm806_vm1, %v772_v60, %v773_v5  ;;  %v836_v10 = vsel %vm806_vm1, %v6014_v21, %v776_v27 }
 0x10b   :  { %v680_v0 = vrot.slane %v553_v46, 7  ;;  %v432_v4 = vadd.f32 %v5252_v48, %v5962_v41  ;;  %5302 = vmatprep.mubr.msk.bf16.mxu1 %vm927_vm2, %v887_v44  ;;  %v838_v8 = vsel %vm806_vm1, %v773_v5, %v774_v40  ;;  %v837_v54 = vsel %vm806_vm1, %v774_v40, %v6014_v21 }
 0x10c   :  { %v423_v7 = vpop.f32.mrf.mxu0  ;;  %v1553_v39 = vpack.c.bf16 %v838_v8, %v839_v6  ;;  %v1554_v15 = vpack.c.bf16 %v836_v10, %v837_v54  ;;  %v6204_v60 = vsel %vm709_vm0, %v677_v37, %v5977_v57  ;;  %v777_v5 = vrot.slane %v553_v46, 1 }
 0x10d   :  { %v424_v13 = vadd.f32 %v5962_v41, %v423_v7  ;;  %v556_v18 = vmax.f32 %v432_v4, 0.0  ;;  %v6208_v23 = vsel %vm709_vm0, %v676_v61, %v677_v37  ;;  %v6212_v25 = vsel %vm709_vm0, %v679_v11, %v680_v0 }
 0x10e   :  { %v5253_v20 = vpop.f32.mrf.mxu0  ;;  %v888_v62 = vpack.c.bf16 %v553_v46, %v552_v19  ;;  %v6217_v30 = vsel %vm709_vm0, %v5977_v57, %v679_v11  ;;  %v835_v11 = vsel %vm806_vm1, %v776_v27, %v777_v5 }
 0x10f   :  { %v554_v26 = vmax.f32 %v424_v13, 0.0  ;;  %v683_v46 = vrot.slane %v556_v18, 7  ;;  %v780_v13 = vrot.slane %v556_v18, 1 }
 0x110   :  { %5411 = vmatmul.mubr.msk.bf16.gmra.mxu0 %vm927_vm2, %v1553_v39  ;;  %v426_v33 = vpop.f32.mrf.mxu0 }
 0x111   :  { %v681_v37 = vrot.slane %v554_v26, 7  ;;  %v778_v44 = vrot.slane %v554_v26, 1  ;;  %5414 = vmatprep.mubr.msk.bf16.mxu0 %vm927_vm2, %v1554_v15  ;;  %v427_v19 = vadd.f32 %v5962_v41, %v426_v33  ;;  %5303 = vmatmul.mubr.msk.bf16.gmra.mxu1 %vm927_vm2, %v888_v62  ;;  %v890_v62 = vpack.c.bf16 %v9139_v56, %v556_v18 }
 0x112   :  { %v5256_v48 = vpop.f32.mrf.mxu0 }
 0x113   :  { %v555_v4 = vmax.f32 %v427_v19, 0.0  ;;  %v448_v6 = vadd.f32 %v5256_v48, %v5962_v41  ;;  %v834_v7 = vsel %vm806_vm1, %v777_v5, %v778_v44  ;;  %v6234_v8 = vsel %vm709_vm0, %v680_v0, %v681_v37 }
 0x114   :  { %v439_v10 = vpop.f32.mrf.mxu0  ;;  %v1555_v54 = vpack.c.bf16 %v834_v7, %v835_v11  ;;  %v6247_v5 = vsel %vm709_vm0, %v683_v46, %v5977_v57 }
 0x115   :  { %v682_v39 = vrot.slane %v555_v4, 7  ;;  %v779_v15 = vrot.slane %v555_v4, 1  ;;  %v889_v20 = vpack.c.bf16 %v555_v4, %v554_v26  ;;  %v440_v27 = vadd.f32 %v5962_v41, %v439_v10 }
 0x116   :  { %v5257_v33 = vpop.f32.mrf.mxu0  ;;  %v6238_v19 = vmax.f32 %v448_v6, 0.0 }
 0x117   :  { %v451_v48 = vadd.f32 %v5257_v33, %v5962_v41  ;;  %5306 = vmatprep.mubr.msk.bf16.mxu1 %vm927_vm2, %v889_v20  ;;  %v832_v0 = vsel %vm806_vm1, %v779_v15, %v780_v13  ;;  %v558_v26 = vmax.f32 %v440_v27, 0.0  ;;  %v833_v11 = vsel %vm806_vm1, %v778_v44, %v779_v15 }
 0x118   :  { %5415 = vmatmul.mubr.msk.bf16.gmra.mxu0 %vm927_vm2, %v1555_v54  ;;  %v442_v18 = vpop.f32.mrf.mxu0  ;;  %v6254_v4 = vsel %vm709_vm0, %v681_v37, %v682_v39  ;;  %v6258_v6 = vsel %vm709_vm0, %v682_v39, %v683_v46  ;;  %v1556_v20 = vpack.c.bf16 %v832_v0, %v833_v11  ;;  %v831_v37 = vsel %vm806_vm1, %v780_v13, %v6014_v21 }
 0x119   :  { %v6260_v7 = vmax.f32 %v451_v48, 0.0  ;;  %v443_v10 = vadd.f32 %v5962_v41, %v442_v18  ;;  %5307 = vmatmul.mubr.msk.bf16.gmra.mxu1 %vm927_vm2, %v890_v62  ;;  %v782_v27 = vrot.slane %v558_v26, 1  ;;  %v687_v39 = vrot.slane %v6238_v19, 7 }
 0x11a   :  { %v5260_v44 = vpop.f32.mrf.mxu0  ;;  %v784_v15 = vrot.slane %v6238_v19, 1  ;;  %5418 = vmatprep.mubr.msk.bf16.mxu0 %vm927_vm2, %v1556_v20  ;;  %v685_v48 = vrot.slane %v558_v26, 7 }
 0x11b   :  { %v688_v33 = vrot.slane %v6260_v7, 7  ;;  %v559_v62 = vmax.f32 %v443_v10, 0.0  ;;  %v785_v0 = vrot.slane %v6260_v7, 1  ;;  %v464_v18 = vadd.f32 %v5260_v44, %v5962_v41 }
 0x11c   :  { %v455_v11 = vpop.f32.mrf.mxu0  ;;  %v830_v13 = vsel %vm806_vm1, %v6014_v21, %v782_v27  ;;  %v892_v10 = vpack.c.bf16 %v6260_v7, %v6238_v19 }
 0x11d   :  { %v686_v46 = vrot.slane %v559_v62, 7  ;;  %v783_v54 = vrot.slane %v559_v62, 1  ;;  %v891_v61 = vpack.c.bf16 %v559_v62, %v558_v26  ;;  %v456_v40 = vadd.f32 %v5962_v41, %v455_v11 }
 0x11e   :  { %v564_v9 = vmax.f32 %v464_v18, 0.0  ;;  %v5261_v20 = vpop.f32.mrf.mxu0  ;;  %v1557_v52 = vpack.c.bf16 %v830_v13, %v831_v37  ;;  %v6285_v38 = vsel %vm709_vm0, %v687_v39, %v688_v33 }
 0x11f   :  { %v562_v44 = vmax.f32 %v456_v40, 0.0  ;;  %v467_v49 = vadd.f32 %v5261_v20, %v5962_v41  ;;  %5310 = vmatprep.mubr.msk.bf16.mxu1 %vm927_vm2, %v891_v61  ;;  %v828_v26 = vsel %vm806_vm1, %v783_v54, %v784_v15  ;;  %v829_v62 = vsel %vm806_vm1, %v782_v27, %v783_v54 }
 0x120   :  { %v788_v11 = vrot.slane %v564_v9, 1  ;;  %5419 = vmatmul.mubr.msk.bf16.gmra.mxu0 %vm927_vm2, %v1557_v52  ;;  %v458_v19 = vpop.f32.mrf.mxu0  ;;  %v1558_v7 = vpack.c.bf16 %v828_v26, %v829_v62  ;;  %v6296_v37 = vsel %vm709_vm0, %v685_v48, %v686_v46  ;;  %v6301_v40 = vsel %vm709_vm0, %v5977_v57, %v685_v48 }
 0x121   :  { %v689_v61 = vrot.slane %v562_v44, 7  ;;  %v786_v18 = vrot.slane %v562_v44, 1  ;;  %v893_v13 = vpack.c.bf16 %v9139_v56, %v562_v44  ;;  %v565_v20 = vmax.f32 %v467_v49, 0.0  ;;  %5311 = vmatmul.mubr.msk.bf16.gmra.mxu1 %vm927_vm2, %v892_v10 }
 0x122   :  { %v5264_v54 = vpop.f32.mrf.mxu0  ;;  %5422 = vmatprep.mubr.msk.bf16.mxu0 %vm927_vm2, %v1558_v7  ;;  %v6310_v27 = vsel %vm709_vm0, %v686_v46, %v687_v39  ;;  %v691_v26 = vrot.slane %v564_v9, 7  ;;  %v827_v49 = vsel %vm806_vm1, %v784_v15, %v785_v0  ;;  %v824_v19 = vsel %vm806_vm1, %v6014_v21, %v788_v11 }
 0x123   :  { %v692_v48 = vrot.slane %v565_v20, 7  ;;  %v480_v62 = vadd.f32 %v5264_v54, %v5962_v41  ;;  %5314 = vmatprep.mubr.msk.bf16.mxu1 %vm927_vm2, %v893_v13  ;;  %v826_v44 = vsel %vm806_vm1, %v785_v0, %v786_v18  ;;  %v825_v46 = vsel %vm806_vm1, %v786_v18, %v6014_v21 }
 0x124   :  { %v471_v10 = vpop.f32.mrf.mxu0  ;;  %v1559_v13 = vpack.c.bf16 %v826_v44, %v827_v49  ;;  %v1560_v54 = vpack.c.bf16 %v824_v19, %v825_v46  ;;  %v6330_v15 = vsel %vm709_vm0, %v689_v61, %v5977_v57  ;;  %v789_v0 = vrot.slane %v565_v20, 1 }
 0x125   :  { %v472_v7 = vadd.f32 %v5962_v41, %v471_v10  ;;  %v568_v52 = vmax.f32 %v480_v62, 0.0  ;;  %v6334_v1 = vsel %vm709_vm0, %v688_v33, %v689_v61  ;;  %v6338_v18 = vsel %vm709_vm0, %v691_v26, %v692_v48 }
 0x126   :  { %v5265_v3 = vpop.f32.mrf.mxu0  ;;  %9181 = vst [vmem:[#allocation4_spill] sm:$0xff] %v6334_v1  ;;  %9182 = vst [vmem:[#allocation5_spill] sm:$0xff] %v6338_v18  ;;  %v894_v39 = vpack.c.bf16 %v565_v20, %v564_v9  ;;  %v6343_v49 = vsel %vm709_vm0, %v5977_v57, %v691_v26  ;;  %v823_v19 = vsel %vm806_vm1, %v788_v11, %v789_v0 }
 0x127   :  { %v566_v10 = vmax.f32 %v472_v7, 0.0  ;;  %9183 = vst [vmem:[#allocation6_spill] sm:$0xff] %v6343_v49  ;;  %v695_v20 = vrot.slane %v568_v52, 7  ;;  %v896_v45 = vpack.c.bf16 %v9139_v56, %v568_v52 }
 0x128   :  { %5423 = vmatmul.mubr.msk.bf16.gmra.mxu0 %vm927_vm2, %v1559_v13  ;;  %v474_v44 = vpop.f32.mrf.mxu0 }
 0x129   :  { %v693_v61 = vrot.slane %v566_v10, 7  ;;  %v790_v62 = vrot.slane %v566_v10, 1  ;;  %5426 = vmatprep.mubr.msk.bf16.mxu0 %vm927_vm2, %v1560_v54  ;;  %v475_v9 = vadd.f32 %v5962_v41, %v474_v44  ;;  %5315 = vmatmul.mubr.msk.bf16.gmra.mxu1 %vm927_vm2, %v894_v39  ;;  %v792_v44 = vrot.slane %v568_v52, 1 }
 0x12a   :  { %v5268_v26 = vpop.f32.mrf.mxu0 }
 0x12b   :  { %v567_v46 = vmax.f32 %v475_v9, 0.0  ;;  %v496_v7 = vadd.f32 %v5268_v26, %v5962_v41  ;;  %v822_v13 = vsel %vm806_vm1, %v789_v0, %v790_v62  ;;  %v6360_v33 = vsel %vm709_vm0, %v692_v48, %v693_v61 }
 0x12c   :  { %9184 = vst [vmem:[#allocation7_spill] sm:$0xff] %v6360_v33  ;;  %v487_v54 = vpop.f32.mrf.mxu0  ;;  %v1561_v3 = vpack.c.bf16 %v822_v13, %v823_v19  ;;  %v6373_v0 = vsel %vm709_vm0, %v695_v20, %v5977_v57 }
 0x12d   :  { %v694_v17 = vrot.slane %v567_v46, 7  ;;  %v791_v39 = vrot.slane %v567_v46, 1  ;;  %v895_v63 = vpack.c.bf16 %v567_v46, %v566_v10  ;;  %v488_v11 = vadd.f32 %v5962_v41, %v487_v54  ;;  %9185 = vst [vmem:[#allocation8_spill] sm:$0xff] %v6373_v0 }
 0x12e   :  { %v5269_v9 = vpop.f32.mrf.mxu0  ;;  %v6364_v49 = vmax.f32 %v496_v7, 0.0 }
 0x12f   :  { %v499_v26 = vadd.f32 %v5269_v9, %v5962_v41  ;;  %5318 = vmatprep.mubr.msk.bf16.mxu1 %vm927_vm2, %v895_v63  ;;  %v820_v48 = vsel %vm806_vm1, %v791_v39, %v792_v44  ;;  %v570_v10 = vmax.f32 %v488_v11, 0.0  ;;  %v821_v19 = vsel %vm806_vm1, %v790_v62, %v791_v39 }
 0x130   :  { %5427 = vmatmul.mubr.msk.bf16.gmra.mxu0 %vm927_vm2, %v1561_v3  ;;  %v490_v52 = vpop.f32.mrf.mxu0  ;;  %v6380_v46 = vsel %vm709_vm0, %v693_v61, %v694_v17  ;;  %v6384_v63 = vsel %vm709_vm0, %v694_v17, %v695_v20  ;;  %v1562_v54 = vpack.c.bf16 %v820_v48, %v821_v19  ;;  %v819_v61 = vsel %vm806_vm1, %v792_v44, %v6014_v21 }
 0x131   :  { %9186 = vst [vmem:[#allocation9_spill] sm:$0xff] %v6380_v46  ;;  %9187 = vst [vmem:[#allocation10_spill] sm:$0xff] %v6384_v63  ;;  %v6386_v7 = vmax.f32 %v499_v26, 0.0  ;;  %v491_v13 = vadd.f32 %v5962_v41, %v490_v52  ;;  %5319 = vmatmul.mubr.msk.bf16.gmra.mxu1 %vm927_vm2, %v896_v45  ;;  %v794_v11 = vrot.slane %v570_v10, 1  ;;  %v699_v20 = vrot.slane %v6364_v49, 7 }
 0x132   :  { %v5272_v62 = vpop.f32.mrf.mxu0  ;;  %v796_v39 = vrot.slane %v6364_v49, 1  ;;  %5430 = vmatprep.mubr.msk.bf16.mxu0 %vm927_vm2, %v1562_v54  ;;  %v697_v26 = vrot.slane %v570_v10, 7 }
 0x133   :  { %v700_v9 = vrot.slane %v6386_v7, 7  ;;  %v571_v45 = vmax.f32 %v491_v13, 0.0  ;;  %v797_v48 = vrot.slane %v6386_v7, 1  ;;  %v512_v52 = vadd.f32 %v5272_v62, %v5962_v41 }
 0x134   :  { %v503_v19 = vpop.f32.mrf.mxu0  ;;  %v818_v44 = vsel %vm806_vm1, %v6014_v21, %v794_v11  ;;  %v898_v13 = vpack.c.bf16 %v6386_v7, %v6364_v49 }
 0x135   :  { %v698_v17 = vrot.slane %v571_v45, 7  ;;  %v795_v3 = vrot.slane %v571_v45, 1  ;;  %v897_v56 = vpack.c.bf16 %v571_v45, %v570_v10  ;;  %v504_v63 = vadd.f32 %v5962_v41, %v503_v19 }
 0x136   :  { %v576_v0 = vmax.f32 %v512_v52, 0.0  ;;  %v5273_v54 = vpop.f32.mrf.mxu0  ;;  %v1563_v33 = vpack.c.bf16 %v818_v44, %v819_v61  ;;  %v6411_v46 = vsel %vm709_vm0, %v699_v20, %v700_v9  ;;  %v9189_v44 = vmov 0.0  }
 0x137   :  { %v574_v62 = vmax.f32 %v504_v63, 0.0  ;;  %v515_v18 = vadd.f32 %v5273_v54, %v5962_v41  ;;  %5322 = vmatprep.mubr.msk.bf16.mxu1 %vm927_vm2, %v897_v56  ;;  %v816_v10 = vsel %vm806_vm1, %v795_v3, %v796_v39  ;;  %v817_v45 = vsel %vm806_vm1, %v794_v11, %v795_v3 }
 0x138   :  { %v800_v19 = vrot.slane %v576_v0, 1  ;;  %5431 = vmatmul.mubr.msk.bf16.gmra.mxu0 %vm927_vm2, %v1563_v33  ;;  %v506_v49 = vpop.f32.mrf.mxu0  ;;  %v1564_v7 = vpack.c.bf16 %v816_v10, %v817_v45  ;;  %v6422_v61 = vsel %vm709_vm0, %v697_v26, %v698_v17  ;;  %v6427_v63 = vsel %vm709_vm0, %v5977_v57, %v697_v26 }
 0x139   :  { %9188 = vst [vmem:[#allocation11_spill] sm:$0xff] %v6427_v63  ;;  %v701_v56 = vrot.slane %v574_v62, 7  ;;  %v798_v52 = vrot.slane %v574_v62, 1  ;;  %v899_v54 = vpack.c.bf16 %v9189_v44, %v574_v62  ;;  %v577_v1 = vmax.f32 %v515_v18, 0.0  ;;  %5323 = vmatmul.mubr.msk.bf16.gmra.mxu1 %vm927_vm2, %v898_v13 }
 0x13a   :  { %v5276_v3 = vpop.f32.mrf.mxu0  ;;  %5434 = vmatprep.mubr.msk.bf16.mxu0 %vm927_vm2, %v1564_v7  ;;  %v6436_v11 = vsel %vm709_vm0, %v698_v17, %v699_v20  ;;  %v703_v10 = vrot.slane %v576_v0, 7  ;;  %v815_v18 = vsel %vm806_vm1, %v796_v39, %v797_v48  ;;  %v812_v49 = vsel %vm806_vm1, %v6014_v21, %v800_v19 }
 0x13b   :  { %9190 = vst [vmem:[#allocation12_spill] sm:$0xff] %v6436_v11  ;;  %v704_v26 = vrot.slane %v577_v1, 7  ;;  %v528_v45 = vadd.f32 %v5276_v3, %v5962_v41  ;;  %5326 = vmatprep.mubr.msk.bf16.mxu1 %vm927_vm2, %v899_v54  ;;  %v814_v62 = vsel %vm806_vm1, %v797_v48, %v798_v52  ;;  %v813_v17 = vsel %vm806_vm1, %v798_v52, %v6014_v21 }
 0x13c   :  { %v519_v13 = vpop.f32.mrf.mxu0  ;;  %v1565_v54 = vpack.c.bf16 %v814_v62, %v815_v18  ;;  %v1566_v3 = vpack.c.bf16 %v812_v49, %v813_v17  ;;  %v6456_v39 = vsel %vm709_vm0, %v701_v56, %v5977_v57  ;;  %v6460_v63 = vsel %vm709_vm0, %v700_v9, %v701_v56 }
 0x13d   :  { %v520_v7 = vadd.f32 %v5962_v41, %v519_v13  ;;  %v580_v48 = vmax.f32 %v528_v45, 0.0  ;;  %v6464_v52 = vsel %vm709_vm0, %v703_v10, %v704_v26  ;;  %v801_v20 = vrot.slane %v577_v1, 1 }
 0x13e   :  { %v5277_v33 = vpop.f32.mrf.mxu0  ;;  %v900_v11 = vpack.c.bf16 %v577_v1, %v576_v0  ;;  %v6469_v18 = vsel %vm709_vm0, %v5977_v57, %v703_v10 }
 0x13f   :  { %v578_v13 = vmax.f32 %v520_v7, 0.0  ;;  %9191 = vst [vmem:[#allocation13_spill] sm:$0xff] %v6469_v18  ;;  %v707_v0 = vrot.slane %v580_v48, 7  ;;  %v811_v17 = vsel %vm806_vm1, %v800_v19, %v801_v20  ;;  %v804_v9 = vrot.slane %v580_v48, 1 }
 0x140   :  { %5435 = vmatmul.mubr.msk.bf16.gmra.mxu0 %vm927_vm2, %v1565_v54  ;;  %v522_v45 = vpop.f32.mrf.mxu0 }
 0x141   :  { %v705_v56 = vrot.slane %v578_v13, 7  ;;  %v802_v62 = vrot.slane %v578_v13, 1  ;;  %5438 = vmatprep.mubr.msk.bf16.mxu0 %vm927_vm2, %v1566_v3  ;;  %v523_v1 = vadd.f32 %v5962_v41, %v522_v45  ;;  %5327 = vmatmul.mubr.msk.bf16.gmra.mxu1 %vm927_vm2, %v900_v11  ;;  %v902_v41 = vpack.c.bf16 %v9189_v44, %v580_v48 }
 0x142   :  { %v710_v11 = vsel %vm709_vm0, %v707_v0, %v5977_v57 }
 0x143   :  { %v579_v10 = vmax.f32 %v523_v1, 0.0  ;;  %v810_v49 = vsel %vm806_vm1, %v801_v20, %v802_v62  ;;  %v713_v7 = vsel %vm709_vm0, %v704_v26, %v705_v56 }
 0x144   :  { %v1567_v54 = vpack.c.bf16 %v810_v49, %v811_v17 }
 0x145   :  { %v706_v33 = vrot.slane %v579_v10, 7  ;;  %v803_v18 = vrot.slane %v579_v10, 1  ;;  %v901_v3 = vpack.c.bf16 %v579_v10, %v578_v13  ;;  %v9192_v10 = vpack.c.bf16 %v6019_v24, %v6026_v32 }
 0x146   :  { %v9194_v24 = vpack.c.bf16 %v5985_v2, %v5995_v12  ;;  %v9195_v32 = vpack.c.bf16 %v6054_v50, %v6061_v55  ;;  %v9196_v2 = vpack.c.bf16 %v6065_v58, %v6078_v59  ;;  %v9197_v12 = vpack.c.bf16 %v6124_v42, %v6099_v14 }
 0x147   :  { %5330 = vmatprep.mubr.msk.bf16.mxu1 %vm927_vm2, %v901_v3  ;;  %v808_v45 = vsel %vm806_vm1, %v803_v18, %v804_v9  ;;  %v809_v19 = vsel %vm806_vm1, %v802_v62, %v803_v18  ;;  %v712_v26 = vsel %vm709_vm0, %v705_v56, %v706_v33  ;;  %v711_v20 = vsel %vm709_vm0, %v706_v33, %v707_v0 }
 0x148   :  { %5439 = vmatmul.mubr.msk.bf16.gmra.mxu0 %vm927_vm2, %v1567_v54  ;;  %v1568_v48 = vpack.c.bf16 %v808_v45, %v809_v19  ;;  %v877_v13 = vpack.c.bf16 %v712_v26, %v713_v7  ;;  %v878_v1 = vpack.c.bf16 %v710_v11, %v711_v20  ;;  %v807_v18 = vsel %vm806_vm1, %v804_v9, %v6014_v21 }
 0x149   :  { %5331 = vmatmul.mubr.msk.bf16.gmra.mxu1 %vm927_vm2, %v902_v41  ;;  %v9193_v33 = vrot.slane %v5969_v51, 1  ;;  %v5741_v51 = vld [vmem:[%s9127_s3 + $0x38] sm:$0xff]   ;;  %v9199_v50 = vpack.c.bf16 %v6170_v16, %v6175_v36  ;;  %v9200_v55 = vpack.c.bf16 %v6159_v22, %v6184_v53  ;;  %v9204_v58 = vpack.c.bf16 %v6247_v5, %v6258_v6  ;;  %v9210_v22 = vld [vmem:[#allocation6_spill] sm:$0xff]  ;;  %v9213_v53 = vld [vmem:[#allocation7_spill] sm:$0xff] }
 0x14a   :  { %5342 = vmatprep.mubr.msk.bf16.mxu1 %vm927_vm2, %v9192_v10  ;;  %5442 = vmatprep.mubr.msk.bf16.mxu0 %vm927_vm2, %v1568_v48  ;;  %v9205_v59 = vpack.c.bf16 %v6296_v37, %v6301_v40  ;;  %v9206_v14 = vpack.c.bf16 %v6285_v38, %v6310_v27  ;;  %v9212_v36 = vld [vmem:[#allocation9_spill] sm:$0xff]  ;;  %v9220_v5 = vld [vmem:[#allocation12_spill] sm:$0xff]  ;;  %v9222_v6 = vpack.c.bf16 %v6456_v39, %v6460_v63 }
 0x14b   :  { %v854_v56 = vsel %vm806_vm1, %v6014_v21, %v9193_v33  ;;  %v9223_v37 = vld [vmem:[#allocation13_spill] sm:$0xff] }
 0x14c   :  { %v1569_v62 = vpack.c.bf16 %v854_v56, %v807_v18  ;;  %v9224_v40 = vpack.c.bf16 %v6464_v52, %v9223_v37 }
 0x150   :  { %5443 = vmatmul.mubr.msk.bf16.gmra.mxu0 %vm927_vm2, %v1569_v62 }
 0x151   :  { %5343 = vmatmul.mubr.msk.bf16.vlgmr.msra.gmra.mxu1 %vm927_vm2, %v9194_v24 }
 0x152   :  { %5346 = vmatprep.mubr.msk.bf16.mxu1 %vm927_vm2, %v9195_v32  ;;  %5447 = vmatpush3.bf16.msra.mxu1 %v5741_v51 }
 0x153   :  { %5448 = vmatprep.subr.bf16.mxu1 %v5903_v28 }
 0x156   :  { %5449 = vmatpush3.bf16.msra.mxu1 %v5903_v28  ;;  %v9198_v28 = vpack.c.bf16 %v6118_v35, %v6128_v43  ;;  %v9207_v35 = vld [vmem:[#allocation4_spill] sm:$0xff]  ;;  %v9209_v43 = vld [vmem:[#allocation5_spill] sm:$0xff] }
 0x157   :  { %5450 = vmatprep.subr.bf16.mxu1 %v5919_v31  ;;  %v9208_v42 = vpack.c.bf16 %v6330_v15, %v9207_v35  ;;  %v9211_v16 = vpack.c.bf16 %v9209_v43, %v9210_v22 }
 0x159   :  { %5347 = vmatmul.mubr.msk.bf16.gmra.mxu1 %vm927_vm2, %v9196_v2 }
 0x15a   :  { %5350 = vmatprep.mubr.msk.bf16.mxu1 %vm927_vm2, %v9197_v12  ;;  %5451 = vmatpush3.bf16.msra.mxu1 %v5919_v31  ;;  %v9201_v31 = vpack.c.bf16 %v6204_v60, %v6208_v23  ;;  %v9214_v60 = vpack.c.bf16 %v9212_v36, %v9213_v53  ;;  %v9215_v23 = vld [vmem:[#allocation8_spill] sm:$0xff] }
 0x15b   :  { %5452 = vmatprep.subr.bf16.mxu1 %v5933_v34 }
 0x15e   :  { %5453 = vmatpush3.bf16.msra.mxu1 %v5933_v34  ;;  %v9203_v34 = vpack.c.bf16 %v6254_v4, %v6234_v8  ;;  %v9221_v4 = vpack.c.bf16 %v6411_v46, %v9220_v5 }
 0x15f   :  { %5558 = vmatprep.subr.bf16.mxu1 %v5909_v29  ;;  %v9202_v29 = vpack.c.bf16 %v6212_v25, %v6217_v30  ;;  %v9216_v25 = vld [vmem:[#allocation10_spill] sm:$0xff]  ;;  %v9218_v30 = vld [vmem:[#allocation11_spill] sm:$0xff] }
 0x160   :  { %v9217_v38 = vpack.c.bf16 %v9215_v23, %v9216_v25  ;;  %v9219_v8 = vpack.c.bf16 %v6422_v61, %v9218_v30 }
 0x161   :  { %5351 = vmatmul.mubr.msk.bf16.gmra.mxu1 %vm927_vm2, %v9198_v28 }
 0x162   :  { %5354 = vmatprep.mubr.msk.bf16.mxu1 %vm927_vm2, %v9199_v50 }
 0x169   :  { %5355 = vmatmul.mubr.msk.bf16.gmra.mxu1 %vm927_vm2, %v9200_v55 }
 0x16a   :  { %5358 = vmatprep.mubr.msk.bf16.mxu1 %vm927_vm2, %v9201_v31 }
 0x171   :  { %5359 = vmatmul.mubr.msk.bf16.gmra.mxu1 %vm927_vm2, %v9202_v29 }
 0x172   :  { %5362 = vmatprep.mubr.msk.bf16.mxu1 %vm927_vm2, %v9203_v34 }
 0x179   :  { %5363 = vmatmul.mubr.msk.bf16.gmra.mxu1 %vm927_vm2, %v9204_v58 }
 0x17a   :  { %5366 = vmatprep.mubr.msk.bf16.mxu1 %vm927_vm2, %v9205_v59 }
 0x181   :  { %5367 = vmatmul.mubr.msk.bf16.gmra.mxu1 %vm927_vm2, %v9206_v14 }
 0x182   :  { %5370 = vmatprep.mubr.msk.bf16.mxu1 %vm927_vm2, %v9208_v42 }
 0x189   :  { %5371 = vmatmul.mubr.msk.bf16.gmra.mxu1 %vm927_vm2, %v9211_v16 }
 0x18a   :  { %5374 = vmatprep.mubr.msk.bf16.mxu1 %vm927_vm2, %v9214_v60 }
 0x191   :  { %5375 = vmatmul.mubr.msk.bf16.gmra.mxu1 %vm927_vm2, %v9217_v38 }
 0x192   :  { %5378 = vmatprep.mubr.msk.bf16.mxu1 %vm927_vm2, %v9219_v8 }
 0x199   :  { %5379 = vmatmul.mubr.msk.bf16.gmra.mxu1 %vm927_vm2, %v9221_v4 }
 0x19a   :  { %5382 = vmatprep.mubr.msk.bf16.mxu1 %vm927_vm2, %v9222_v6 }
 0x1a1   :  { %5383 = vmatmul.mubr.msk.bf16.gmra.mxu1 %vm927_vm2, %v9224_v40 }
 0x1a2   :  { %5386 = vmatprep.mubr.msk.bf16.mxu1 %vm927_vm2, %v877_v13 }
 0x1a9   :  { %5387 = vmatmul.mubr.msk.bf16.gmra.mxu1 %vm927_vm2, %v878_v1 }
 0x1b1   :  { %v6610_v27 = vpop.f32.mrf.mxu1 }
 0x1b3   :  { %v6612_v15 = vpop.f32.mrf.mxu1 }
 0x1b5   :  { %v6614_v46 = vpop.f32.mrf.mxu1 }
 0x1b7   :  { %v6616_v61 = vpop.f32.mrf.mxu1  ;;  %v5400_v18 = vpop.f32.mrf.mxu0 }
 0x1b9   :  { %v6618_v63 = vpop.f32.mrf.mxu1  ;;  %v1700_v62 = vpop.f32.mrf.mxu0 }
 0x1bb   :  { %v6620_v39 = vpop.f32.mrf.mxu1  ;;  %v5401_v51 = vpop.f32.mrf.mxu0 }
 0x1bd   :  { %v6622_v9 = vpop.f32.mrf.mxu1  ;;  %v1703_v28 = vpop.f32.mrf.mxu0 }
 0x1bf   :  { %v6624_v52 = vpop.f32.mrf.mxu1  ;;  %v5404_v31 = vpop.f32.mrf.mxu0 }
 0x1c1   :  { %v6626_v0 = vpop.f32.mrf.mxu1  ;;  %v1716_v58 = vpop.f32.mrf.mxu0 }
 0x1c3   :  { %v6628_v49 = vpop.f32.mrf.mxu1  ;;  %v5405_v35 = vpop.f32.mrf.mxu0 }
 0x1c5   :  { %v6630_v17 = vpop.f32.mrf.mxu1  ;;  %v6686_v22 = vpop.f32.mrf.mxu0 }
 0x1c7   :  { %v6632_v7 = vpop.f32.mrf.mxu1 }
 0x1c8   :  { %v6692_v53 = vpop.f32.mrf.mxu0 }
 0x1c9   :  { %v6634_v54 = vpop.f32.mrf.mxu1 }
 0x1ca   :  { %v6698_v25 = vpop.f32.mrf.mxu0 }
 0x1cb   :  { %v6636_v3 = vpop.f32.mrf.mxu1 }
 0x1cc   :  { %v6704_v8 = vpop.f32.mrf.mxu0 }
 0x1cd   :  { %v6638_v41 = vpop.f32.mrf.mxu1 }
 0x1ce   :  { %v6710_v6 = vpop.f32.mrf.mxu0 }
 0x1cf   :  { %v6640_v11 = vpop.f32.mrf.mxu1 }
 0x1d0   :  { %v6716_v21 = vpop.f32.mrf.mxu0 }
 0x1d1   :  { %v6642_v45 = vpop.f32.mrf.mxu1 }
 0x1d3   :  { %v6644_v19 = vpop.f32.mrf.mxu1 }
 0x1d5   :  { %v6646_v26 = vpop.f32.mrf.mxu1 }
 0x1d7   :  { %v6648_v20 = vpop.f32.mrf.mxu1 }
 0x1d9   :  { %v6650_v48 = vpop.f32.mrf.mxu1 }
 0x1db   :  { %v6652_v13 = vpop.f32.mrf.mxu1 }
 0x1dd   :  { %v6654_v1 = vpop.f32.mrf.mxu1 }
 0x1df   :  { %v6656_v10 = vpop.f32.mrf.mxu1 }
 0x1e1   :  { %v6658_v33 = vpop.f32.mrf.mxu1 }
 0x1e3   :  { %v6660_v56 = vpop.f32.mrf.mxu1 }
 0x1e5   :  { %v6662_v24 = vpop.f32.mrf.mxu1 }
 0x1e7   :  { %v6664_v32 = vpop.f32.mrf.mxu1 }
 0x1e9   :  { %v6666_v2 = vpop.f32.mrf.mxu1 }
 0x1eb   :  { %v6668_v12 = vpop.f32.mrf.mxu1 }
 0x1ec   :  { %9225 = vst [vmem:[#allocation4_spill] sm:$0xff] %v6668_v12 }
 0x1ed   :  { %v6670_v50 = vpop.f32.mrf.mxu1 }
 0x1ee   :  { %9226 = vst [vmem:[#allocation5_spill] sm:$0xff] %v6670_v50 }
 0x1ef   :  { %v6672_v55 = vpop.f32.mrf.mxu1 }
 0x1f0   :  { %9227 = vst [vmem:[#allocation6_spill] sm:$0xff] %v6672_v55 }
 0x1f1   :  { %v6674_v29 = vpop.f32.mrf.mxu1 }
 0x1f2   :  { %9228 = vst [vmem:[#allocation9_spill] sm:$0xff] %v6674_v29 }
 0x1f3   :  { %v6676_v34 = vpop.f32.mrf.mxu1 }
 0x1f4   :  { %9229 = vst [vmem:[#allocation7_spill] sm:$0xff] %v6676_v34 }
 0x1f5   :  { %v6678_v59 = vpop.f32.mrf.mxu1 }
 0x1f6   :  { %9230 = vst [vmem:[#allocation8_spill] sm:$0xff] %v6678_v59 }
 0x1f7   :  { %v6680_v14 = vpop.f32.mrf.mxu1 }
 0x1f8   :  { %9231 = vst [vmem:[#allocation10_spill] sm:$0xff] %v6680_v14 }
 0x1f9   :  { %v6682_v42 = vpop.f32.mrf.mxu1 }
 0x1fa   :  { %9232 = vst [vmem:[#allocation11_spill] sm:$0xff] %v6682_v42 }
 0x1fb   :  { %v6684_v43 = vpop.f32.mrf.mxu1 }
 0x1fc   :  { %9233 = vst [vmem:[#allocation12_spill] sm:$0xff] %v6684_v43 }
 0x1fd   :  { %v6688_v16 = vpop.f32.mrf.mxu1 }
 0x1fe   :  { %9234 = vst [vmem:[#allocation13_spill] sm:$0xff] %v6688_v16 }
 0x1ff   :  { %v6690_v36 = vpop.f32.mrf.mxu1 }
 0x200   :  { %9235 = vst [vmem:[#allocation14_spill] sm:$0xff] %v6690_v36  ;;  %v6719_v36 = vpop.f32.mrf.mxu0 }
 0x201   :  { %v6694_v60 = vpop.f32.mrf.mxu1 }
 0x202   :  { %9236 = vst [vmem:[#allocation15_spill] sm:$0xff] %v6694_v60  ;;  %v6729_v42 = vpop.f32.mrf.mxu0 }
 0x203   :  { %v6696_v23 = vpop.f32.mrf.mxu1 }
 0x204   :  { %9237 = vst [vmem:[#allocation16_spill] sm:$0xff] %v6696_v23 }
 0x205   :  { %v6700_v38 = vpop.f32.mrf.mxu1 }
 0x206   :  { %9238 = vst [vmem:[#allocation17_spill] sm:$0xff] %v6700_v38 }
 0x207   :  { %v6702_v30 = vpop.f32.mrf.mxu1 }
 0x208   :  { %9239 = vst [vmem:[#allocation18_spill] sm:$0xff] %v6702_v30 }
 0x209   :  { %v6706_v5 = vpop.f32.mrf.mxu1 }
 0x20a   :  { %9240 = vst [vmem:[#allocation19_spill] sm:$0xff] %v6706_v5  ;;  %v6724_v5 = vld [vmem:[%s9129_s4] ss:$0 sm:$0xff] }
 0x20b   :  { %v6708_v4 = vpop.f32.mrf.mxu1 }
 0x20c   :  { %9241 = vst [vmem:[#allocation20_spill] sm:$0xff] %v6708_v4 }
 0x20d   :  { %v6712_v37 = vpop.f32.mrf.mxu1 }
 0x20e   :  { %9242 = vst [vmem:[#allocation21_spill] sm:$0xff] %v6712_v37 }
 0x20f   :  { %v6714_v40 = vpop.f32.mrf.mxu1 }
 0x210   :  { %9243 = vst [vmem:[#allocation22_spill] sm:$0xff] %v6714_v40 }
 0x211   :  { %v5344_v23 = vpop.f32.mrf.mxu1 }
 0x212   :  { %v1364_v60 = vadd.f32 %v5344_v23, %v6610_v27 }
 0x213   :  { %v1355_v38 = vpop.f32.mrf.mxu1 }
 0x214   :  { %v1893_v4 = vadd.f32 %v5400_v18, %v1364_v60  ;;  %v1356_v30 = vadd.f32 %v1355_v38, %v6612_v15  ;;  %v6736_v38 = vpop.f32.mrf.mxu0 }
 0x215   :  { %v5345_v16 = vpop.f32.mrf.mxu1 }
 0x216   :  { %v1367_v37 = vadd.f32 %v5345_v16, %v6614_v46  ;;  %v1947_v40 = vadd.f32 %v6724_v5, %v1893_v4  ;;  %v1891_v27 = vadd.f32 %v1700_v62, %v1356_v30 }
 0x217   :  { %v1358_v43 = vpop.f32.mrf.mxu1 }
 0x218   :  { %v1894_v23 = vadd.f32 %v5401_v51, %v1367_v37  ;;  %v1359_v14 = vadd.f32 %v1358_v43, %v6616_v61  ;;  %v6733_v29 = vmax.f32 %v1947_v40, 0.0  ;;  %v1945_v46 = vadd.f32 %v6724_v5, %v1891_v27  ;;  %v6748_v37 = vpop.f32.mrf.mxu0 }
 0x219   :  { %v5348_v59 = vpop.f32.mrf.mxu1 }
 0x21a   :  { %v1948_v34 = vadd.f32 %v6724_v5, %v1894_v23  ;;  %v1892_v18 = vadd.f32 %v1703_v28, %v1359_v14  ;;  %v1380_v15 = vadd.f32 %v5348_v59, %v6618_v63  ;;  %v2043_v63 = vrot.slane %v6733_v29, 1 }
 0x21b   :  { %v1371_v60 = vpop.f32.mrf.mxu1 }
 0x21c   :  { %v6739_v16 = vmax.f32 %v1948_v34, 0.0  ;;  %v1372_v62 = vadd.f32 %v1371_v60, %v6620_v39  ;;  %v1946_v51 = vadd.f32 %v6724_v5, %v1892_v18  ;;  %v1897_v61 = vadd.f32 %v5404_v31, %v1380_v15 }
 0x21d   :  { %v5349_v43 = vpop.f32.mrf.mxu1  ;;  %v6750_v34 = vmax.f32 %v1945_v46, 0.0 }
 0x21e   :  { %v2044_v30 = vrot.slane %v6739_v16, 1  ;;  %v1895_v4 = vadd.f32 %v1716_v58, %v1372_v62  ;;  %v1383_v28 = vadd.f32 %v5349_v43, %v6622_v9  ;;  %v6746_v59 = vmax.f32 %v1946_v51, 0.0  ;;  %v6764_v62 = vpop.f32.mrf.mxu0 }
 0x21f   :  { %v1374_v14 = vpop.f32.mrf.mxu1  ;;  %v2188_v27 = vrot.slane %v6739_v16, 2  ;;  %v1951_v58 = vadd.f32 %v6724_v5, %v1897_v61  ;;  %v2187_v51 = vrot.slane %v6733_v29, 2  ;;  %v2041_v61 = vrot.slane %v6750_v34, 1 }
 0x220   :  { %v1949_v39 = vadd.f32 %v6724_v5, %v1895_v4  ;;  %v1898_v40 = vadd.f32 %v5405_v35, %v1383_v28  ;;  %v2133_v31 = vsel %vm806_vm1, %v2043_v63, %v2044_v30  ;;  %v2042_v23 = vrot.slane %v6746_v59, 1 }
 0x221   :  { %v5352_v9 = vpop.f32.mrf.mxu1  ;;  %v1375_v15 = vadd.f32 %v1374_v14, %v6624_v52  ;;  %v6770_v4 = vadd.s32 32, %v5966_v47  ;;  %v2139_v52 = vmax.f32 %v6733_v29, %v2133_v31  ;;  %v6780_v55 = vmax.f32 %v1951_v58, 0.0 }
 0x222   :  { %v6758_v18 = vmax.f32 %v1949_v39, 0.0  ;;  %v1396_v60 = vadd.f32 %v5352_v9, %v6626_v0  ;;  %v1952_v35 = vadd.f32 %v6724_v5, %v1898_v40  ;;  %v2278_v40 = vsel %vm2233_vm3, %v2187_v51, %v2188_v27 }
 0x223   :  { %v1387_v46 = vpop.f32.mrf.mxu1  ;;  %9244 = vst [vmem:[#allocation23_spill] sm:$0xff] %v6770_v4  ;;  %v1896_v0 = vadd.f32 %v6686_v22, %v1375_v15  ;;  %v2134_v9 = vsel %vm806_vm1, %v2042_v23, %v2043_v63  ;;  %vm2334_vm4 = vcmp.lt.s32.totalorder %v6770_v4, 38 }
 0x224   :  { %v9152_v43 = vrot.slane %v6758_v18, 1  ;;  %v1901_v28 = vadd.f32 %v6692_v53, %v1396_v60  ;;  %v1388_v14 = vadd.f32 %v1387_v46, %v6628_v49  ;;  %v6787_v31 = vmax.f32 %v1952_v35, 0.0  ;;  %v6791_v60 = vpop.f32.mrf.mxu0 }
 0x225   :  { %v5353_v39 = vpop.f32.mrf.mxu1  ;;  %v1950_v49 = vadd.f32 %v6724_v5, %v1896_v0  ;;  %v6799_v35 = vmax.f32 %v2139_v52, %v2278_v40  ;;  %v2186_v0 = vrot.slane %v6746_v59, 2 }
 0x226   :  { %v2132_v29 = vsel %vm806_vm1, %v2044_v30, %v9152_v43  ;;  %v1899_v53 = vadd.f32 %v6698_v25, %v1388_v14  ;;  %v1399_v58 = vadd.f32 %v5353_v39, %v6630_v17  ;;  %v2135_v30 = vsel %vm806_vm1, %v2041_v61, %v2042_v23  ;;  %v6813_v40 = vpop.f32.mrf.mxu0 }
 0x227   :  { %v1390_v15 = vpop.f32.mrf.mxu1  ;;  %v2140_v63 = vmax.f32 %v6739_v16, %v2132_v29  ;;  %v2185_v43 = vrot.slane %v6750_v34, 2  ;;  %9245 = vst [vmem:[#allocation24_spill] sm:$0xff] %v6799_v35  ;;  %v1955_v25 = vadd.f32 %v6724_v5, %v1901_v28  ;;  %v1998_v22 = vmax.f32 %v1950_v49, 0.0 }
 0x228   :  { %v1391_v46 = vadd.f32 %v1390_v15, %v6632_v7  ;;  %v1953_v50 = vadd.f32 %v6724_v5, %v1899_v53  ;;  %v1902_v16 = vadd.f32 %v6704_v8, %v1399_v58  ;;  %v2138_v7 = vmax.f32 %v6746_v59, %v2134_v9 }
 0x229   :  { %v5356_v14 = vpop.f32.mrf.mxu1  ;;  %v9246_v23 = vrot.slane %v6758_v18, 2  ;;  %v2137_v39 = vmax.f32 %v6750_v34, %v2135_v30  ;;  %v2047_v29 = vrot.slane %v6780_v55, 1  ;;  %v2048_v8 = vrot.slane %v6787_v31, 1 }
 0x22a   :  { %v1900_v17 = vadd.f32 %v6710_v6, %v1391_v46  ;;  %v1412_v52 = vadd.f32 %v5356_v14, %v6634_v54  ;;  %v1956_v6 = vadd.f32 %v6724_v5, %v1902_v16  ;;  %v2386_v59 = vrot.slane %v6799_v35, 7 }
 0x22b   :  { %v2277_v61 = vsel %vm2233_vm3, %v2188_v27, %v9246_v23  ;;  %v1403_v28 = vpop.f32.mrf.mxu1  ;;  %v6822_v27 = vmax.f32 %v1955_v25, 0.0  ;;  %v2046_v53 = vrot.slane %v1998_v22, 1  ;;  %v6825_v15 = vmax.f32 %v1953_v50, 0.0  ;;  %v6836_v23 = vpop.f32.mrf.mxu0 }
 0x22c   :  { %v6816_v49 = vmax.f32 %v2140_v63, %v2277_v61  ;;  %v1954_v54 = vadd.f32 %v6724_v5, %v1900_v17  ;;  %v2279_v63 = vsel %vm2233_vm3, %v2186_v0, %v2187_v51  ;;  %v2280_v58 = vsel %vm2233_vm3, %v2185_v43, %v2186_v0 }
 0x22d   :  { %v5357_v34 = vpop.f32.mrf.mxu1  ;;  %v2004_v46 = vmax.f32 %v1956_v6, 0.0  ;;  %v1905_v30 = vadd.f32 %v6716_v21, %v1412_v52  ;;  %v6832_v14 = vmax.f32 %v2137_v39, %v2280_v58  ;;  %v6834_v16 = vmax.f32 %v2138_v7, %v2279_v63  ;;  %v6862_v17 = vpop.f32.mrf.mxu0 }
 0x22e   :  { %v6841_v50 = vsel %vm806_vm1, %v2047_v29, %v2048_v8  ;;  %v6844_v61 = vmax.f32 %v1954_v54, 0.0  ;;  %v2190_v21 = vrot.slane %v1998_v22, 2  ;;  %v2051_v0 = vrot.slane %v6822_v27, 1 }
 0x22f   :  { %9247 = vst [vmem:[#allocation25_spill] sm:$0xff] %v6832_v14  ;;  %9248 = vst [vmem:[#allocation26_spill] sm:$0xff] %v6834_v16  ;;  %v1406_v25 = vpop.f32.mrf.mxu1  ;;  %v2600_v7 = vpack.c.bf16 %v6834_v16, %v6832_v14  ;;  %v9249_v39 = vrot.slane %v6758_v18, 1  ;;  %v1404_v54 = vadd.f32 %v1403_v28, %v6636_v3  ;;  %v2384_v63 = vrot.slane %v6832_v14, 7  ;;  %v6888_v14 = vpop.f32.mrf.mxu0 }
 0x230   :  { %v2052_v9 = vrot.slane %v2004_v46, 1  ;;  %v1959_v43 = vadd.f32 %v6724_v5, %v1905_v30  ;;  %v2196_v12 = vrot.slane %v2004_v46, 2  ;;  %v1415_v28 = vadd.f32 %v5357_v34, %v6638_v41 }
 0x231   :  { %v5360_v52 = vpop.f32.mrf.mxu1  ;;  %v2131_v29 = vsel %vm806_vm1, %v9249_v39, %v2046_v53  ;;  %5454 = vmatprep.mubr.msk.bf16.mxu1 %vm927_vm2, %v2600_v7  ;;  %v2385_v39 = vrot.slane %v6834_v16, 7  ;;  %v2479_v3 = vsel %vm709_vm0, %v5977_v57, %v2384_v63  ;;  %v2601_v58 = vpack.c.bf16 %v6816_v49, %v6799_v35 }
 0x232   :  { %v1407_v30 = vadd.f32 %v1406_v25, %v6640_v11  ;;  %v9250_v7 = vrot.slane %v6816_v49, 7  ;;  %v1903_v53 = vadd.f32 %v6719_v36, %v1404_v54  ;;  %v1428_v41 = vadd.f32 %v5360_v52, %v6642_v45 }
 0x233   :  { %v1419_v51 = vpop.f32.mrf.mxu1  ;;  %v2477_v22 = vsel %vm709_vm0, %v2385_v39, %v2386_v59  ;;  %v2478_v16 = vsel %vm709_vm0, %v2384_v63, %v2385_v39  ;;  %v1906_v35 = vadd.f32 %v6729_v42, %v1415_v28  ;;  %5455 = vmatmul.mubr.msk.bf16.vlgmr.msra.gmra.mxu1 %vm927_vm2, %v2601_v58  ;;  %v9251_v36 = vrot.slane %v6825_v15, 1  ;;  %v5742_v42 = vld [vmem:[%s9127_s3 + $0x58] sm:$0xff]   ;;  %v5743_v28 = vld [vmem:[%s9127_s3 + $0x50] sm:$0xff]  }
 0x234   :  { %v2476_v46 = vsel %vm709_vm0, %v2386_v59, %v9250_v7  ;;  %v2576_v34 = vpack.c.bf16 %v2478_v16, %v2479_v3  ;;  %v1904_v11 = vadd.f32 %v6736_v38, %v1407_v30  ;;  %v6896_v45 = vsel %vm806_vm1, %v2051_v0, %v2052_v9  ;;  %5559 = vmatpush3.bf16.msra.mxu1 %v5742_v42 }
 0x235   :  { %v5361_v6 = vpop.f32.mrf.mxu1  ;;  %v2577_v25 = vpack.c.bf16 %v2476_v46, %v2477_v22  ;;  %v2128_v59 = vsel %vm806_vm1, %v2048_v8, %v9251_v36  ;;  %v6898_v16 = vmax.f32 %v1959_v43, 0.0  ;;  %v2141_v38 = vmax.f32 %v6758_v18, %v2131_v29  ;;  %5560 = vmatprep.subr.bf16.mxu1 %v5743_v28 }
 0x236   :  { %v2194_v52 = vrot.slane %v6844_v61, 2  ;;  %5510 = vmatprep.mubr.msk.bf16.mxu0 %vm927_vm2, %v2576_v34  ;;  %v1909_v54 = vadd.f32 %v6748_v37, %v1428_v41  ;;  %v9252_v8 = vrot.slane %v6758_v18, 2  ;;  %v1420_v43 = vadd.f32 %v1419_v51, %v6644_v19 }
 0x237   :  { %v6886_v7 = vpop.f32.mrf.mxu1  ;;  %v9253_v22 = vrot.slane %v6822_v27, 2  ;;  %v1958_v58 = vadd.f32 %v6724_v5, %v1904_v11  ;;  %5511 = vmatmul.mubr.msk.bf16.vlgmr.msra.gmra.mxu0 %vm927_vm2, %v2577_v25  ;;  %v1431_v18 = vadd.f32 %v5361_v6, %v6646_v26  ;;  %v9254_v19 = vrot.slane %v6844_v61, 1  ;;  %v6938_v26 = vpop.f32.mrf.mxu0  ;;  %v5744_v25 = vld [vmem:[%s9127_s3 + $0x48] sm:$0xff]  }
 0x238   :  { %v2276_v9 = vsel %vm2233_vm3, %v9252_v8, %v2190_v21  ;;  %v1957_v39 = vadd.f32 %v6724_v5, %v1903_v53  ;;  %v2055_v6 = vrot.slane %v6898_v16, 1  ;;  %5561 = vmatpush3.bf16.msra.mxu1 %v5743_v28  ;;  %v1963_v46 = vadd.f32 %v6724_v5, %v1909_v54 }
 0x239   :  { %v6912_v63 = vpop.f32.mrf.mxu1  ;;  %v6918_v29 = vsel %vm2233_vm3, %v9253_v22, %v2196_v12  ;;  %v2286_v37 = vmax.f32 %v2141_v38, %v2276_v9  ;;  %v6929_v51 = vsel %vm806_vm1, %v9254_v19, %v2051_v0  ;;  %v1960_v12 = vadd.f32 %v6724_v5, %v1906_v35  ;;  %5562 = vmatprep.subr.bf16.mxu1 %v5744_v25  ;;  %v6977_v22 = vpop.f32.mrf.mxu0 }
 0x23a   :  { %v1907_v0 = vadd.f32 %v6764_v62, %v1420_v43  ;;  %v1910_v53 = vadd.f32 %v6791_v60, %v1431_v18  ;;  %v2143_v41 = vmax.f32 %v6780_v55, %v6841_v50  ;;  %v2144_v34 = vmax.f32 %v6787_v31, %v2128_v59 }
 0x23b   :  { %v6933_v3 = vpop.f32.mrf.mxu1  ;;  %v6943_v30 = vsel %vm2334_vm4, %v2286_v37, 0.0  ;;  %v6959_v60 = vmax.f32 %v1958_v58, 0.0  ;;  %v6963_v38 = vmax.f32 %v1957_v39, 0.0  ;;  %v6965_v50 = vmax.f32 %v1960_v12, 0.0 }
 0x23c   :  { %9255 = vst [vmem:[#allocation27_spill] sm:$0xff] %v6943_v30  ;;  %v2388_v36 = vrot.slane %v6943_v30, 7  ;;  %v9157_v42 = vrot.slane %v6943_v30, 1  ;;  %v2602_v59 = vpack.c.bf16 %v9189_v44, %v6943_v30  ;;  %v9256_v54 = vrot.slane %v6825_v15, 2  ;;  %5563 = vmatpush3.bf16.msra.mxu1 %v5744_v25 }
 0x23d   :  { %v6952_v11 = vpop.f32.mrf.mxu1  ;;  %v9257_v8 = vrot.slane %v6787_v31, 2  ;;  %v9258_v58 = vrot.slane %v6816_v49, 1  ;;  %v1961_v18 = vadd.f32 %v6724_v5, %v1907_v0  ;;  %v1964_v19 = vadd.f32 %v6724_v5, %v1910_v53 }
 0x23e   :  { %v9260_v12 = vrot.slane %v6780_v55, 2  ;;  %5458 = vmatprep.mubr.msk.bf16.mxu1 %vm927_vm2, %v2602_v59  ;;  %v2474_v0 = vsel %vm709_vm0, %v2388_v36, %v5977_v57  ;;  %v5745_v55 = vld [vmem:[%s9127_s3 + $0x40] sm:$0xff]   ;;  %v9158_v31 = vrot.slane %v6959_v60, 1  ;;  %v1423_v25 = vadd.f32 %v6886_v7, %v6648_v20 }
 0x23f   :  { %v2273_v9 = vsel %vm2233_vm3, %v9257_v8, %v9256_v54  ;;  %v6975_v43 = vpop.f32.mrf.mxu1  ;;  %v6985_v37 = vsel %vm806_vm1, %v9258_v58, %v9157_v42  ;;  %v9259_v39 = vmov %v9257_v8  ;;  %v6995_v54 = vmax.f32 %v1963_v46, 0.0  ;;  %5564 = vmatprep.subr.bf16.mxu1 %v5745_v55 }
 0x240   :  { %v2274_v28 = vsel %vm2233_vm3, %v9260_v12, %v9259_v39  ;;  %v7000_v58 = vmax.f32 %v2144_v34, %v2273_v9  ;;  %v7011_v46 = vmax.f32 %v1964_v19, 0.0  ;;  %v2056_v39 = vrot.slane %v6965_v50, 1  ;;  %v7026_v19 = vpop.f32.mrf.mxu0  ;;  %5565 = vmatpush3.bf16.msra.mxu1 %v5745_v55 }
 0x241   :  { %v6998_v8 = vmax.f32 %v2143_v41, %v2274_v28  ;;  %v7005_v53 = vpop.f32.mrf.mxu1  ;;  %v9261_v41 = vrot.slane %v6816_v49, 7  ;;  %v2059_v7 = vrot.slane %v6995_v54, 1  ;;  %v1444_v55 = vadd.f32 %v6912_v63, %v6650_v48 }
 0x242   :  { %v2391_v59 = vrot.slane %v7000_v58, 7 }
 0x243   :  { %v2475_v34 = vsel %vm709_vm0, %v9261_v41, %v2388_v36  ;;  %v2603_v12 = vpack.c.bf16 %v7000_v58, %v6998_v8  ;;  %v7024_v28 = vpop.f32.mrf.mxu1  ;;  %v7030_v41 = vmax.f32 %v1961_v18, 0.0  ;;  %v2390_v35 = vrot.slane %v6998_v8, 7 }
 0x244   :  { %v2578_v20 = vpack.c.bf16 %v2474_v0, %v2475_v34  ;;  %v7043_v18 = vsel %vm806_vm1, %v9158_v31, %v2055_v6  ;;  %v1908_v0 = vadd.f32 %v6813_v40, %v1423_v25  ;;  %v9262_v34 = vrot.slane %v6844_v61, 1  ;;  %v7065_v40 = vpop.f32.mrf.mxu0 }
 0x245   :  { %5459 = vmatmul.mubr.msk.bf16.gmra.mxu1 %vm927_vm2, %v2603_v12  ;;  %v7037_v21 = vpop.f32.mrf.mxu1  ;;  %v9263_v12 = vrot.slane %v6825_v15, 1  ;;  %v7057_v36 = vsel %vm806_vm1, %v2055_v6, %v2056_v39  ;;  %v2203_v31 = vrot.slane %v6995_v54, 2  ;;  %v2473_v48 = vsel %vm709_vm0, %v5977_v57, %v2390_v35 }
 0x246   :  { %5514 = vmatprep.mubr.msk.bf16.mxu0 %vm927_vm2, %v2578_v20  ;;  %v2472_v20 = vsel %vm709_vm0, %v2390_v35, %v2391_v59  ;;  %v9265_v35 = vrot.slane %v7011_v46, 1  ;;  %v7095_v30 = vadd.f32 %v6724_v5, %v1908_v0  ;;  %v1913_v9 = vadd.f32 %v6836_v23, %v1444_v55  ;;  %v7108_v0 = vpop.f32.mrf.mxu0 }
 0x247   :  { %v2127_v42 = vsel %vm806_vm1, %v9263_v12, %v9262_v34  ;;  %v2579_v25 = vpack.c.bf16 %v2472_v20, %v2473_v48  ;;  %v9264_v12 = vrot.slane %v6822_v27, 2  ;;  %v7075_v62 = vpop.f32.mrf.mxu1  ;;  %v9267_v48 = vmax.f32 %v6844_v61, %v6929_v51 }
 0x248   :  { %v2145_v34 = vmax.f32 %v6825_v15, %v2127_v42  ;;  %v2117_v63 = vsel %vm806_vm1, %v2059_v7, %v9265_v35  ;;  %v9266_v42 = vrot.slane %v6825_v15, 2  ;;  %v1436_v15 = vadd.f32 %v6933_v3, %v6652_v13 }
 0x249   :  { %v2271_v6 = vsel %vm2233_vm3, %v2194_v52, %v9264_v12  ;;  %5515 = vmatmul.mubr.msk.bf16.gmra.mxu0 %vm927_vm2, %v2579_v25  ;;  %v2201_v35 = vrot.slane %v7030_v41, 2  ;;  %v1447_v51 = vadd.f32 %v6952_v11, %v6654_v1  ;;  %v9268_v25 = vrot.slane %v7030_v41, 1 }
 0x24a   :  { %v2272_v20 = vsel %vm2233_vm3, %v9266_v42, %v2194_v52  ;;  %v7092_v12 = vmax.f32 %v9267_v48, %v2271_v6  ;;  %v2204_v52 = vrot.slane %v7011_v46, 2  ;;  %v2155_v55 = vmax.f32 %v6995_v54, %v2117_v63 }
 0x24b   :  { %v7099_v7 = vmax.f32 %v2145_v34, %v2272_v20  ;;  %v7114_v23 = vsel %vm806_vm1, %v2056_v39, %v9268_v25  ;;  %v1911_v3 = vadd.f32 %v6862_v17, %v1436_v15  ;;  %v7120_v34 = vpop.f32.mrf.mxu1  ;;  %v1914_v1 = vadd.f32 %v6888_v14, %v1447_v51 }
 0x24c   :  { %v2393_v61 = vrot.slane %v7092_v12, 7  ;;  %v9269_v11 = vmax.f32 %v6822_v27, %v6896_v45  ;;  %v1439_v39 = vadd.f32 %v6975_v43, %v6656_v10  ;;  %v2010_v54 = vmax.f32 %v7095_v30, 0.0 }
 0x24d   :  { %v2604_v13 = vpack.c.bf16 %v7092_v12, %v7099_v7  ;;  %v2392_v6 = vrot.slane %v7099_v7, 7  ;;  %v1967_v63 = vadd.f32 %v6724_v5, %v1913_v9  ;;  %v1965_v17 = vadd.f32 %v6724_v5, %v1911_v3  ;;  %v7156_v48 = vpop.f32.mrf.mxu1 }
 0x24e   :  { %v2292_v42 = vmax.f32 %v9269_v11, %v6918_v29  ;;  %v1460_v20 = vadd.f32 %v7005_v53, %v6658_v33  ;;  %v1968_v45 = vadd.f32 %v6724_v5, %v1914_v1  ;;  %v7145_v29 = vpop.f32.mrf.mxu0  ;;  %v9270_v33 = vrot.slane %v6959_v60, 1 }
 0x24f   :  { %5462 = vmatprep.mubr.msk.bf16.mxu1 %vm927_vm2, %v2604_v13  ;;  %v2470_v14 = vsel %vm709_vm0, %v2392_v6, %v2393_v61  ;;  %v2471_v27 = vsel %vm709_vm0, %v2391_v59, %v2392_v6  ;;  %v7147_v30 = vmax.f32 %v1965_v17, 0.0  ;;  %v9271_v53 = vrot.slane %v6963_v38, 1 }
 0x250   :  { %v7143_v10 = vsel %vm2334_vm4, %v2292_v42, 0.0  ;;  %v2580_v43 = vpack.c.bf16 %v2470_v14, %v2471_v27  ;;  %v2016_v15 = vmax.f32 %v1968_v45, 0.0  ;;  %v1912_v25 = vadd.f32 %v6938_v26, %v1439_v39  ;;  %v7183_v27 = vpop.f32.mrf.mxu1 }
 0x251   :  { %v2394_v9 = vrot.slane %v7143_v10, 7  ;;  %v2123_v59 = vsel %vm806_vm1, %v9271_v53, %v9270_v33  ;;  %v2605_v51 = vpack.c.bf16 %v9189_v44, %v7143_v10  ;;  %v1917_v13 = vadd.f32 %v6977_v22, %v1460_v20 }
 0x252   :  { %v7162_v3 = vmax.f32 %v1967_v63, 0.0  ;;  %v2061_v6 = vrot.slane %v7147_v30, 1  ;;  %5518 = vmatprep.mubr.msk.bf16.mxu0 %vm927_vm2, %v2580_v43  ;;  %v2262_v26 = vsel %vm2233_vm3, %v2203_v31, %v2204_v52  ;;  %v2058_v42 = vrot.slane %v2010_v54, 1  ;;  %v7177_v63 = vpop.f32.mrf.mxu0 }
 0x253   :  { %v2468_v1 = vsel %vm709_vm0, %v2394_v9, %v5977_v57  ;;  %v2469_v11 = vsel %vm709_vm0, %v2393_v61, %v2394_v9  ;;  %5463 = vmatmul.mubr.msk.bf16.gmra.mxu1 %vm927_vm2, %v2605_v51  ;;  %v1966_v22 = vadd.f32 %v6724_v5, %v1912_v25  ;;  %v7179_v17 = vmax.f32 %v2155_v55, %v2262_v26 }
 0x254   :  { %v2581_v39 = vpack.c.bf16 %v2468_v1, %v2469_v11  ;;  %v9160_v20 = vrot.slane %v7147_v30, 2  ;;  %v2064_v14 = vrot.slane %v2016_v15, 1  ;;  %v2149_v61 = vmax.f32 %v6963_v38, %v2123_v59 }
 0x255   :  { %v9272_v31 = vrot.slane %v7011_v46, 1  ;;  %v2208_v43 = vrot.slane %v2016_v15, 2  ;;  %v1971_v55 = vadd.f32 %v6724_v5, %v1917_v13  ;;  %v9273_v9 = vrot.slane %v6898_v16, 2 }
 0x256   :  { %5519 = vmatmul.mubr.msk.bf16.gmra.mxu0 %vm927_vm2, %v2581_v39  ;;  %v9274_v33 = vrot.slane %v6959_v60, 2  ;;  %v2063_v59 = vrot.slane %v7162_v3, 1  ;;  %v7200_v51 = vmax.f32 %v1966_v22, 0.0  ;;  %v9276_v1 = vrot.slane %v6963_v38, 2 }
 0x257   :  { %v2116_v45 = vsel %vm806_vm1, %v9272_v31, %v2061_v6  ;;  %v9277_v13 = vmax.f32 %v6959_v60, %v7043_v18  ;;  %v9278_v26 = vrot.slane %v7030_v41, 1  ;;  %v2202_v31 = vrot.slane %v2010_v54, 2 }
 0x258   :  { %v2267_v53 = vsel %vm2233_vm3, %v9274_v33, %v9273_v9  ;;  %v9275_v25 = vmov %v9274_v33  ;;  %v2207_v22 = vrot.slane %v7162_v3, 2  ;;  %v7220_v33 = vpop.f32.mrf.mxu0  ;;  %v2156_v38 = vmax.f32 %v7011_v46, %v2116_v45 }
 0x259   :  { %v2268_v15 = vsel %vm2233_vm3, %v9276_v1, %v9275_v25  ;;  %v7211_v11 = vmax.f32 %v9277_v13, %v2267_v53  ;;  %v2119_v39 = vsel %vm806_vm1, %v9278_v26, %v2058_v42  ;;  %v2261_v60 = vsel %vm2233_vm3, %v2204_v52, %v9160_v20  ;;  %v7233_v42 = vpop.f32.mrf.mxu1 }
 0x25a   :  { %v7218_v9 = vmax.f32 %v2149_v61, %v2268_v15  ;;  %v2113_v18 = vsel %vm806_vm1, %v2063_v59, %v2064_v14  ;;  %v1452_v54 = vadd.f32 %v7024_v28, %v6660_v56  ;;  %v2258_v61 = vsel %vm2233_vm3, %v2207_v22, %v2208_v43 }
 0x25b   :  { %v7239_v45 = vmax.f32 %v1971_v55, 0.0  ;;  %v2062_v53 = vrot.slane %v7200_v51, 1  ;;  %v2397_v56 = vrot.slane %v7211_v11, 7  ;;  %v1463_v28 = vadd.f32 %v7037_v21, %v6662_v24  ;;  %v7263_v24 = vpop.f32.mrf.mxu0 }
 0x25c   :  { %v2606_v46 = vpack.c.bf16 %v7211_v11, %v7218_v9  ;;  %v2396_v52 = vrot.slane %v7218_v9, 7  ;;  %v1915_v14 = vadd.f32 %v7026_v19, %v1452_v54  ;;  %v2151_v55 = vmax.f32 %v6898_v16, %v7057_v36  ;;  %v7275_v54 = vpop.f32.mrf.mxu1 }
 0x25d   :  { %v2152_v25 = vmax.f32 %v6965_v50, %v7114_v23  ;;  %v9279_v19 = vrot.slane %v6965_v50, 2  ;;  %v1918_v13 = vadd.f32 %v7065_v40, %v1463_v28  ;;  %v9281_v23 = vrot.slane %v6898_v16, 2 }
 0x25e   :  { %5466 = vmatprep.mubr.msk.bf16.mxu1 %vm927_vm2, %v2606_v46  ;;  %v2467_v43 = vsel %vm709_vm0, %v5977_v57, %v2396_v52  ;;  %v1969_v21 = vadd.f32 %v6724_v5, %v1915_v14  ;;  %v2466_v15 = vsel %vm709_vm0, %v2396_v52, %v2397_v56  ;;  %v1455_v14 = vadd.f32 %v7075_v62, %v6664_v32  ;;  %v7295_v62 = vpop.f32.mrf.mxu0 }
 0x25f   :  { %v2265_v1 = vsel %vm2233_vm3, %v9279_v19, %v2201_v35  ;;  %v9280_v36 = vmov %v9279_v19  ;;  %v2582_v46 = vpack.c.bf16 %v2466_v15, %v2467_v43  ;;  %v2159_v52 = vmax.f32 %v7162_v3, %v2113_v18 }
 0x260   :  { %v2266_v26 = vsel %vm2233_vm3, %v9281_v23, %v9280_v36  ;;  %v7279_v20 = vmax.f32 %v2152_v25, %v2265_v1  ;;  %v1972_v40 = vadd.f32 %v6724_v5, %v1918_v13  ;;  %v1476_v16 = vadd.f32 %v7120_v34, %v6666_v2 }
 0x261   :  { %v7277_v19 = vmax.f32 %v2151_v55, %v2266_v26  ;;  %v2153_v50 = vmax.f32 %v7030_v41, %v2119_v39  ;;  %v7288_v28 = vmax.f32 %v2156_v38, %v2261_v60  ;;  %v2067_v43 = vrot.slane %v7239_v45, 1  ;;  %5522 = vmatprep.mubr.msk.bf16.mxu0 %vm927_vm2, %v2582_v46  ;;  %v7307_v60 = vpop.f32.mrf.mxu1  ;;  %v7328_v46 = vpop.f32.mrf.mxu0 }
 0x262   :  { %v1916_v32 = vadd.f32 %v7108_v0, %v1455_v14  ;;  %v7301_v2 = vsel %vm806_vm1, %v2062_v53, %v2063_v59  ;;  %v7303_v34 = vmax.f32 %v1972_v40, 0.0  ;;  %v2399_v38 = vrot.slane %v7279_v20, 7  ;;  %v9284_v14 = vld [vmem:[#allocation5_spill] sm:$0xff] }
 0x263   :  { %9282 = vst [vmem:[#allocation28_spill] sm:$0xff] %v7288_v28  ;;  %v2607_v55 = vpack.c.bf16 %v7279_v20, %v7277_v19  ;;  %v2398_v39 = vrot.slane %v7277_v19, 7  ;;  %v7309_v18 = vmax.f32 %v1969_v21, 0.0  ;;  %v1921_v25 = vadd.f32 %v7145_v29, %v1476_v16  ;;  %v9283_v29 = vld [vmem:[#allocation4_spill] sm:$0xff]  ;;  %v7341_v16 = vpop.f32.mrf.mxu1 }
 0x264   :  { %v1970_v0 = vadd.f32 %v6724_v5, %v1916_v32  ;;  %v2264_v59 = vsel %vm2233_vm3, %v2201_v35, %v2202_v31  ;;  %v2068_v1 = vrot.slane %v7303_v34, 1  ;;  %v2212_v36 = vrot.slane %v7303_v34, 2 }
 0x265   :  { %5467 = vmatmul.mubr.msk.bf16.gmra.mxu1 %vm927_vm2, %v2607_v55  ;;  %v2464_v15 = vsel %vm709_vm0, %v2398_v39, %v2399_v38  ;;  %v2465_v21 = vsel %vm709_vm0, %v2397_v56, %v2398_v39  ;;  %v2298_v13 = vmax.f32 %v2153_v50, %v2264_v59  ;;  %v1468_v41 = vadd.f32 %v7156_v48, %v9283_v29  ;;  %v7374_v29 = vpop.f32.mrf.mxu1 }
 0x266   :  { %v7324_v23 = vmax.f32 %v1970_v0, 0.0  ;;  %v2583_v26 = vpack.c.bf16 %v2464_v15, %v2465_v21  ;;  %v7332_v35 = vsel %vm806_vm1, %v2067_v43, %v2068_v1  ;;  %v1975_v31 = vadd.f32 %v6724_v5, %v1921_v25  ;;  %v7365_v15 = vpop.f32.mrf.mxu0 }
 0x267   :  { %v7337_v56 = vsel %vm2334_vm4, %v2298_v13, 0.0  ;;  %v1479_v40 = vadd.f32 %v7183_v27, %v9284_v14  ;;  %v7343_v50 = vmax.f32 %v2159_v52, %v2258_v61  ;;  %v2158_v48 = vmax.f32 %v7200_v51, %v7301_v2 }
 0x268   :  { %v2206_v55 = vrot.slane %v7200_v51, 2  ;;  %v9161_v32 = vrot.slane %v7239_v45, 2  ;;  %5523 = vmatmul.mubr.msk.bf16.gmra.mxu0 %vm927_vm2, %v2583_v26  ;;  %v2065_v39 = vrot.slane %v7309_v18, 1  ;;  %v2400_v0 = vrot.slane %v7337_v56, 7  ;;  %v5380_v51 = vpop.f32.mrf.mxu1 }
 0x269   :  { %v2608_v27 = vpack.c.bf16 %v9189_v44, %v7337_v56  ;;  %v1919_v25 = vadd.f32 %v7177_v63, %v1468_v41  ;;  %v2163_v52 = vmax.f32 %v7239_v45, %v7332_v35  ;;  %v2066_v59 = vrot.slane %v7324_v23, 1 }
 0x26a   :  { %v2254_v2 = vsel %vm2233_vm3, %v9161_v32, %v2212_v36  ;;  %v7367_v21 = vmax.f32 %v1975_v31, 0.0  ;;  %v1922_v13 = vadd.f32 %v7220_v33, %v1479_v40  ;;  %v2609_v26 = vpack.c.bf16 %v7288_v28, %v7179_v17  ;;  %v9285_v31 = vld [vmem:[#allocation6_spill] sm:$0xff] }
 0x26b   :  { %5470 = vmatprep.mubr.msk.bf16.mxu1 %vm927_vm2, %v2608_v27  ;;  %v1973_v63 = vadd.f32 %v6724_v5, %v1919_v25  ;;  %v2462_v41 = vsel %vm709_vm0, %v2400_v0, %v5977_v57  ;;  %v2463_v35 = vsel %vm709_vm0, %v2399_v38, %v2400_v0  ;;  %v1471_v14 = vadd.f32 %v7233_v42, %v9285_v31  ;;  %v9286_v42 = vld [vmem:[#allocation9_spill] sm:$0xff] }
 0x26c   :  { %v2402_v27 = vrot.slane %v7179_v17, 7  ;;  %v1976_v33 = vadd.f32 %v6724_v5, %v1922_v13  ;;  %v2584_v40 = vpack.c.bf16 %v2462_v41, %v2463_v35  ;;  %v2403_v61 = vrot.slane %v7288_v28, 7  ;;  %v1831_v13 = vpop.f32.mrf.mxu0 }
 0x26d   :  { %v7384_v25 = vmax.f32 %v1973_v63, 0.0  ;;  %5471 = vmatmul.mubr.msk.bf16.gmra.mxu1 %vm927_vm2, %v2609_v26  ;;  %v7393_v32 = vsel %vm806_vm1, %v2066_v59, %v2067_v43  ;;  %v1920_v38 = vadd.f32 %v7263_v24, %v1471_v14  ;;  %v1492_v0 = vadd.f32 %v7275_v54, %v9286_v42 }
 0x26e   :  { %v2115_v63 = vsel %vm806_vm1, %v2061_v6, %v2062_v53  ;;  %v7405_v41 = vmax.f32 %v1976_v33, 0.0  ;;  %5526 = vmatprep.mubr.msk.bf16.mxu0 %vm927_vm2, %v2584_v40  ;;  %v2460_v24 = vsel %vm709_vm0, %v2402_v27, %v2403_v61  ;;  %v2461_v54 = vsel %vm709_vm0, %v5977_v57, %v2402_v27 }
 0x26f   :  { %v9162_v26 = vrot.slane %v7384_v25, 1  ;;  %v9163_v43 = vrot.slane %v7384_v25, 2  ;;  %v7415_v35 = vadd.f32 %v6724_v5, %v1920_v38  ;;  %v2585_v6 = vpack.c.bf16 %v2460_v24, %v2461_v54 }
 0x270   :  { %v1925_v53 = vadd.f32 %v7295_v62, %v1492_v0  ;;  %v2072_v14 = vrot.slane %v7405_v41, 1  ;;  %v2216_v33 = vrot.slane %v7405_v41, 2  ;;  %v2157_v27 = vmax.f32 %v7147_v30, %v2115_v63 }
 0x271   :  { %v2108_v31 = vsel %vm806_vm1, %v2068_v1, %v9162_v26  ;;  %v2071_v42 = vrot.slane %v7367_v21, 1  ;;  %5527 = vmatmul.mubr.msk.bf16.gmra.mxu0 %vm927_vm2, %v2585_v6  ;;  %v2259_v62 = vsel %vm2233_vm3, %v2206_v55, %v2207_v22  ;;  %v5436_v1 = vpop.f32.mrf.mxu0  ;;  %v2215_v0 = vrot.slane %v7367_v21, 2  ;;  %v7438_v26 = vpop.f32.mrf.mxu1 }
 0x272   :  { %v2164_v38 = vmax.f32 %v7303_v34, %v2108_v31  ;;  %v2022_v24 = vmax.f32 %v7415_v35, 0.0  ;;  %v1979_v63 = vadd.f32 %v6724_v5, %v1925_v53  ;;  %v7436_v54 = vmax.f32 %v2158_v48, %v2259_v62  ;;  %v9291_v31 = vld [vmem:[#allocation8_spill] sm:$0xff] }
 0x273   :  { %v7440_v40 = vmax.f32 %v2163_v52, %v2254_v2  ;;  %v2162_v6 = vmax.f32 %v7324_v23, %v7393_v32  ;;  %v2105_v3 = vsel %vm806_vm1, %v2071_v42, %v2072_v14  ;;  %v9288_v22 = vrot.slane %v7147_v30, 2  ;;  %v9290_v2 = vld [vmem:[#allocation7_spill] sm:$0xff]  ;;  %v7476_v42 = vpop.f32.mrf.mxu0 }
 0x274   :  { %9287 = vst [vmem:[#allocation4_spill] sm:$0xff] %v7436_v54  ;;  %v2253_v48 = vsel %vm2233_vm3, %v2212_v36, %v9163_v43  ;;  %v2250_v32 = vsel %vm2233_vm3, %v2215_v0, %v2216_v33  ;;  %v1484_v30 = vadd.f32 %v7307_v60, %v9290_v2  ;;  %v1495_v34 = vadd.f32 %v7341_v16, %v9291_v31 }
 0x275   :  { %v2260_v35 = vsel %vm2233_vm3, %v9288_v22, %v2206_v55  ;;  %v7466_v53 = vmax.f32 %v2164_v38, %v2253_v48  ;;  %v2405_v55 = vrot.slane %v7436_v54, 7  ;;  %v7474_v36 = vsel %vm2334_vm4, %v7343_v50, 0.0  ;;  %v7483_v38 = vpop.f32.mrf.mxu1  ;;  %v9294_v48 = vld [vmem:[#allocation11_spill] sm:$0xff] }
 0x276   :  { %v7462_v52 = vmax.f32 %v2157_v27, %v2260_v35  ;;  %9292 = vst [vmem:[#allocation6_spill] sm:$0xff] %v7474_v36  ;;  %v2167_v27 = vmax.f32 %v7367_v21, %v2105_v3  ;;  %v2070_v62 = vrot.slane %v2022_v24, 1  ;;  %v7479_v0 = vmax.f32 %v1979_v63, 0.0  ;;  %v9293_v63 = vld [vmem:[#allocation10_spill] sm:$0xff] }
 0x277   :  { %v1923_v22 = vadd.f32 %v7328_v46, %v1484_v30  ;;  %v1926_v35 = vadd.f32 %v7365_v15, %v1495_v34  ;;  %v2406_v50 = vrot.slane %v7474_v36, 7  ;;  %v2611_v21 = vpack.c.bf16 %v9189_v44, %v7474_v36 }
 0x278   :  { %9289 = vst [vmem:[#allocation5_spill] sm:$0xff] %v7462_v52  ;;  %v2610_v60 = vpack.c.bf16 %v7436_v54, %v7462_v52  ;;  %v2404_v16 = vrot.slane %v7462_v52, 7  ;;  %v1487_v3 = vadd.f32 %v7374_v29, %v9293_v63  ;;  %v1508_v2 = vadd.f32 %v5380_v51, %v9294_v48  ;;  %v5437_v29 = vpop.f32.mrf.mxu0 }
 0x279   :  { %v2111_v46 = vsel %vm806_vm1, %v2065_v39, %v2066_v59  ;;  %v1977_v15 = vadd.f32 %v6724_v5, %v1923_v22  ;;  %v1980_v34 = vadd.f32 %v6724_v5, %v1926_v35  ;;  %v2456_v63 = vsel %vm709_vm0, %v2406_v50, %v5977_v57  ;;  %v1502_v59 = vpop.f32.mrf.mxu1 }
 0x27a   :  { %5474 = vmatprep.mubr.msk.bf16.mxu1 %vm927_vm2, %v2610_v60  ;;  %v2458_v30 = vsel %vm709_vm0, %v2404_v16, %v2405_v55  ;;  %v2459_v31 = vsel %vm709_vm0, %v2403_v61, %v2404_v16  ;;  %v1924_v51 = vadd.f32 %v1831_v13, %v1487_v3  ;;  %v2457_v39 = vsel %vm709_vm0, %v2405_v55, %v2406_v50 }
 0x27b   :  { %v2586_v60 = vpack.c.bf16 %v2458_v30, %v2459_v31  ;;  %5475 = vmatmul.mubr.msk.bf16.gmra.mxu1 %vm927_vm2, %v2611_v21  ;;  %v7513_v22 = vmax.f32 %v1977_v15, 0.0  ;;  %v2028_v48 = vmax.f32 %v1980_v34, 0.0  ;;  %v2587_v43 = vpack.c.bf16 %v2456_v63, %v2457_v39  ;;  %v5384_v63 = vpop.f32.mrf.mxu1 }
 0x27c   :  { %v1929_v61 = vadd.f32 %v5436_v1, %v1508_v2  ;;  %v2075_v16 = vrot.slane %v7479_v0, 1  ;;  %v1978_v35 = vadd.f32 %v6724_v5, %v1924_v51  ;;  %v2161_v13 = vmax.f32 %v7309_v18, %v2111_v46 }
 0x27d   :  { %5530 = vmatprep.mubr.msk.bf16.mxu0 %vm927_vm2, %v2586_v60  ;;  %v9295_v21 = vrot.slane %v7239_v45, 2  ;;  %v9296_v3 = vrot.slane %v7324_v23, 2  ;;  %v9166_v50 = vrot.slane %v7513_v22, 1  ;;  %v9164_v15 = vrot.slane %v7513_v22, 2  ;;  %v1847_v45 = vpop.f32.mrf.mxu0 }
 0x27e   :  { %v2076_v1 = vrot.slane %v2028_v48, 1  ;;  %5531 = vmatmul.mubr.msk.bf16.gmra.mxu0 %vm927_vm2, %v2587_v43  ;;  %v9298_v30 = vrot.slane %v7309_v18, 2  ;;  %v2220_v31 = vrot.slane %v2028_v48, 2  ;;  %v7534_v34 = vmax.f32 %v1978_v35, 0.0 }
 0x27f   :  { %v2255_v55 = vsel %vm2233_vm3, %v9296_v3, %v9295_v21  ;;  %v9297_v2 = vmov %v9296_v3  ;;  %v2214_v39 = vrot.slane %v2022_v24, 2  ;;  %v2104_v18 = vsel %vm806_vm1, %v2072_v14, %v9166_v50 }
 0x280   :  { %v2256_v46 = vsel %vm2233_vm3, %v9298_v30, %v9297_v2  ;;  %v7538_v51 = vmax.f32 %v2162_v6, %v2255_v55  ;;  %v2101_v23 = vsel %vm806_vm1, %v2075_v16, %v2076_v1  ;;  %v1983_v43 = vadd.f32 %v6724_v5, %v1929_v61  ;;  %v5440_v61 = vpop.f32.mrf.mxu0  ;;  %v1515_v1 = vpop.f32.mrf.mxu1 }
 0x281   :  { %v7536_v60 = vmax.f32 %v2161_v13, %v2256_v46  ;;  %v7549_v48 = vmax.f32 %v2167_v27, %v2250_v32  ;;  %v9165_v35 = vrot.slane %v7479_v0, 2  ;;  %v2168_v6 = vmax.f32 %v7405_v41, %v2104_v18  ;;  %v9300_v32 = vld [vmem:[#allocation12_spill] sm:$0xff]  ;;  %v9301_v18 = vld [vmem:[#allocation13_spill] sm:$0xff] }
 0x282   :  { %v9167_v24 = vrot.slane %v7534_v34, 1  ;;  %v9299_v13 = vrot.slane %v7384_v25, 1  ;;  %v2249_v5 = vsel %vm2233_vm3, %v2216_v33, %v9164_v15  ;;  %v1500_v27 = vadd.f32 %v7438_v26, %v9300_v32  ;;  %v1860_v32 = vpop.f32.mrf.mxu0 }
 0x283   :  { %v2612_v14 = vpack.c.bf16 %v7538_v51, %v7536_v60  ;;  %v2171_v3 = vmax.f32 %v7479_v0, %v2101_v23  ;;  %v2408_v41 = vrot.slane %v7536_v60, 7  ;;  %v7575_v33 = vmax.f32 %v2168_v6, %v2249_v5 }
 0x284   :  { %v2107_v21 = vsel %vm806_vm1, %v9299_v13, %v2070_v62  ;;  %v2246_v62 = vsel %vm2233_vm3, %v9165_v35, %v2220_v31  ;;  %v7581_v26 = vsel %vm806_vm1, %v9167_v24, %v2075_v16  ;;  %v7583_v2 = vmax.f32 %v1983_v43, 0.0  ;;  %v7598_v16 = vld [vmem:[%s9129_s4] ss:$0 sm:$0xff]  ;;  %v5385_v35 = vpop.f32.mrf.mxu1 }
 0x285   :  { %5478 = vmatprep.mubr.msk.bf16.mxu1 %vm927_vm2, %v2612_v14  ;;  %v1927_v30 = vadd.f32 %v7476_v42, %v1500_v27  ;;  %v2409_v46 = vrot.slane %v7538_v51, 7  ;;  %v2455_v31 = vsel %vm709_vm0, %v5977_v57, %v2408_v41  ;;  %v1511_v23 = vadd.f32 %v7483_v38, %v9301_v18  ;;  %9302 = vst [vmem:[#allocation9_spill] sm:$0xff] %v7598_v16  ;;  %v9303_v42 = vld [vmem:[#allocation14_spill] sm:$0xff]  ;;  %v9304_v18 = vld [vmem:[#allocation15_spill] sm:$0xff] }
 0x286   :  { %v2613_v6 = vpack.c.bf16 %v7466_v53, %v7440_v40  ;;  %v1503_v13 = vadd.f32 %v1502_v59, %v9303_v42  ;;  %v2410_v5 = vrot.slane %v7440_v40, 7  ;;  %v2411_v14 = vrot.slane %v7466_v53, 7 }
 0x287   :  { %v1981_v43 = vadd.f32 %v7598_v16, %v1927_v30  ;;  %v2454_v38 = vsel %vm709_vm0, %v2408_v41, %v2409_v46  ;;  %v1930_v27 = vadd.f32 %v5437_v29, %v1511_v23  ;;  %v1524_v15 = vadd.f32 %v5384_v63, %v9304_v18 }
 0x288   :  { %5479 = vmatmul.mubr.msk.bf16.gmra.mxu1 %vm927_vm2, %v2613_v6  ;;  %v2165_v55 = vmax.f32 %v7384_v25, %v2107_v21  ;;  %v7609_v50 = vmax.f32 %v2171_v3, %v2246_v62  ;;  %v2588_v30 = vpack.c.bf16 %v2454_v38, %v2455_v31  ;;  %v1928_v59 = vadd.f32 %v1847_v45, %v1503_v13  ;;  %v5441_v31 = vpop.f32.mrf.mxu0  ;;  %v9306_v38 = vld [vmem:[#allocation16_spill] sm:$0xff] }
 0x289   :  { %v2452_v42 = vsel %vm709_vm0, %v2410_v5, %v2411_v14  ;;  %v1984_v41 = vadd.f32 %v7598_v16, %v1930_v27  ;;  %v2453_v29 = vsel %vm709_vm0, %v2409_v46, %v2410_v5  ;;  %v1933_v23 = vadd.f32 %v5440_v61, %v1524_v15  ;;  %v1518_v61 = vpop.f32.mrf.mxu1  ;;  %v9307_v27 = vld [vmem:[#allocation17_spill] sm:$0xff] }
 0x28a   :  { %v7618_v63 = vmax.f32 %v1981_v43, 0.0  ;;  %5534 = vmatprep.mubr.msk.bf16.mxu0 %vm927_vm2, %v2588_v30  ;;  %v1982_v21 = vadd.f32 %v7598_v16, %v1928_v59  ;;  %v2589_v3 = vpack.c.bf16 %v2452_v42, %v2453_v29  ;;  %v9305_v45 = vrot.slane %v7384_v25, 2 }
 0x28b   :  { %v2079_v6 = vrot.slane %v7583_v2, 1  ;;  %v7627_v13 = vmax.f32 %v1984_v41, 0.0  ;;  %v1987_v46 = vadd.f32 %v7598_v16, %v1933_v23  ;;  %v2223_v43 = vrot.slane %v7583_v2, 2  ;;  %v9308_v23 = vld [vmem:[#allocation18_spill] sm:$0xff] }
 0x28c   :  { %v2252_v62 = vsel %vm2233_vm3, %v9305_v45, %v2214_v39  ;;  %v7631_v5 = vmax.f32 %v1982_v21, 0.0  ;;  %5535 = vmatmul.mubr.msk.bf16.gmra.mxu0 %vm927_vm2, %v2589_v3  ;;  %v1516_v25 = vadd.f32 %v1515_v1, %v9306_v38  ;;  %v1527_v18 = vadd.f32 %v5385_v35, %v9307_v27  ;;  %v1863_v21 = vpop.f32.mrf.mxu0 }
 0x28d   :  { %v2310_v15 = vmax.f32 %v2165_v55, %v2252_v62  ;;  %v2080_v39 = vrot.slane %v7627_v13, 1  ;;  %v2224_v30 = vrot.slane %v7627_v13, 2  ;;  %v7638_v59 = vmax.f32 %v1987_v46, 0.0  ;;  %v5388_v46 = vpop.f32.mrf.mxu1 }
 0x28e   :  { %v2077_v42 = vrot.slane %v7618_v63, 1  ;;  %v2078_v41 = vrot.slane %v7631_v5, 1  ;;  %v1519_v1 = vadd.f32 %v1518_v61, %v9308_v23  ;;  %v2615_v62 = vpack.c.bf16 %v7575_v33, %v7549_v48  ;;  %v5444_v54 = vpop.f32.mrf.mxu0 }
 0x28f   :  { %v7642_v55 = vsel %vm2334_vm4, %v2310_v15, 0.0  ;;  %v2097_v3 = vsel %vm806_vm1, %v2079_v6, %v2080_v39  ;;  %v2242_v38 = vsel %vm2233_vm3, %v2223_v43, %v2224_v30  ;;  %v2083_v27 = vrot.slane %v7638_v59, 1 }
 0x290   :  { %v2412_v29 = vrot.slane %v7642_v55, 7  ;;  %v2175_v15 = vmax.f32 %v7583_v2, %v2097_v3  ;;  %v2227_v61 = vrot.slane %v7638_v59, 2  ;;  %v2098_v23 = vsel %vm806_vm1, %v2078_v41, %v2079_v6 }
 0x291   :  { %v2614_v35 = vpack.c.bf16 %v9189_v44, %v7642_v55  ;;  %v1931_v24 = vadd.f32 %v1860_v32, %v1516_v25  ;;  %v1934_v45 = vadd.f32 %v5441_v31, %v1527_v18  ;;  %v7665_v28 = vsel %vm806_vm1, %v2077_v42, %v2078_v41  ;;  %v1531_v18 = vpop.f32.mrf.mxu1 }
 0x292   :  { %v2450_v2 = vsel %vm709_vm0, %v2412_v29, %v5977_v57  ;;  %v2451_v3 = vsel %vm709_vm0, %v2411_v14, %v2412_v29  ;;  %v1932_v36 = vadd.f32 %v1863_v21, %v1519_v1  ;;  %v9309_v6 = vrot.slane %v7631_v5, 2  ;;  %v9310_v29 = vld [vmem:[#allocation19_spill] sm:$0xff] }
 0x293   :  { %5482 = vmatprep.mubr.msk.bf16.mxu1 %vm927_vm2, %v2614_v35  ;;  %v1985_v32 = vadd.f32 %v7598_v16, %v1931_v24  ;;  %v1988_v31 = vadd.f32 %v7598_v16, %v1934_v45  ;;  %v2590_v25 = vpack.c.bf16 %v2450_v2, %v2451_v3  ;;  %v2414_v14 = vrot.slane %v7549_v48, 7 }
 0x294   :  { %v2243_v52 = vsel %vm2233_vm3, %v9309_v6, %v2223_v43  ;;  %5483 = vmatmul.mubr.msk.bf16.gmra.mxu1 %vm927_vm2, %v2615_v62  ;;  %v1986_v42 = vadd.f32 %v7598_v16, %v1932_v36  ;;  %v2415_v41 = vrot.slane %v7575_v33, 7  ;;  %v1540_v1 = vadd.f32 %v5388_v46, %v9310_v29  ;;  %v1876_v46 = vpop.f32.mrf.mxu0  ;;  %v5389_v6 = vpop.f32.mrf.mxu1 }
 0x295   :  { %v7684_v21 = vmax.f32 %v2175_v15, %v2242_v38  ;;  %v2174_v43 = vmax.f32 %v7631_v5, %v2098_v23  ;;  %v7687_v35 = vmax.f32 %v1985_v32, 0.0  ;;  %v7689_v24 = vmax.f32 %v1988_v31, 0.0  ;;  %5538 = vmatprep.mubr.msk.bf16.mxu0 %vm927_vm2, %v2590_v25 }
 0x296   :  { %v2034_v45 = vmax.f32 %v1986_v42, 0.0  ;;  %v2448_v36 = vsel %vm709_vm0, %v2414_v14, %v2415_v41  ;;  %v2449_v62 = vsel %vm709_vm0, %v5977_v57, %v2414_v14  ;;  %v1937_v2 = vadd.f32 %v5444_v54, %v1540_v1 }
 0x297   :  { %v2081_v15 = vrot.slane %v7687_v35, 1  ;;  %v2225_v38 = vrot.slane %v7687_v35, 2  ;;  %v9172_v23 = vrot.slane %v7689_v24, 1  ;;  %v2591_v25 = vpack.c.bf16 %v2448_v36, %v2449_v62 }
 0x298   :  { %v2082_v32 = vrot.slane %v2034_v45, 1  ;;  %v2226_v31 = vrot.slane %v2034_v45, 2  ;;  %v9311_v42 = vrot.slane %v7534_v34, 1  ;;  %v9312_v29 = vrot.slane %v7513_v22, 1 }
 0x299   :  { %v7707_v14 = vmax.f32 %v2174_v43, %v2243_v52  ;;  %v2096_v1 = vsel %vm806_vm1, %v2080_v39, %v2081_v15  ;;  %v2093_v3 = vsel %vm806_vm1, %v2083_v27, %v9172_v23  ;;  %v1991_v45 = vadd.f32 %v7598_v16, %v1937_v2  ;;  %5539 = vmatmul.mubr.msk.bf16.gmra.mxu0 %vm927_vm2, %v2591_v25  ;;  %v5445_v43 = vpop.f32.mrf.mxu0 }
 0x29a   :  { %v2103_v54 = vsel %vm806_vm1, %v9312_v29, %v9311_v42  ;;  %v2176_v36 = vmax.f32 %v7627_v13, %v2096_v1  ;;  %v2241_v62 = vsel %vm2233_vm3, %v2224_v30, %v2225_v38  ;;  %v7721_v42 = vsel %vm806_vm1, %v2081_v15, %v2082_v32 }
 0x29b   :  { %v9313_v52 = vrot.slane %v7479_v0, 2  ;;  %v9314_v39 = vrot.slane %v7534_v34, 2  ;;  %v2179_v2 = vmax.f32 %v7638_v59, %v2093_v3  ;;  %v9315_v13 = vrot.slane %v7689_v24, 2  ;;  %v1534_v0 = vpop.f32.mrf.mxu1 }
 0x29c   :  { %v7737_v15 = vsel %vm2233_vm3, %v2225_v38, %v2226_v31  ;;  %v2169_v32 = vmax.f32 %v7513_v22, %v2103_v54  ;;  %v9317_v1 = vrot.slane %v7513_v22, 2  ;;  %v9319_v38 = vld [vmem:[#allocation20_spill] sm:$0xff]  ;;  %v2039_v54 = vmax.f32 %v1991_v45, 0.0 }
 0x29d   :  { %v2247_v27 = vsel %vm2233_vm3, %v9314_v39, %v9313_v52  ;;  %v2238_v30 = vsel %vm2233_vm3, %v2227_v61, %v9315_v13  ;;  %v9316_v29 = vmov %v9314_v39  ;;  %v9318_v61 = vmax.f32 %v7534_v34, %v7581_v26  ;;  %v9320_v13 = vld [vmem:[#allocation21_spill] sm:$0xff]  ;;  %v9321_v34 = vld [vmem:[#allocation22_spill] sm:$0xff] }
 0x29e   :  { %v2248_v59 = vsel %vm2233_vm3, %v9317_v1, %v9316_v29  ;;  %v1532_v31 = vadd.f32 %v1531_v18, %v9319_v38  ;;  %v7754_v52 = vmax.f32 %v2176_v36, %v2241_v62  ;;  %v1543_v25 = vadd.f32 %v5389_v6, %v9320_v13 }
 0x29f   :  { %v7751_v3 = vmax.f32 %v9318_v61, %v2247_v27  ;;  %v7756_v39 = vmax.f32 %v2169_v32, %v2248_v59  ;;  %v7763_v29 = vsel %vm2334_vm4, %v7609_v50, 0.0  ;;  %v1535_v26 = vadd.f32 %v1534_v0, %v9321_v34  ;;  %v1879_v27 = vpop.f32.mrf.mxu0 }
 0x2a0   :  { %v1935_v23 = vadd.f32 %v1876_v46, %v1532_v31  ;;  %v7766_v1 = vmax.f32 %v2179_v2, %v2238_v30  ;;  %v1938_v36 = vadd.f32 %v5445_v43, %v1543_v25  ;;  %v2418_v6 = vrot.slane %v7763_v29, 7 }
 0x2a1   :  { %v2417_v22 = vrot.slane %v7751_v3, 7  ;;  %v2616_v18 = vpack.c.bf16 %v7751_v3, %v7756_v39  ;;  %v2416_v45 = vrot.slane %v7756_v39, 7  ;;  %v2617_v62 = vpack.c.bf16 %v9189_v44, %v7763_v29 }
 0x2a2   :  { %v1989_v46 = vadd.f32 %v7598_v16, %v1935_v23  ;;  %v1936_v50 = vadd.f32 %v1879_v27, %v1535_v26  ;;  %v1992_v32 = vadd.f32 %v7598_v16, %v1938_v36  ;;  %v2173_v43 = vmax.f32 %v7618_v63, %v7665_v28 }
 0x2a3   :  { %5486 = vmatprep.mubr.msk.bf16.mxu1 %vm927_vm2, %v2616_v18  ;;  %v2446_v2 = vsel %vm709_vm0, %v2416_v45, %v2417_v22  ;;  %v2447_v30 = vsel %vm709_vm0, %v2415_v41, %v2416_v45  ;;  %v2444_v59 = vsel %vm709_vm0, %v2418_v6, %v5977_v57  ;;  %v2087_v61 = vrot.slane %v2039_v54, 1 }
 0x2a4   :  { %v7783_v23 = vmax.f32 %v1989_v46, 0.0  ;;  %v2592_v0 = vpack.c.bf16 %v2446_v2, %v2447_v30  ;;  %5487 = vmatmul.mubr.msk.bf16.gmra.mxu1 %vm927_vm2, %v2617_v62  ;;  %v1990_v25 = vadd.f32 %v7598_v16, %v1936_v50  ;;  %v2040_v38 = vmax.f32 %v1992_v32, 0.0 }
 0x2a5   :  { %v2445_v41 = vsel %vm709_vm0, %v2417_v22, %v2418_v6  ;;  %v9322_v31 = vrot.slane %v7631_v5, 2  ;;  %v9323_v28 = vrot.slane %v7618_v63, 2  ;;  %v2231_v45 = vrot.slane %v2039_v54, 2 }
 0x2a6   :  { %v2085_v34 = vrot.slane %v7783_v23, 1  ;;  %v2229_v26 = vrot.slane %v7783_v23, 2  ;;  %5542 = vmatprep.mubr.msk.bf16.mxu0 %vm927_vm2, %v2592_v0  ;;  %v2038_v27 = vmax.f32 %v1990_v25, 0.0  ;;  %v2593_v18 = vpack.c.bf16 %v2444_v59, %v2445_v41 }
 0x2a7   :  { %v2244_v13 = vsel %vm2233_vm3, %v9323_v28, %v9322_v31  ;;  %v2088_v36 = vrot.slane %v2040_v38, 1  ;;  %v2232_v46 = vrot.slane %v2040_v38, 2  ;;  %v9324_v5 = vrot.slane %v7689_v24, 1 }
 0x2a8   :  { %v7801_v62 = vmax.f32 %v2173_v43, %v2244_v13  ;;  %v2086_v22 = vrot.slane %v2038_v27, 1  ;;  %v2230_v6 = vrot.slane %v2038_v27, 2  ;;  %5543 = vmatmul.mubr.msk.bf16.gmra.mxu0 %vm927_vm2, %v2593_v18  ;;  %v2421_v50 = vrot.slane %v7707_v14, 7 }
 0x2a9   :  { %v2092_v63 = vsel %vm806_vm1, %v9324_v5, %v2085_v34  ;;  %v9325_v30 = vrot.slane %v7689_v24, 2  ;;  %v2089_v43 = vsel %vm806_vm1, %v2087_v61, %v2088_v36  ;;  %v2619_v0 = vpack.c.bf16 %v7754_v52, %v7684_v21 }
 0x2aa   :  { %v2180_v2 = vmax.f32 %v7689_v24, %v2092_v63  ;;  %v2183_v25 = vmax.f32 %v2039_v54, %v2089_v43  ;;  %v2234_v59 = vsel %vm2233_vm3, %v2231_v45, %v2232_v46  ;;  %v2090_v38 = vsel %vm806_vm1, %v2086_v22, %v2087_v61 }
 0x2ab   :  { %v2237_v32 = vsel %vm2233_vm3, %v9325_v30, %v2229_v26  ;;  %v2091_v41 = vsel %vm806_vm1, %v2085_v34, %v2086_v22  ;;  %v2182_v24 = vmax.f32 %v2038_v27, %v2090_v38  ;;  %v2235_v31 = vsel %vm2233_vm3, %v2230_v6, %v2231_v45 }
 0x2ac   :  { %v2618_v28 = vpack.c.bf16 %v7707_v14, %v7801_v62  ;;  %v2420_v13 = vrot.slane %v7801_v62, 7  ;;  %v7829_v18 = vmax.f32 %v2180_v2, %v2237_v32  ;;  %v2422_v54 = vrot.slane %v7684_v21, 7 }
 0x2ad   :  { %v2423_v36 = vrot.slane %v7754_v52, 7  ;;  %v9326_v61 = vmax.f32 %v7687_v35, %v7721_v42  ;;  %v2328_v27 = vmax.f32 %v2183_v25, %v2234_v59  ;;  %v7837_v46 = vmax.f32 %v2182_v24, %v2235_v31 }
 0x2ae   :  { %5490 = vmatprep.mubr.msk.bf16.mxu1 %vm927_vm2, %v2618_v28  ;;  %v2442_v45 = vsel %vm709_vm0, %v2420_v13, %v2421_v50  ;;  %v2443_v5 = vsel %vm709_vm0, %v5977_v57, %v2420_v13  ;;  %v2441_v35 = vsel %vm709_vm0, %v2421_v50, %v2422_v54  ;;  %v2621_v32 = vpack.c.bf16 %v7829_v18, %v7766_v1 }
 0x2af   :  { %v2322_v34 = vmax.f32 %v9326_v61, %v7737_v15  ;;  %v2594_v63 = vpack.c.bf16 %v2442_v45, %v2443_v5  ;;  %5491 = vmatmul.mubr.msk.bf16.gmra.mxu1 %vm927_vm2, %v2619_v0  ;;  %v2440_v22 = vsel %vm709_vm0, %v2422_v54, %v2423_v36  ;;  %v2426_v43 = vrot.slane %v7766_v1, 7  ;;  %v9327_v45 = vld [vmem:[#allocation25_spill] sm:$0xff]  ;;  %v9328_v5 = vld [vmem:[#allocation26_spill] sm:$0xff] }
 0x2b0   :  { %v2595_v15 = vpack.c.bf16 %v2440_v22, %v2441_v35  ;;  %v2427_v0 = vrot.slane %v7829_v18, 7  ;;  %v2181_v50 = vmax.f32 %v7783_v23, %v2091_v41  ;;  %v2236_v38 = vsel %vm2233_vm3, %v2229_v26, %v2230_v6 }
 0x2b1   :  { %v7852_v42 = vsel %vm2334_vm4, %v2322_v34, 0.0  ;;  %5546 = vmatprep.mubr.msk.bf16.mxu0 %vm927_vm2, %v2594_v63  ;;  %v7874_v24 = vsel %vm2334_vm4, %v2328_v27, 0.0  ;;  %v2429_v28 = vrot.slane %v7837_v46, 7  ;;  %v2487_v13 = vrot.slane %v7000_v58, 1  ;;  %v9329_v63 = vld [vmem:[#allocation24_spill] sm:$0xff] }
 0x2b2   :  { %v2424_v2 = vrot.slane %v7852_v42, 7  ;;  %v2620_v30 = vpack.c.bf16 %v9189_v44, %v7852_v42  ;;  %5547 = vmatmul.mubr.msk.bf16.gmra.mxu0 %vm927_vm2, %v2595_v15  ;;  %v2436_v23 = vsel %vm709_vm0, %v2426_v43, %v2427_v0  ;;  %v7878_v41 = vmax.f32 %v2181_v50, %v2236_v38 }
 0x2b3   :  { %v2488_v54 = vrot.slane %v7099_v7, 1  ;;  %v2437_v26 = vsel %vm709_vm0, %v5977_v57, %v2426_v43  ;;  %v2430_v34 = vrot.slane %v7874_v24, 7  ;;  %v2480_v58 = vrot.slane %v9327_v45, 1 }
 0x2b4   :  { %5494 = vmatprep.mubr.msk.bf16.mxu1 %vm927_vm2, %v2620_v30  ;;  %v2438_v25 = vsel %vm709_vm0, %v2424_v2, %v5977_v57  ;;  %v2439_v59 = vsel %vm709_vm0, %v2423_v36, %v2424_v2  ;;  %v2492_v36 = vrot.slane %v7218_v9, 1  ;;  %v2622_v6 = vpack.c.bf16 %v7837_v46, %v7878_v41 }
 0x2b5   :  { %v2596_v31 = vpack.c.bf16 %v2438_v25, %v2439_v59  ;;  %v2428_v61 = vrot.slane %v7878_v41, 7  ;;  %v2597_v27 = vpack.c.bf16 %v2436_v23, %v2437_v26  ;;  %v2481_v7 = vrot.slane %v9328_v5, 1 }
 0x2b6   :  { %v2482_v22 = vrot.slane %v9329_v63, 1  ;;  %v2490_v35 = vrot.slane %v7143_v10, 1  ;;  %v2495_v15 = vrot.slane %v7279_v20, 1  ;;  %v2496_v43 = vrot.slane %v7337_v56, 1  ;;  %v9337_v56 = vld [vmem:[#allocation28_spill] sm:$0xff] }
 0x2b7   :  { %5550 = vmatprep.mubr.msk.bf16.mxu0 %vm927_vm2, %v2596_v31  ;;  %5495 = vmatmul.mubr.msk.bf16.gmra.mxu1 %vm927_vm2, %v2621_v32  ;;  %v2434_v2 = vsel %vm709_vm0, %v2428_v61, %v2429_v28  ;;  %v2435_v30 = vsel %vm709_vm0, %v2427_v0, %v2428_v61  ;;  %v9330_v25 = vrot.slane %v6816_v49, 1  ;;  %v2486_v20 = vrot.slane %v6998_v8, 1  ;;  %v9331_v8 = vld [vmem:[#allocation3_spill] sm:$0xff] }
 0x2b8   :  { %5498 = vmatprep.mubr.msk.bf16.mxu1 %vm927_vm2, %v2622_v6  ;;  %v2598_v50 = vpack.c.bf16 %v2434_v2, %v2435_v30  ;;  %v2432_v59 = vsel %vm709_vm0, %v2430_v34, %v5977_v57  ;;  %v2433_v0 = vsel %vm709_vm0, %v2429_v28, %v2430_v34  ;;  %v7917_v38 = vsel %vm806_vm1, %v2487_v13, %v2488_v54  ;;  %v9332_v2 = vld [vmem:[#allocation27_spill] sm:$0xff] }
 0x2b9   :  { %v2572_v10 = vsel %vm806_vm1, %v2482_v22, %v9330_v25  ;;  %v2574_v49 = vsel %vm806_vm1, %v2480_v58, %v2481_v7  ;;  %v2489_v57 = vrot.slane %v7092_v12, 1  ;;  %v7934_v31 = vsel %vm806_vm1, %v9331_v8, %v2492_v36 }
 0x2ba   :  { %v3219_v32 = vpack.c.bf16 %v6985_v37, %v2572_v10  ;;  %5551 = vmatmul.mubr.msk.bf16.gmra.mxu0 %vm927_vm2, %v2597_v27  ;;  %v7926_v37 = vsel %vm806_vm1, %v2486_v20, %v2487_v13  ;;  %v2573_v23 = vsel %vm806_vm1, %v2481_v7, %v2482_v22  ;;  %v7944_v13 = vsel %vm806_vm1, %v2490_v35, %v9331_v8 }
 0x2bb   :  { %5554 = vmatprep.mubr.msk.bf16.mxu0 %vm927_vm2, %v2598_v50  ;;  %v3221_v28 = vpack.c.bf16 %v7917_v38, %v7926_v37  ;;  %v2494_v12 = vrot.slane %v7277_v19, 1  ;;  %v7949_v26 = vsel %vm806_vm1, %v2489_v57, %v2490_v35  ;;  %v7953_v6 = vsel %vm806_vm1, %v2488_v54, %v2489_v57 }
 0x2bc   :  { %v3223_v61 = vpack.c.bf16 %v7934_v31, %v7944_v13  ;;  %v7961_v34 = vsel %vm806_vm1, %v2495_v15, %v2496_v43  ;;  %v2623_v27 = vpack.c.bf16 %v9189_v44, %v7874_v24  ;;  %v3222_v5 = vpack.c.bf16 %v7949_v26, %v7953_v6  ;;  %v9335_v31 = vld [vmem:[#allocation4_spill] sm:$0xff]  ;;  %v9336_v13 = vld [vmem:[#allocation6_spill] sm:$0xff] }
 0x2bd   :  { %v7971_v54 = vsel %vm806_vm1, %v2494_v12, %v2495_v15  ;;  %v3218_v7 = vpack.c.bf16 %v2573_v23, %v2574_v49  ;;  %v2504_v22 = vrot.slane %v7536_v60, 1  ;;  %v2508_v35 = vrot.slane %v7642_v55, 1 }
 0x2be   :  { %v3225_v63 = vpack.c.bf16 %v7961_v34, %v7971_v54  ;;  %v2599_v44 = vpack.c.bf16 %v2432_v59, %v2433_v0  ;;  %v9333_v30 = vrot.slane %v9332_v2, 1  ;;  %v2505_v50 = vrot.slane %v7538_v51, 1 }
 0x2bf   :  { %5499 = vmatmul.mubr.msk.bf16.gmra.mxu1 %vm927_vm2, %v2623_v27  ;;  %v2506_v25 = vrot.slane %v7440_v40, 1  ;;  %v2507_v10 = vrot.slane %v7466_v53, 1  ;;  %v2512_v49 = vrot.slane %v7756_v39, 1  ;;  %v2516_v55 = vrot.slane %v7801_v62, 1 }
 0x2c0   :  { %5566 = vmatprep.mubr.msk.bf16.mxu1 %vm927_vm2, %v3218_v7  ;;  %v2570_v15 = vsel %vm806_vm1, %v9333_v30, %v9331_v8  ;;  %v2520_v59 = vrot.slane %v7852_v42, 1  ;;  %v2569_v0 = vsel %vm806_vm1, %v9331_v8, %v2486_v20  ;;  %v2524_v40 = vrot.slane %v7878_v41, 1 }
 0x2c1   :  { %v7996_v57 = vsel %vm806_vm1, %v2505_v50, %v2506_v25  ;;  %v3220_v51 = vpack.c.bf16 %v2569_v0, %v2570_v15  ;;  %v8003_v53 = vsel %vm806_vm1, %v2504_v22, %v2505_v50  ;;  %v8007_v39 = vsel %vm806_vm1, %v2507_v10, %v2508_v35 }
 0x2c2   :  { %5555 = vmatmul.mubr.msk.bf16.gmra.mxu0 %vm927_vm2, %v2599_v44  ;;  %v3230_v62 = vpack.c.bf16 %v7996_v57, %v8003_v53  ;;  %v8013_v42 = vsel %vm806_vm1, %v2506_v25, %v2507_v10  ;;  %v2510_v41 = vrot.slane %v7549_v48, 1  ;;  %v8019_v20 = vsel %vm806_vm1, %v2508_v35, %v9331_v8 }
 0x2c3   :  { %v3231_v23 = vpack.c.bf16 %v8007_v39, %v8013_v42  ;;  %v2511_v27 = vrot.slane %v7575_v33, 1  ;;  %v2513_v7 = vrot.slane %v7751_v3, 1  ;;  %v2514_v44 = vrot.slane %v7763_v29, 1 }
 0x2c4   :  { %v8029_v2 = vsel %vm806_vm1, %v9331_v8, %v2510_v41  ;;  %v8034_v48 = vsel %vm806_vm1, %v9331_v8, %v2516_v55  ;;  %v2517_v35 = vrot.slane %v7707_v14, 1  ;;  %v2518_v30 = vrot.slane %v7684_v21, 1 }
 0x2c5   :  { %v3232_v33 = vpack.c.bf16 %v8029_v2, %v8019_v20  ;;  %v8043_v3 = vsel %vm806_vm1, %v2511_v27, %v2512_v49  ;;  %v8047_v29 = vsel %vm806_vm1, %v2510_v41, %v2511_v27  ;;  %v8051_v15 = vsel %vm806_vm1, %v2513_v7, %v2514_v44 }
 0x2c6   :  { %v3233_v21 = vpack.c.bf16 %v8043_v3, %v8047_v29  ;;  %v8058_v14 = vsel %vm806_vm1, %v2512_v49, %v2513_v7  ;;  %v8067_v50 = vsel %vm806_vm1, %v2517_v35, %v2518_v30  ;;  %v8075_v0 = vsel %vm806_vm1, %v2516_v55, %v2517_v35 }
 0x2c7   :  { %5567 = vmatmul.mubr.msk.bf16.vlgmr.msra.gmra.mxu1 %vm927_vm2, %v3219_v32  ;;  %v8063_v32 = vsel %vm806_vm1, %v2514_v44, %v9331_v8  ;;  %v3234_v25 = vpack.c.bf16 %v8051_v15, %v8058_v14  ;;  %v2519_v49 = vrot.slane %v7754_v52, 1  ;;  %v2522_v41 = vrot.slane %v7766_v1, 1 }
 0x2c8   :  { %5570 = vmatprep.mubr.msk.bf16.mxu1 %vm927_vm2, %v3220_v51  ;;  %v3235_v10 = vpack.c.bf16 %v8034_v48, %v8063_v32  ;;  %v3236_v51 = vpack.c.bf16 %v8067_v50, %v8075_v0  ;;  %v8084_v27 = vsel %vm806_vm1, %v2520_v59, %v9331_v8  ;;  %v2523_v7 = vrot.slane %v7829_v18, 1 }
 0x2c9   :  { %v8089_v44 = vsel %vm806_vm1, %v2519_v49, %v2520_v59  ;;  %v8093_v55 = vsel %vm806_vm1, %v2518_v30, %v2519_v49  ;;  %v2525_v52 = vrot.slane %v7837_v46, 1  ;;  %v2526_v35 = vrot.slane %v7874_v24, 1 }
 0x2ca   :  { %v3237_v1 = vpack.c.bf16 %v8089_v44, %v8093_v55  ;;  %v8102_v3 = vsel %vm806_vm1, %v9331_v8, %v2522_v41  ;;  %v8106_v18 = vsel %vm806_vm1, %v2523_v7, %v2524_v40  ;;  %v8110_v59 = vsel %vm806_vm1, %v2522_v41, %v2523_v7 }
 0x2cb   :  { %v3238_v46 = vpack.c.bf16 %v8102_v3, %v8084_v27  ;;  %v3239_v24 = vpack.c.bf16 %v8106_v18, %v8110_v59  ;;  %v8118_v30 = vsel %vm806_vm1, %v2525_v52, %v2526_v35  ;;  %v8122_v29 = vsel %vm806_vm1, %v2524_v40, %v2525_v52 }
 0x2cc   :  { %v3240_v15 = vpack.c.bf16 %v8118_v30, %v8122_v29  ;;  %v8129_v14 = vsel %vm806_vm1, %v2526_v35, %v9331_v8  ;;  %v8136_v49 = vsel %vm806_vm1, %v9331_v8, %v2480_v58  ;;  %v2493_v40 = vrot.slane %v7211_v11, 1 }
 0x2cd   :  { %v3241_v41 = vpack.c.bf16 %v8136_v49, %v8129_v14  ;;  %v2498_v11 = vrot.slane %v7179_v17, 1  ;;  %v2558_v19 = vsel %vm806_vm1, %v2496_v43, %v9331_v8  ;;  %v2501_v17 = vrot.slane %v9335_v31, 1 }
 0x2ce   :  { %v2561_v45 = vsel %vm806_vm1, %v2493_v40, %v2494_v12  ;;  %v2562_v58 = vsel %vm806_vm1, %v2492_v36, %v2493_v40  ;;  %v9334_v36 = vld [vmem:[#allocation5_spill] sm:$0xff]  ;;  %v2502_v12 = vrot.slane %v9336_v13, 1  ;;  %v2499_v43 = vrot.slane %v9337_v56, 1 }
 0x2cf   :  { %5571 = vmatmul.mubr.msk.bf16.gmra.mxu1 %vm927_vm2, %v3221_v28  ;;  %v3224_v38 = vpack.c.bf16 %v2561_v45, %v2562_v58  ;;  %v2557_v9 = vsel %vm806_vm1, %v9331_v8, %v2498_v11  ;;  %v2500_v37 = vrot.slane %v9334_v36, 1 }
 0x2d0   :  { %5574 = vmatprep.mubr.msk.bf16.mxu1 %vm927_vm2, %v3222_v5  ;;  %v3226_v28 = vpack.c.bf16 %v2557_v9, %v2558_v19  ;;  %v2553_v6 = vsel %vm806_vm1, %v2501_v17, %v2502_v12  ;;  %v2556_v34 = vsel %vm806_vm1, %v2498_v11, %v2499_v43  ;;  %v2552_v27 = vsel %vm806_vm1, %v2502_v12, %v9331_v8 }
 0x2d1   :  { %v2555_v26 = vsel %vm806_vm1, %v2499_v43, %v2500_v37 }
 0x2d2   :  { %v3227_v5 = vpack.c.bf16 %v2555_v26, %v2556_v34 }
 0x2d7   :  { %5575 = vmatmul.mubr.msk.bf16.gmra.mxu1 %vm927_vm2, %v3223_v61  ;;  %v2554_v61 = vsel %vm806_vm1, %v2500_v37, %v2501_v17 }
 0x2d8   :  { %5578 = vmatprep.mubr.msk.bf16.mxu1 %vm927_vm2, %v3224_v38  ;;  %v3228_v54 = vpack.c.bf16 %v2553_v6, %v2554_v61 }
 0x2df   :  { %5579 = vmatmul.mubr.msk.bf16.gmra.mxu1 %vm927_vm2, %v3225_v63  ;;  %v2551_v63 = vsel %vm806_vm1, %v9331_v8, %v2504_v22 }
 0x2e0   :  { %5582 = vmatprep.mubr.msk.bf16.mxu1 %vm927_vm2, %v3226_v28  ;;  %v3229_v7 = vpack.c.bf16 %v2551_v63, %v2552_v27 }
 0x2e7   :  { %5583 = vmatmul.mubr.msk.bf16.gmra.mxu1 %vm927_vm2, %v3227_v5 }
 0x2e8   :  { %5586 = vmatprep.mubr.msk.bf16.mxu1 %vm927_vm2, %v3228_v54 }
 0x2ef   :  { %5587 = vmatmul.mubr.msk.bf16.gmra.mxu1 %vm927_vm2, %v3229_v7 }
 0x2f0   :  { %5590 = vmatprep.mubr.msk.bf16.mxu1 %vm927_vm2, %v3230_v62 }
 0x2f3   :  { %v5456_v60 = vpop.f32.mrf.mxu1 }
 0x2f5   :  { %v2730_v8 = vpop.f32.mrf.mxu1 }
 0x2f7   :  { %5591 = vmatmul.mubr.msk.bf16.gmra.mxu1 %vm927_vm2, %v3231_v23  ;;  %v5512_v22 = vpop.f32.mrf.mxu0  ;;  %v5457_v53 = vpop.f32.mrf.mxu1 }
 0x2f8   :  { %5594 = vmatprep.mubr.msk.bf16.mxu1 %vm927_vm2, %v3232_v33  ;;  %v8213_v57 = vadd.f32 %v5512_v22, %v5456_v60 }
 0x2f9   :  { %v3027_v62 = vpop.f32.mrf.mxu0  ;;  %v2733_v23 = vpop.f32.mrf.mxu1 }
 0x2fa   :  { %v8215_v52 = vadd.f32 %v3027_v62, %v2730_v8 }
 0x2fb   :  { %v5513_v39 = vpop.f32.mrf.mxu0 }
 0x2fc   :  { %9338 = vst [vmem:[#allocation7_spill] sm:$0xff] %v8215_v52  ;;  %v8217_v42 = vadd.f32 %v5513_v39, %v5457_v53 }
 0x2fd   :  { %v3030_v20 = vpop.f32.mrf.mxu0 }
 0x2fe   :  { %9339 = vst [vmem:[#allocation8_spill] sm:$0xff] %v8217_v42  ;;  %v8223_v2 = vadd.f32 %v3030_v20, %v2733_v23 }
 0x2ff   :  { %5595 = vmatmul.mubr.msk.bf16.gmra.mxu1 %vm927_vm2, %v3233_v21 }
 0x300   :  { %5598 = vmatprep.mubr.msk.bf16.mxu1 %vm927_vm2, %v3234_v25  ;;  %9340 = vst [vmem:[#allocation10_spill] sm:$0xff] %v8223_v2 }
 0x305   :  { %v5460_v33 = vpop.f32.mrf.mxu1 }
 0x307   :  { %5599 = vmatmul.mubr.msk.bf16.gmra.mxu1 %vm927_vm2, %v3235_v10  ;;  %v2746_v21 = vpop.f32.mrf.mxu1 }
 0x308   :  { %5602 = vmatprep.mubr.msk.bf16.mxu1 %vm927_vm2, %v3236_v51 }
 0x309   :  { %v5516_v25 = vpop.f32.mrf.mxu0  ;;  %v5461_v32 = vpop.f32.mrf.mxu1 }
 0x30a   :  { %v8234_v48 = vadd.f32 %v5516_v25, %v5460_v33 }
 0x30b   :  { %v3043_v10 = vpop.f32.mrf.mxu0  ;;  %v2749_v50 = vpop.f32.mrf.mxu1 }
 0x30c   :  { %9341 = vst [vmem:[#allocation11_spill] sm:$0xff] %v8234_v48  ;;  %v8236_v35 = vadd.f32 %v3043_v10, %v2746_v21  ;;  %v5661_v10 = vld [vmem:[%s9130_s5 + $0x30] ss:$8 sps:$4 sm:$0xff]  }
 0x30d   :  { %v5517_v3 = vpop.f32.mrf.mxu0 }
 0x30e   :  { %9342 = vst [vmem:[#allocation12_spill] sm:$0xff] %v8236_v35  ;;  %v8238_v0 = vadd.f32 %v5517_v3, %v5461_v32  ;;  %v5663_v3 = vld [vmem:[%s9130_s5 + $0x34] ss:$8 sps:$4 sm:$0xff]  }
 0x30f   :  { %5603 = vmatmul.mubr.msk.bf16.gmra.mxu1 %vm927_vm2, %v3237_v1  ;;  %v3046_v51 = vpop.f32.mrf.mxu0  ;;  %4271 = vmatprep.subr.bf16.mxu0 %v5663_v3 }
 0x310   :  { %5606 = vmatprep.mubr.msk.bf16.mxu1 %vm927_vm2, %v3238_v46  ;;  %9343 = vst [vmem:[#allocation13_spill] sm:$0xff] %v8238_v0  ;;  %v8244_v44 = vadd.f32 %v3046_v51, %v2749_v50  ;;  %4272 = vmatpush1.bf16.msra.mxu0 %v5661_v10 }
 0x312   :  { %9344 = vst [vmem:[#allocation14_spill] sm:$0xff] %v8244_v44 }
 0x313   :  { %v5464_v55 = vpop.f32.mrf.mxu1 }
 0x315   :  { %v2762_v1 = vpop.f32.mrf.mxu1 }
 0x316   :  { %v5520_v46 = vpop.f32.mrf.mxu0 }
 0x317   :  { %5607 = vmatmul.mubr.msk.bf16.gmra.mxu1 %vm927_vm2, %v3239_v24  ;;  %v8250_v40 = vadd.f32 %v5520_v46, %v5464_v55  ;;  %v5465_v45 = vpop.f32.mrf.mxu1 }
 0x318   :  { %5610 = vmatprep.mubr.msk.bf16.mxu1 %vm927_vm2, %v3240_v15  ;;  %v3059_v58 = vpop.f32.mrf.mxu0 }
 0x319   :  { %9345 = vst [vmem:[#allocation15_spill] sm:$0xff] %v8250_v40  ;;  %v8252_v38 = vadd.f32 %v3059_v58, %v2762_v1  ;;  %v2765_v24 = vpop.f32.mrf.mxu1 }
 0x31a   :  { %v5521_v18 = vpop.f32.mrf.mxu0 }
 0x31b   :  { %9346 = vst [vmem:[#allocation16_spill] sm:$0xff] %v8252_v38  ;;  %v8258_v59 = vadd.f32 %v5521_v18, %v5465_v45 }
 0x31c   :  { %v3062_v30 = vpop.f32.mrf.mxu0 }
 0x31d   :  { %9347 = vst [vmem:[#allocation17_spill] sm:$0xff] %v8258_v59  ;;  %v8260_v29 = vadd.f32 %v3062_v30, %v2765_v24 }
 0x31f   :  { %5611 = vmatmul.mubr.msk.bf16.gmra.mxu1 %vm927_vm2, %v3241_v41  ;;  %9348 = vst [vmem:[#allocation18_spill] sm:$0xff] %v8260_v29 }
 0x325   :  { %v8262_v15 = vpop.f32.mrf.mxu1 }
 0x327   :  { %v8264_v11 = vpop.f32.mrf.mxu1 }
 0x328   :  { %v8266_v19 = vpop.f32.mrf.mxu0 }
 0x329   :  { %v8268_v9 = vpop.f32.mrf.mxu1 }
 0x32a   :  { %v8270_v36 = vpop.f32.mrf.mxu0 }
 0x32b   :  { %v8272_v14 = vpop.f32.mrf.mxu1 }
 0x32c   :  { %v8274_v49 = vpop.f32.mrf.mxu0 }
 0x32d   :  { %v8276_v41 = vpop.f32.mrf.mxu1 }
 0x32e   :  { %v8278_v37 = vpop.f32.mrf.mxu0 }
 0x32f   :  { %v8280_v28 = vpop.f32.mrf.mxu1 }
 0x331   :  { %v8282_v31 = vpop.f32.mrf.mxu0  ;;  %v8284_v17 = vpop.f32.mrf.mxu1 }
 0x333   :  { %v8286_v13 = vpop.f32.mrf.mxu0  ;;  %v8290_v56 = vpop.f32.mrf.mxu1 }
 0x335   :  { %v8288_v12 = vpop.f32.mrf.mxu0 }
 0x337   :  { %v8292_v43 = vpop.f32.mrf.mxu0 }
 0x33b   :  { %v8294_v26 = vpop.f32.mrf.mxu1 }
 0x33d   :  { %v8296_v6 = vpop.f32.mrf.mxu1 }
 0x33e   :  { %v8298_v61 = vpop.f32.mrf.mxu0 }
 0x33f   :  { %v8300_v34 = vpop.f32.mrf.mxu1 }
 0x340   :  { %v8302_v5 = vpop.f32.mrf.mxu0 }
 0x341   :  { %v8304_v54 = vpop.f32.mrf.mxu1 }
 0x342   :  { %v8306_v63 = vpop.f32.mrf.mxu0 }
 0x344   :  { %v8310_v7 = vpop.f32.mrf.mxu0 }
 0x348   :  { %v8308_v27 = vpop.f32.mrf.mxu1 }
 0x34a   :  { %v8312_v60 = vpop.f32.mrf.mxu1 }
 0x34b   :  { %9349 = vst [vmem:[#allocation19_spill] sm:$0xff] %v8312_v60  ;;  %v8373_v60 = vadd.f32 %v8278_v37, %v8272_v14  ;;  %v8405_v37 = vadd.f32 %v8310_v7, %v8304_v54 }
 0x34c   :  { %v8314_v8 = vpop.f32.mrf.mxu0  ;;  %v8316_v22 = vpop.f32.mrf.mxu1 }
 0x34d   :  { %9350 = vst [vmem:[#allocation20_spill] sm:$0xff] %v8316_v22 }
 0x34e   :  { %v8318_v53 = vpop.f32.mrf.mxu0  ;;  %v8320_v62 = vpop.f32.mrf.mxu1 }
 0x34f   :  { %9351 = vst [vmem:[#allocation21_spill] sm:$0xff] %v8318_v53  ;;  %9352 = vst [vmem:[#allocation22_spill] sm:$0xff] %v8320_v62  ;;  %v8369_v53 = vadd.f32 %v8274_v49, %v8268_v9  ;;  %v8389_v9 = vadd.f32 %v8292_v43, %v8290_v56  ;;  %v8397_v49 = vadd.f32 %v8302_v5, %v8296_v6 }
 0x350   :  { %v8322_v39 = vpop.f32.mrf.mxu0 }
 0x351   :  { %9353 = vst [vmem:[#allocation25_spill] sm:$0xff] %v8322_v39  ;;  %v5750_v39 = vmov -inf  }
 0x352   :  { %v8326_v20 = vpop.f32.mrf.mxu0  ;;  %v8361_v22 = vsel %vm927_vm2, 0.0, %v5750_v39 }
 0x353   :  { %9355 = vst [vmem:[#allocation24_spill] sm:$0xff] %v8326_v20  ;;  %v8356_v20 = vadd.f32 %v8266_v19, %v8262_v15  ;;  %v8377_v15 = vadd.f32 %v8282_v31, %v8276_v41  ;;  %v8381_v19 = vadd.f32 %v8286_v13, %v8280_v28  ;;  %v8401_v41 = vadd.f32 %v8306_v63, %v8300_v34  ;;  %v9363_v13 = vld [vmem:[#allocation19_spill] sm:$0xff] }
 0x354   :  { %v8324_v23 = vpop.f32.mrf.mxu1  ;;  %v9365_v43 = vld [vmem:[#allocation20_spill] sm:$0xff] }
 0x355   :  { %9354 = vst [vmem:[#allocation26_spill] sm:$0xff] %v8324_v23 }
 0x356   :  { %v8328_v33 = vpop.f32.mrf.mxu1 }
 0x357   :  { %9356 = vst [vmem:[#allocation3_spill] sm:$0xff] %v8328_v33  ;;  %v5664_v33 = vld [vmem:[%s9130_s5 + $0x20] ss:$8 sps:$4 sm:$0xff]  }
 0x358   :  { %v8332_v25 = vpop.f32.mrf.mxu1 }
 0x359   :  { %v8330_v21 = vpop.f32.mrf.mxu0  ;;  %9358 = vst [vmem:[#allocation5_spill] sm:$0xff] %v8332_v25 }
 0x35a   :  { %9357 = vst [vmem:[#allocation27_spill] sm:$0xff] %v8330_v21  ;;  %v8342_v50 = vpop.f32.mrf.mxu1  ;;  %v5666_v21 = vld [vmem:[%s9130_s5 + $0x24] ss:$8 sps:$4 sm:$0xff]   ;;  %v9369_v34 = vld [vmem:[#allocation24_spill] sm:$0xff] }
 0x35b   :  { %v8334_v32 = vpop.f32.mrf.mxu0  ;;  %9360 = vst [vmem:[#allocation6_spill] sm:$0xff] %v8342_v50  ;;  %4273 = vmatprep.subr.bf16.mxu0 %v5666_v21 }
 0x35c   :  { %9359 = vst [vmem:[#allocation4_spill] sm:$0xff] %v8334_v32  ;;  %4274 = vmatpush1.bf16.msra.mxu0 %v5664_v33  ;;  %v9371_v63 = vld [vmem:[#allocation26_spill] sm:$0xff]  ;;  %v9376_v33 = vld [vmem:[#allocation9_spill] sm:$0xff] }
 0x35d   :  { %v8344_v51 = vpop.f32.mrf.mxu0 }
 0x35e   :  { %9361 = vst [vmem:[#allocation28_spill] sm:$0xff] %v8344_v51  ;;  %v9373_v39 = vld [vmem:[#allocation3_spill] sm:$0xff] }
 0x35f   :  { %v3142_v1 = vpop.f32.mrf.mxu0 }
 0x361   :  { %v9372_v7 = vld [vmem:[#allocation27_spill] sm:$0xff] }
 0x364   :  { %v5488_v55 = vpop.f32.mrf.mxu1 }
 0x366   :  { %v2858_v46 = vpop.f32.mrf.mxu1 }
 0x368   :  { %v5544_v45 = vpop.f32.mrf.mxu0  ;;  %v5489_v58 = vpop.f32.mrf.mxu1 }
 0x36a   :  { %v3155_v18 = vpop.f32.mrf.mxu0  ;;  %v2861_v24 = vpop.f32.mrf.mxu1 }
 0x36c   :  { %v5545_v30 = vpop.f32.mrf.mxu0 }
 0x36e   :  { %v3158_v59 = vpop.f32.mrf.mxu0 }
 0x36f   :  { %v5492_v29 = vpop.f32.mrf.mxu1 }
 0x371   :  { %v2874_v38 = vpop.f32.mrf.mxu1 }
 0x372   :  { %v5548_v40 = vpop.f32.mrf.mxu0 }
 0x373   :  { %v5493_v4 = vpop.f32.mrf.mxu1 }
 0x374   :  { %v3171_v44 = vpop.f32.mrf.mxu0 }
 0x375   :  { %v2877_v0 = vpop.f32.mrf.mxu1 }
 0x376   :  { %v5549_v47 = vpop.f32.mrf.mxu0 }
 0x377   :  { %v5496_v35 = vpop.f32.mrf.mxu1 }
 0x378   :  { %v3174_v48 = vpop.f32.mrf.mxu0 }
 0x379   :  { %v2890_v3 = vpop.f32.mrf.mxu1 }
 0x37a   :  { %v5552_v10 = vpop.f32.mrf.mxu0 }
 0x37b   :  { %v5497_v2 = vpop.f32.mrf.mxu1 }
 0x37c   :  { %v3187_v42 = vpop.f32.mrf.mxu0 }
 0x37d   :  { %v2893_v50 = vpop.f32.mrf.mxu1 }
 0x37e   :  { %v5553_v51 = vpop.f32.mrf.mxu0 }
 0x37f   :  { %v5500_v25 = vpop.f32.mrf.mxu1 }
 0x380   :  { %v3190_v52 = vpop.f32.mrf.mxu0 }
 0x381   :  { %v2906_v16 = vpop.f32.mrf.mxu1 }
 0x382   :  { %v5556_v23 = vpop.f32.mrf.mxu0 }
 0x383   :  { %v8346_v32 = vpop.f32.mrf.mxu1 }
 0x384   :  { %9362 = vst [vmem:[#allocation29_spill] sm:$0xff] %v8346_v32  ;;  %v8365_v32 = vadd.f32 %v8270_v36, %v8264_v11  ;;  %v8385_v11 = vadd.f32 %v8288_v12, %v8284_v17  ;;  %v8393_v36 = vadd.f32 %v8298_v61, %v8294_v26  ;;  %v3203_v28 = vpop.f32.mrf.mxu0  ;;  %v8410_v17 = vadd.f32 %v8314_v8, %v8308_v27  ;;  %v9364_v12 = vld [vmem:[#allocation21_spill] sm:$0xff]  ;;  %v9368_v61 = vld [vmem:[#allocation22_spill] sm:$0xff]  ;;  %v9374_v27 = vld [vmem:[#allocation4_spill] sm:$0xff] }
 0x385   :  { %v8358_v62 = vpop.f32.mrf.mxu1  ;;  %v8414_v56 = vadd.f32 %v9364_v12, %v9363_v13  ;;  %v9366_v26 = vld [vmem:[#allocation25_spill] sm:$0xff]  ;;  %v8422_v5 = vadd.f32 %v9369_v34, %v9368_v61  ;;  %v8430_v8 = vadd.f32 %v9374_v27, %v9373_v39  ;;  %v8441_v34 = vadd.f32 %v5544_v45, %v5488_v55 }
 0x386   :  { %v8418_v6 = vadd.f32 %v9366_v26, %v9365_v43  ;;  %v9378_v12 = vld [vmem:[#allocation5_spill] sm:$0xff]  ;;  %v9379_v43 = vld [vmem:[#allocation28_spill] sm:$0xff]  ;;  %v8447_v39 = vadd.f32 %v3158_v59, %v2861_v24  ;;  %v5557_v27 = vpop.f32.mrf.mxu0  ;;  %v8466_v59 = vld [vmem:[%s9129_s4] ss:$0 sm:$0xff] }
 0x387   :  { %v5568_v14 = vpop.f32.mrf.mxu1  ;;  %9370 = vst [vmem:[#allocation21_spill] sm:$0xff] %v8422_v5  ;;  %9375 = vst [vmem:[#allocation20_spill] sm:$0xff] %v8430_v8  ;;  %v8436_v26 = vadd.f32 %v9379_v43, %v9378_v12  ;;  %v8443_v5 = vadd.f32 %v3155_v18, %v2858_v46  ;;  %v8451_v8 = vadd.f32 %v5548_v40, %v5492_v29 }
 0x388   :  { %v3541_v31 = vadd.f32 %v5568_v14, %v8213_v57  ;;  %9367 = vst [vmem:[#allocation19_spill] sm:$0xff] %v8418_v6  ;;  %v8426_v57 = vadd.f32 %v9372_v7, %v9371_v63  ;;  %v9377_v14 = vld [vmem:[#allocation7_spill] sm:$0xff]  ;;  %v9380_v6 = vld [vmem:[#allocation6_spill] sm:$0xff]  ;;  %v8445_v7 = vadd.f32 %v5545_v30, %v5489_v58  ;;  %v8453_v12 = vadd.f32 %v3171_v44, %v2874_v38 }
 0x389   :  { %v3348_v54 = vpop.f32.mrf.mxu1  ;;  %v8439_v61 = vadd.f32 %v3142_v1, %v9380_v6  ;;  %v8455_v1 = vadd.f32 %v5549_v47, %v5493_v4  ;;  %v8457_v46 = vadd.f32 %v3174_v48, %v2877_v0  ;;  %v8459_v18 = vadd.f32 %v5552_v10, %v5496_v35  ;;  %v9384_v4 = vld [vmem:[#allocation10_spill] sm:$0xff]  ;;  %v9387_v30 = vld [vmem:[#allocation11_spill] sm:$0xff] }
 0x38a   :  { %v3589_v21 = vadd.f32 %v9376_v33, %v3541_v31  ;;  %v3539_v13 = vadd.f32 %v3348_v54, %v9377_v14  ;;  %v9381_v54 = vld [vmem:[#allocation8_spill] sm:$0xff]  ;;  %v8461_v58 = vadd.f32 %v3187_v42, %v2890_v3  ;;  %v8469_v29 = vadd.f32 %v5553_v51, %v5497_v2  ;;  %v3206_v42 = vpop.f32.mrf.mxu0 }
 0x38b   :  { %v5569_v63 = vpop.f32.mrf.mxu1  ;;  %v8471_v44 = vadd.f32 %v3190_v52, %v2893_v50  ;;  %v8474_v0 = vadd.f32 %v5556_v23, %v5500_v25  ;;  %v8476_v35 = vadd.f32 %v3203_v28, %v2906_v16  ;;  %v9388_v10 = vld [vmem:[#allocation29_spill] sm:$0xff]  ;;  %v9390_v23 = vld [vmem:[#allocation12_spill] sm:$0xff]  ;;  %v8486_v16 = vadd.f32 %v3206_v42, %v8358_v62 }
 0x38c   :  { %v3587_v31 = vadd.f32 %v9376_v33, %v3539_v13  ;;  %v3542_v14 = vadd.f32 %v5569_v63, %v9381_v54  ;;  %v3637_v55 = vmax.f32 %v3589_v21, 0.0  ;;  %9382 = vst [vmem:[#allocation25_spill] sm:$0xff] %v8469_v29  ;;  %v8480_v6 = vadd.f32 %v5557_v27, %v9388_v10  ;;  %v9392_v27 = vld [vmem:[#allocation2_spill] sm:$0xff] }
 0x38d   :  { %v3351_v45 = vpop.f32.mrf.mxu1  ;;  %9383 = vst [vmem:[#allocation22_spill] sm:$0xff] %v8471_v44  ;;  %9385 = vst [vmem:[#allocation24_spill] sm:$0xff] %v8474_v0  ;;  %v9399_v29 = vld [vmem:[#allocation18_spill] sm:$0xff] }
 0x38e   :  { %v3590_v40 = vadd.f32 %v8466_v59, %v3542_v14  ;;  %v3635_v47 = vmax.f32 %v3587_v31, 0.0  ;;  %v3540_v38 = vadd.f32 %v3351_v45, %v9384_v4  ;;  %9386 = vst [vmem:[#allocation26_spill] sm:$0xff] %v8476_v35  ;;  %9389 = vst [vmem:[#allocation27_spill] sm:$0xff] %v8480_v6  ;;  %v3685_v33 = vrot.slane %v3637_v55, 1 }
 0x38f   :  { %v5572_v48 = vpop.f32.mrf.mxu1  ;;  %v3829_v2 = vrot.slane %v3637_v55, 2  ;;  %9391 = vst [vmem:[#allocation3_spill] sm:$0xff] %v8486_v16 }
 0x390   :  { %v3638_v24 = vmax.f32 %v3590_v40, 0.0  ;;  %v3545_v3 = vadd.f32 %v5572_v48, %v9387_v30  ;;  %v3588_v52 = vadd.f32 %v8466_v59, %v3540_v38  ;;  %v3683_v28 = vrot.slane %v3635_v47, 1  ;;  %v9393_v30 = vld [vmem:[#allocation13_spill] sm:$0xff] }
 0x391   :  { %v3364_v50 = vpop.f32.mrf.mxu1  ;;  %v3827_v43 = vrot.slane %v3635_v47, 2 }
 0x392   :  { %v3686_v51 = vrot.slane %v3638_v24, 1  ;;  %v3830_v21 = vrot.slane %v3638_v24, 2  ;;  %v3593_v13 = vadd.f32 %v8466_v59, %v3545_v3  ;;  %v3543_v25 = vadd.f32 %v3364_v50, %v9390_v23  ;;  %v9394_v50 = vld [vmem:[#allocation14_spill] sm:$0xff] }
 0x393   :  { %v3636_v63 = vmax.f32 %v3588_v52, 0.0  ;;  %v5573_v31 = vpop.f32.mrf.mxu1 }
 0x394   :  { %v3775_v54 = vsel %vm806_vm1, %v3685_v33, %v3686_v51  ;;  %v3919_v14 = vsel %vm2233_vm3, %v3829_v2, %v3830_v21  ;;  %v8492_v45 = vmax.f32 %v3593_v13, 0.0  ;;  %v3591_v40 = vadd.f32 %v8466_v59, %v3543_v25 }
 0x395   :  { %v3781_v4 = vmax.f32 %v3637_v55, %v3775_v54  ;;  %v3684_v38 = vrot.slane %v3636_v63, 1  ;;  %v3828_v48 = vrot.slane %v3636_v63, 2  ;;  %v3546_v62 = vadd.f32 %v5573_v31, %v9393_v30  ;;  %v3367_v42 = vpop.f32.mrf.mxu1 }
 0x396   :  { %v3689_v3 = vrot.slane %v8492_v45, 1  ;;  %v3833_v10 = vrot.slane %v8492_v45, 2  ;;  %v3639_v52 = vmax.f32 %v3591_v40, 0.0  ;;  %v3544_v23 = vadd.f32 %v3367_v42, %v9394_v50 }
 0x397   :  { %v3925_v16 = vmax.f32 %v3781_v4, %v3919_v14  ;;  %v3776_v13 = vsel %vm806_vm1, %v3684_v38, %v3685_v33  ;;  %v3777_v25 = vsel %vm806_vm1, %v3683_v28, %v3684_v38  ;;  %v3920_v55 = vsel %vm2233_vm3, %v3828_v48, %v3829_v2  ;;  %v5576_v54 = vpop.f32.mrf.mxu1  ;;  %v9395_v38 = vld [vmem:[#allocation23_spill] sm:$0xff] }
 0x398   :  { %v3779_v31 = vmax.f32 %v3635_v47, %v3777_v25  ;;  %v3780_v30 = vmax.f32 %v3636_v63, %v3776_v13  ;;  %v3921_v6 = vsel %vm2233_vm3, %v3827_v43, %v3828_v48  ;;  %v3687_v35 = vrot.slane %v3639_v52, 1  ;;  %v9396_v47 = vld [vmem:[#allocation15_spill] sm:$0xff] }
 0x399   :  { %v4028_v40 = vsel %vm927_vm2, %v3925_v16, -inf  ;;  %v3831_v42 = vrot.slane %v3639_v52, 2  ;;  %v3594_v14 = vadd.f32 %v8466_v59, %v3546_v62  ;;  %v3592_v33 = vadd.f32 %v8466_v59, %v3544_v23  ;;  %v3380_v4 = vpop.f32.mrf.mxu1 }
 0x39a   :  { %v3923_v50 = vmax.f32 %v3779_v31, %v3921_v6  ;;  %v3924_v28 = vmax.f32 %v3780_v30, %v3920_v55  ;;  %v3774_v2 = vsel %vm806_vm1, %v3686_v51, %v3687_v35  ;;  %vm3975_vm5 = vcmp.lt.s32.totalorder %v9395_v38, 36  ;;  %v9397_v55 = vld [vmem:[#allocation16_spill] sm:$0xff] }
 0x39b   :  { %v3549_v63 = vadd.f32 %v5576_v54, %v9396_v47  ;;  %v3782_v13 = vmax.f32 %v3638_v24, %v3774_v2  ;;  %v3918_v43 = vsel %vm2233_vm3, %v3830_v21, %v3831_v42  ;;  %v3642_v16 = vmax.f32 %v3594_v14, 0.0  ;;  %v5577_v25 = vpop.f32.mrf.mxu1 }
 0x39c   :  { %v3640_v48 = vmax.f32 %v3592_v33, 0.0  ;;  %v4025_v62 = vsel %vm927_vm2, %v3923_v50, -inf  ;;  %v4026_v23 = vsel %vm927_vm2, %v3924_v28, -inf  ;;  %v3547_v31 = vadd.f32 %v3380_v4, %v9397_v55 }
 0x39d   :  { %v3597_v6 = vadd.f32 %v8466_v59, %v3549_v63  ;;  %v4027_v51 = vmax.f32 %v4025_v62, %v4026_v23  ;;  %v3926_v30 = vmax.f32 %v3782_v13, %v3918_v43  ;;  %v3690_v0 = vrot.slane %v3642_v16, 1  ;;  %v3383_v54 = vpop.f32.mrf.mxu1  ;;  %v5667_v63 = vld [vmem:[%s9130_s5 + $0x10] ss:$8 sps:$4 sm:$0xff]   ;;  %v5669_v13 = vld [vmem:[%s9130_s5 + $0x14] ss:$8 sps:$4 sm:$0xff]  }
 0x39e   :  { %v3834_v44 = vrot.slane %v3642_v16, 2  ;;  %v3688_v24 = vrot.slane %v3640_v48, 1  ;;  %v3832_v2 = vrot.slane %v3640_v48, 2  ;;  %v3595_v21 = vadd.f32 %v8466_v59, %v3547_v31  ;;  %4275 = vmatprep.subr.bf16.mxu0 %v5669_v13 }
 0x39f   :  { %v8520_v47 = vmax.f32 %v3597_v6, 0.0  ;;  %v4029_v14 = vmax.f32 %v4027_v51, %v4028_v40  ;;  %v4030_v33 = vsel %vm927_vm2, %v3926_v30, -inf  ;;  %v3771_v50 = vsel %vm806_vm1, %v3689_v3, %v3690_v0  ;;  %v5580_v28 = vpop.f32.mrf.mxu1  ;;  %v9398_v51 = vld [vmem:[#allocation17_spill] sm:$0xff]  ;;  %4276 = vmatpush1.bf16.msra.mxu0 %v5667_v63 }
 0x3a0   :  { %v3915_v4 = vsel %vm2233_vm3, %v3833_v10, %v3834_v44  ;;  %v3785_v43 = vmax.f32 %v8492_v45, %v3771_v50  ;;  %v3773_v40 = vsel %vm806_vm1, %v3687_v35, %v3688_v24  ;;  %v3917_v3 = vsel %vm2233_vm3, %v3831_v42, %v3832_v2 }
 0x3a1   :  { %v3693_v48 = vrot.slane %v8520_v47, 1  ;;  %v4031_v10 = vmax.f32 %v4029_v14, %v4030_v33  ;;  %v3783_v62 = vmax.f32 %v3639_v52, %v3773_v40  ;;  %v3837_v23 = vrot.slane %v8520_v47, 2  ;;  %v3396_v55 = vpop.f32.mrf.mxu1 }
 0x3a2   :  { %v3643_v6 = vmax.f32 %v3595_v21, 0.0  ;;  %v3929_v31 = vmax.f32 %v3785_v43, %v3915_v4  ;;  %v3550_v30 = vadd.f32 %v5577_v25, %v9398_v51  ;;  %v3548_v45 = vadd.f32 %v3383_v54, %v9399_v29 }
 0x3a3   :  { %v3553_v50 = vadd.f32 %v5580_v28, %v8356_v20  ;;  %v3927_v35 = vmax.f32 %v3783_v62, %v3917_v3  ;;  %v3551_v2 = vadd.f32 %v3396_v55, %v8365_v32  ;;  %v5581_v14 = vpop.f32.mrf.mxu1 }
 0x3a4   :  { %v3691_v24 = vrot.slane %v3643_v6, 1  ;;  %v3835_v42 = vrot.slane %v3643_v6, 2  ;;  %v8546_v52 = vsel %vm927_vm2, %v3929_v31, -inf  ;;  %v3598_v21 = vadd.f32 %v8466_v59, %v3550_v30 }
 0x3a5   :  { %v3596_v33 = vadd.f32 %v8466_v59, %v3548_v45  ;;  %v3601_v25 = vadd.f32 %v8466_v59, %v3553_v50  ;;  %v3981_v29 = vsel %vm3975_vm5, %v3927_v35, 0.0  ;;  %v3599_v32 = vadd.f32 %v8466_v59, %v3551_v2  ;;  %v3399_v4 = vpop.f32.mrf.mxu1 }
 0x3a6   :  { %v3770_v20 = vsel %vm806_vm1, %v3690_v0, %v3691_v24  ;;  %v3914_v54 = vsel %vm2233_vm3, %v3834_v44, %v3835_v42  ;;  %v4032_v28 = vsel %vm927_vm2, %v3981_v29, -inf  ;;  %v3646_v13 = vmax.f32 %v3598_v21, 0.0 }
 0x3a7   :  { %v3786_v63 = vmax.f32 %v3642_v16, %v3770_v20  ;;  %v3644_v43 = vmax.f32 %v3596_v33, 0.0  ;;  %v4033_v40 = vmax.f32 %v4031_v10, %v4032_v28  ;;  %v8559_v3 = vmax.f32 %v3601_v25, 0.0  ;;  %v5584_v31 = vpop.f32.mrf.mxu1 }
 0x3a8   :  { %v8561_v62 = vmax.f32 %v3599_v32, 0.0  ;;  %v3554_v55 = vadd.f32 %v5581_v14, %v8369_v53  ;;  %v3694_v51 = vrot.slane %v3646_v13, 1  ;;  %v3838_v30 = vrot.slane %v3646_v13, 2 }
 0x3a9   :  { %v3930_v0 = vmax.f32 %v3786_v63, %v3914_v54  ;;  %v3692_v44 = vrot.slane %v3644_v43, 1  ;;  %v4035_v45 = vmax.f32 %v4033_v40, %v8361_v22  ;;  %v3836_v50 = vrot.slane %v3644_v43, 2  ;;  %v3412_v2 = vpop.f32.mrf.mxu1 }
 0x3aa   :  { %v3697_v35 = vrot.slane %v8559_v3, 1  ;;  %v3841_v16 = vrot.slane %v8559_v3, 2  ;;  %v3767_v21 = vsel %vm806_vm1, %v3693_v48, %v3694_v51  ;;  %v3911_v53 = vsel %vm2233_vm3, %v3837_v23, %v3838_v30 }
 0x3ab   :  { %v4043_v10 = vsel %vm927_vm2, %v3930_v0, -inf  ;;  %v3768_v14 = vsel %vm806_vm1, %v3692_v44, %v3693_v48  ;;  %v4036_v33 = vrot.slane %v4035_v45, 4  ;;  %v3789_v29 = vmax.f32 %v8520_v47, %v3767_v21  ;;  %v5585_v54 = vpop.f32.mrf.mxu1 }
 0x3ac   :  { %v4044_v25 = vmax.f32 %v8546_v52, %v4043_v10  ;;  %v3769_v20 = vsel %vm806_vm1, %v3691_v24, %v3692_v44  ;;  %v3788_v28 = vmax.f32 %v3644_v43, %v3768_v14  ;;  %v3912_v63 = vsel %vm2233_vm3, %v3836_v50, %v3837_v23  ;;  %v5670_v23 = vld [vmem:[%s9130_s5] ss:$8 sps:$4 sm:$0xff]  }
 0x3ad   :  { %v3787_v32 = vmax.f32 %v3643_v6, %v3769_v20  ;;  %v3913_v13 = vsel %vm2233_vm3, %v3835_v42, %v3836_v50  ;;  %v4037_v40 = vmax.f32 %v4035_v45, %v4036_v33  ;;  %v3933_v0 = vmax.f32 %v3789_v29, %v3911_v53  ;;  %v8584_v51 = vpop.f32.mrf.mxu1  ;;  %v5672_v42 = vld [vmem:[%s9130_s5 + $0x4] ss:$8 sps:$4 sm:$0xff]  }
 0x3ae   :  { %v3695_v48 = vrot.slane %v8561_v62, 1  ;;  %v3839_v52 = vrot.slane %v8561_v62, 2  ;;  %v3932_v30 = vmax.f32 %v3788_v28, %v3912_v63  ;;  %v3602_v24 = vadd.f32 %v8466_v59, %v3554_v55  ;;  %4277 = vmatprep.subr.bf16.mxu0 %v5672_v42  ;;  %v5675_v42 = vld [vmem:[%s9131_s7 + $0x74] ss:$8 sps:$4 sm:$0xff]  }
 0x3af   :  { %v3931_v47 = vmax.f32 %v3787_v32, %v3913_v13  ;;  %v3552_v6 = vadd.f32 %v3399_v4, %v8373_v60  ;;  %v4038_v43 = vrot.slane %v4037_v40, 2  ;;  %v3987_v44 = vsel %vm3975_vm5, %v3933_v0, 0.0  ;;  %v8598_v10 = vpop.f32.mrf.mxu1  ;;  %4278 = vmatpush1.bf16.msra.mxu0 %v5670_v23 }
 0x3b0   :  { %v3557_v45 = vadd.f32 %v5584_v31, %v8377_v15  ;;  %v3555_v50 = vadd.f32 %v3412_v2, %v8381_v19  ;;  %v4049_v60 = vsel %vm927_vm2, %v3987_v44, -inf  ;;  %v4047_v55 = vsel %vm927_vm2, %v3932_v30, -inf  ;;  %4512 = vmatprep.subr.bf16.mxu0 %v5675_v42 }
 0x3b1   :  { %v4045_v4 = vsel %vm927_vm2, %v3931_v47, -inf  ;;  %v8603_v21 = vmax.f32 %v3602_v24, 0.0  ;;  %v4039_v53 = vmax.f32 %v4037_v40, %v4038_v43  ;;  %v3600_v33 = vadd.f32 %v8466_v59, %v3552_v6  ;;  %v8607_v15 = vpop.f32.mrf.mxu1 }
 0x3b2   :  { %v4046_v14 = vmax.f32 %v4044_v25, %v4045_v4  ;;  %v3605_v29 = vadd.f32 %v8466_v59, %v3557_v45  ;;  %v3603_v2 = vadd.f32 %v8466_v59, %v3555_v50  ;;  %v3558_v20 = vadd.f32 %v5585_v54, %v8385_v11 }
 0x3b3   :  { %v3698_v19 = vrot.slane %v8603_v21, 1  ;;  %v3842_v31 = vrot.slane %v8603_v21, 2  ;;  %v4040_v32 = vrot.slane %v4039_v53, 1  ;;  %v3648_v63 = vmax.f32 %v3600_v33, 0.0  ;;  %v5589_v25 = vpop.f32.mrf.mxu1 }
 0x3b4   :  { %v4048_v28 = vmax.f32 %v4046_v14, %v4047_v55  ;;  %v8613_v13 = vmax.f32 %v3605_v29, 0.0  ;;  %v8623_v47 = vmax.f32 %v3603_v2, 0.0  ;;  %v3606_v11 = vadd.f32 %v8466_v59, %v3558_v20 }
 0x3b5   :  { %v3763_v40 = vsel %vm806_vm1, %v3697_v35, %v3698_v19  ;;  %v3907_v0 = vsel %vm2233_vm3, %v3841_v16, %v3842_v31  ;;  %v4041_v54 = vmax.f32 %v4039_v53, %v4040_v32  ;;  %v3696_v6 = vrot.slane %v3648_v63, 1  ;;  %v8627_v23 = vpop.f32.mrf.mxu1 }
 0x3b6   :  { %v4050_v30 = vmax.f32 %v4048_v28, %v4049_v60  ;;  %v3793_v24 = vmax.f32 %v8559_v3, %v3763_v40  ;;  %v3840_v43 = vrot.slane %v3648_v63, 2  ;;  %v3701_v44 = vrot.slane %v8613_v13, 1 }
 0x3b7   :  { %v3845_v45 = vrot.slane %v8613_v13, 2  ;;  %v3699_v50 = vrot.slane %v8623_v47, 1  ;;  %v4161_v4 = vpack.c.bf16 %v4041_v54, %v4041_v54  ;;  %v3764_v53 = vsel %vm806_vm1, %v3696_v6, %v3697_v35  ;;  %v8640_v14 = vpop.f32.mrf.mxu1 }
 0x3b8   :  { %v4052_v55 = vmax.f32 %v4050_v30, %v8361_v22  ;;  %v3937_v60 = vmax.f32 %v3793_v24, %v3907_v0  ;;  %v3765_v33 = vsel %vm806_vm1, %v3695_v48, %v3696_v6  ;;  %v3792_v29 = vmax.f32 %v3648_v63, %v3764_v53 }
 0x3b9   :  { %v3908_v2 = vsel %vm2233_vm3, %v3840_v43, %v3841_v16  ;;  %v3909_v20 = vsel %vm2233_vm3, %v3839_v52, %v3840_v43  ;;  %v8650_v32 = vunpack.c.l.b16 %v4161_v4  ;;  %v3791_v40 = vmax.f32 %v8561_v62, %v3765_v33  ;;  %v3444_v0 = vpop.f32.mrf.mxu1 }
 0x3ba   :  { %v4053_v28 = vrot.slane %v4052_v55, 4  ;;  %v4062_v35 = vsel %vm927_vm2, %v3937_v60, -inf  ;;  %v3936_v54 = vmax.f32 %v3792_v29, %v3908_v2  ;;  %v3762_v48 = vsel %vm806_vm1, %v3698_v19, %v3699_v50 }
 0x3bb   :  { %v3843_v3 = vrot.slane %v8623_v47, 2  ;;  %v8657_v63 = vmax.f32 %v3606_v11, 0.0  ;;  %v3935_v30 = vmax.f32 %v3791_v40, %v3909_v20  ;;  %v3794_v52 = vmax.f32 %v8603_v21, %v3762_v48  ;;  %v8662_v6 = vpop.f32.mrf.mxu1 }
 0x3bc   :  { %v4054_v16 = vmax.f32 %v4052_v55, %v4053_v28  ;;  %v3556_v24 = vadd.f32 %v8584_v51, %v8389_v9  ;;  %v4060_v62 = vsel %vm927_vm2, %v3936_v54, -inf  ;;  %v3561_v53 = vadd.f32 %v8598_v10, %v8393_v36 }
 0x3bd   :  { %v3906_v42 = vsel %vm2233_vm3, %v3842_v31, %v3843_v3  ;;  %v3702_v19 = vrot.slane %v8657_v63, 1  ;;  %v3846_v43 = vrot.slane %v8657_v63, 2  ;;  %v4059_v4 = vsel %vm927_vm2, %v3935_v30, -inf  ;;  %v8671_v60 = vpop.f32.mrf.mxu1 }
 0x3be   :  { %v4055_v11 = vrot.slane %v4054_v16, 2  ;;  %v3938_v55 = vmax.f32 %v3794_v52, %v3906_v42  ;;  %v3604_v21 = vadd.f32 %v8466_v59, %v3556_v24  ;;  %v4061_v9 = vmax.f32 %v4059_v4, %v4060_v62 }
 0x3bf   :  { %v3759_v51 = vsel %vm806_vm1, %v3701_v44, %v3702_v19  ;;  %v3903_v31 = vsel %vm2233_vm3, %v3845_v45, %v3846_v43  ;;  %v8681_v28 = vpop.f32.mrf.mxu1  ;;  %v3609_v54 = vadd.f32 %v8466_v59, %v3561_v53  ;;  %v3559_v44 = vadd.f32 %v8607_v15, %v8397_v49 }
 0x3c0   :  { %v4056_v33 = vmax.f32 %v4054_v16, %v4055_v11  ;;  %v4064_v29 = vsel %vm927_vm2, %v3938_v55, -inf  ;;  %v3797_v2 = vmax.f32 %v8613_v13, %v3759_v51  ;;  %v3652_v20 = vmax.f32 %v3604_v21, 0.0 }
 0x3c1   :  { %v4063_v40 = vmax.f32 %v4061_v9, %v4062_v35  ;;  %v3562_v48 = vadd.f32 %v5589_v25, %v8401_v41  ;;  %v8687_v10 = vpop.f32.mrf.mxu1  ;;  %v3657_v24 = vmax.f32 %v3609_v54, 0.0  ;;  %v3607_v13 = vadd.f32 %v8466_v59, %v3559_v44 }
 0x3c2   :  { %v4057_v45 = vrot.slane %v4056_v33, 1  ;;  %v3941_v30 = vmax.f32 %v3797_v2, %v3903_v31  ;;  %v3700_v52 = vrot.slane %v3652_v20, 1  ;;  %v3844_v36 = vrot.slane %v3652_v20, 2 }
 0x3c3   :  { %v4065_v16 = vmax.f32 %v4063_v40, %v4064_v29  ;;  %v3610_v62 = vadd.f32 %v8466_v59, %v3562_v48  ;;  %v8698_v15 = vpop.f32.mrf.mxu1  ;;  %v3705_v11 = vrot.slane %v3657_v24, 1  ;;  %v3849_v4 = vrot.slane %v3657_v24, 2 }
 0x3c4   :  { %v4058_v35 = vmax.f32 %v4056_v33, %v4057_v45  ;;  %v8692_v42 = vsel %vm927_vm2, %v3941_v30, -inf  ;;  %v3761_v49 = vsel %vm806_vm1, %v3699_v50, %v3700_v52  ;;  %v3905_v41 = vsel %vm2233_vm3, %v3843_v3, %v3844_v36 }
 0x3c5   :  { %v3795_v25 = vmax.f32 %v8623_v47, %v3761_v49  ;;  %v3655_v55 = vmax.f32 %v3607_v13, 0.0  ;;  %v3658_v9 = vmax.f32 %v3610_v62, 0.0  ;;  %v3560_v51 = vadd.f32 %v8627_v23, %v8405_v37  ;;  %v8705_v53 = vpop.f32.mrf.mxu1  ;;  %v9400_v13 = vld [vmem:[#allocation19_spill] sm:$0xff] }
 0x3c6   :  { %v4162_v21 = vpack.c.bf16 %v4058_v35, %v4058_v35  ;;  %v3565_v31 = vadd.f32 %v8640_v14, %v8410_v17  ;;  %v3563_v29 = vadd.f32 %v3444_v0, %v8414_v56  ;;  %v3566_v62 = vadd.f32 %v8662_v6, %v9400_v13 }
 0x3c7   :  { %v3939_v50 = vmax.f32 %v3795_v25, %v3905_v41  ;;  %v3703_v33 = vrot.slane %v3655_v55, 1  ;;  %v3847_v3 = vrot.slane %v3655_v55, 2  ;;  %v3706_v47 = vrot.slane %v3658_v9, 1  ;;  %v8724_v48 = vpop.f32.mrf.mxu1 }
 0x3c8   :  { %v4198_v2 = vunpack.c.l.b16 %v4162_v21  ;;  %v3850_v20 = vrot.slane %v3658_v9, 2  ;;  %v3608_v40 = vadd.f32 %v8466_v59, %v3560_v51  ;;  %v3613_v23 = vadd.f32 %v8466_v59, %v3565_v31 }
 0x3c9   :  { %v3993_v54 = vsel %vm3975_vm5, %v3939_v50, 0.0  ;;  %v3758_v37 = vsel %vm806_vm1, %v3702_v19, %v3703_v33  ;;  %v3902_v17 = vsel %vm2233_vm3, %v3846_v43, %v3847_v3  ;;  %v3755_v44 = vsel %vm806_vm1, %v3705_v11, %v3706_v47  ;;  %v8739_v9 = vpop.f32.mrf.mxu1 }
 0x3ca   :  { %v8718_v14 = vsel %vm4205_vm6, %v4198_v2, %v8650_v32  ;;  %v4066_v56 = vsel %vm927_vm2, %v3993_v54, -inf  ;;  %v3798_v0 = vmax.f32 %v8657_v63, %v3758_v37  ;;  %v3801_v19 = vmax.f32 %v3657_v24, %v3755_v44 }
 0x3cb   :  { %v4067_v45 = vmax.f32 %v4065_v16, %v4066_v56  ;;  %v3899_v43 = vsel %vm2233_vm3, %v3849_v4, %v3850_v20  ;;  %v3656_v30 = vmax.f32 %v3608_v40, 0.0  ;;  %v8728_v36 = vmax.f32 %v3613_v23, 0.0  ;;  %v9401_v56 = vld [vmem:[#allocation21_spill] sm:$0xff] }
 0x3cc   :  { %v3942_v52 = vmax.f32 %v3798_v0, %v3902_v17  ;;  %v3611_v32 = vadd.f32 %v8466_v59, %v3563_v29  ;;  %v3945_v35 = vmax.f32 %v3801_v19, %v3899_v43  ;;  %v3564_v0 = vadd.f32 %v8671_v60, %v9401_v56 }
 0x3cd   :  { %v4069_v63 = vmax.f32 %v4067_v45, %v8361_v22  ;;  %v3704_v49 = vrot.slane %v3656_v30, 1  ;;  %v3848_v41 = vrot.slane %v3656_v30, 2  ;;  %v3709_v24 = vrot.slane %v8728_v36, 1 }
 0x3ce   :  { %v4077_v16 = vsel %vm927_vm2, %v3942_v52, -inf  ;;  %v3853_v25 = vrot.slane %v8728_v36, 2  ;;  %v8737_v21 = vmax.f32 %v3611_v32, 0.0  ;;  %v3999_v6 = vsel %vm3975_vm5, %v3945_v35, 0.0 }
 0x3cf   :  { %v4070_v51 = vrot.slane %v4069_v63, 4  ;;  %v4078_v31 = vmax.f32 %v8692_v42, %v4077_v16  ;;  %v3756_v50 = vsel %vm806_vm1, %v3704_v49, %v3705_v11  ;;  %v4083_v29 = vsel %vm927_vm2, %v3999_v6, -inf }
 0x3d0   :  { %v3757_v2 = vsel %vm806_vm1, %v3703_v33, %v3704_v49  ;;  %v3800_v47 = vmax.f32 %v3656_v30, %v3756_v50  ;;  %v3900_v20 = vsel %vm2233_vm3, %v3848_v41, %v3849_v4  ;;  %v3901_v42 = vsel %vm2233_vm3, %v3847_v3, %v3848_v41  ;;  %v8758_v33 = vpop.f32.mrf.mxu1 }
 0x3d1   :  { %v4071_v40 = vmax.f32 %v4069_v63, %v4070_v51  ;;  %v3799_v54 = vmax.f32 %v3655_v55, %v3757_v2  ;;  %v3707_v37 = vrot.slane %v8737_v21, 1  ;;  %v3851_v23 = vrot.slane %v8737_v21, 2  ;;  %v9402_v55 = vld [vmem:[#allocation20_spill] sm:$0xff] }
 0x3d2   :  { %v3944_v17 = vmax.f32 %v3800_v47, %v3900_v20  ;;  %v3614_v11 = vadd.f32 %v8466_v59, %v3566_v62  ;;  %v3569_v4 = vadd.f32 %v8681_v28, %v8426_v57  ;;  %v3567_v3 = vadd.f32 %v8687_v10, %v9402_v55  ;;  %v8771_v35 = vpop.f32.mrf.mxu1 }
 0x3d3   :  { %v4072_v44 = vrot.slane %v4071_v40, 2  ;;  %v3943_v45 = vmax.f32 %v3799_v54, %v3901_v42  ;;  %v3612_v30 = vadd.f32 %v8466_v59, %v3564_v0  ;;  %v3570_v52 = vadd.f32 %v8698_v15, %v8436_v26 }
 0x3d4   :  { %v4081_v19 = vsel %vm927_vm2, %v3944_v17, -inf  ;;  %v3662_v43 = vmax.f32 %v3614_v11, 0.0  ;;  %v3617_v13 = vadd.f32 %v8466_v59, %v3569_v4  ;;  %v3615_v62 = vadd.f32 %v8466_v59, %v3567_v3  ;;  %v5604_v11 = vpop.f32.mrf.mxu1 }
 0x3d5   :  { %v4073_v60 = vmax.f32 %v4071_v40, %v4072_v44  ;;  %v4079_v32 = vsel %vm927_vm2, %v3943_v45, -inf  ;;  %v3660_v10 = vmax.f32 %v3612_v30, 0.0  ;;  %v3618_v51 = vadd.f32 %v8466_v59, %v3570_v52 }
 0x3d6   :  { %v4080_v57 = vmax.f32 %v4078_v31, %v4079_v32  ;;  %v3710_v28 = vrot.slane %v3662_v43, 1  ;;  %v3854_v63 = vrot.slane %v3662_v43, 2  ;;  %v3665_v41 = vmax.f32 %v3617_v13, 0.0  ;;  %v8798_v32 = vpop.f32.mrf.mxu1 }
 0x3d7   :  { %v4074_v49 = vrot.slane %v4073_v60, 1  ;;  %v8773_v16 = vmax.f32 %v3615_v62, 0.0  ;;  %v3708_v50 = vrot.slane %v3660_v10, 1  ;;  %v3852_v47 = vrot.slane %v3660_v10, 2 }
 0x3d8   :  { %v4082_v26 = vmax.f32 %v4080_v57, %v4081_v19  ;;  %v3751_v15 = vsel %vm806_vm1, %v3709_v24, %v3710_v28  ;;  %v3895_v6 = vsel %vm2233_vm3, %v3853_v25, %v3854_v63  ;;  %v3713_v20 = vrot.slane %v3665_v41, 1 }
 0x3d9   :  { %v4075_v31 = vmax.f32 %v4073_v60, %v4074_v49  ;;  %v3805_v2 = vmax.f32 %v8728_v36, %v3751_v15  ;;  %v3752_v54 = vsel %vm806_vm1, %v3708_v50, %v3709_v24  ;;  %v3753_v42 = vsel %vm806_vm1, %v3707_v37, %v3708_v50 }
 0x3da   :  { %v4084_v40 = vmax.f32 %v4082_v26, %v4083_v29  ;;  %v3857_v17 = vrot.slane %v3665_v41, 2  ;;  %v3803_v44 = vmax.f32 %v8737_v21, %v3753_v42  ;;  %v3804_v45 = vmax.f32 %v3660_v10, %v3752_v54 }
 0x3db   :  { %v4163_v56 = vpack.c.bf16 %v4075_v31, %v4075_v31  ;;  %v3949_v0 = vmax.f32 %v3805_v2, %v3895_v6  ;;  %v3896_v36 = vsel %vm2233_vm3, %v3852_v47, %v3853_v25  ;;  %v3897_v29 = vsel %vm2233_vm3, %v3851_v23, %v3852_v47 }
 0x3dc   :  { %v4086_v4 = vmax.f32 %v4084_v40, %v8361_v22  ;;  %v3711_v24 = vrot.slane %v8773_v16, 1  ;;  %v3947_v3 = vmax.f32 %v3803_v44, %v3897_v29  ;;  %v3948_v19 = vmax.f32 %v3804_v45, %v3896_v36 }
 0x3dd   :  { %v4199_v55 = vunpack.c.l.b16 %v4163_v56  ;;  %v4096_v37 = vsel %vm927_vm2, %v3949_v0, -inf  ;;  %v3855_v52 = vrot.slane %v8773_v16, 2  ;;  %v8796_v60 = vmax.f32 %v3618_v51, 0.0 }
 0x3de   :  { %v4087_v30 = vrot.slane %v4086_v4, 4  ;;  %v3750_v21 = vsel %vm806_vm1, %v3710_v28, %v3711_v24  ;;  %v4093_v23 = vsel %vm927_vm2, %v3947_v3, -inf  ;;  %v4094_v13 = vsel %vm927_vm2, %v3948_v19, -inf }
 0x3df   :  { %v8802_v25 = vsel %vm4207_vm7, %v4199_v55, %v8718_v14  ;;  %v3806_v62 = vmax.f32 %v3662_v43, %v3750_v21  ;;  %v4095_v10 = vmax.f32 %v4093_v23, %v4094_v13  ;;  %v3894_v28 = vsel %vm2233_vm3, %v3854_v63, %v3855_v52  ;;  %v8818_v63 = vpop.f32.mrf.mxu1 }
 0x3e0   :  { %v4088_v57 = vmax.f32 %v4086_v4, %v4087_v30  ;;  %v3714_v49 = vrot.slane %v8796_v60, 1  ;;  %v3858_v26 = vrot.slane %v8796_v60, 2  ;;  %v3568_v15 = vadd.f32 %v8705_v53, %v8439_v61 }
 0x3e1   :  { %v3950_v51 = vmax.f32 %v3806_v62, %v3894_v28  ;;  %v3573_v14 = vadd.f32 %v8724_v48, %v8441_v34  ;;  %v4097_v50 = vmax.f32 %v4095_v10, %v4096_v37  ;;  %v3571_v31 = vadd.f32 %v8739_v9, %v8443_v5  ;;  %v3495_v44 = vpop.f32.mrf.mxu1 }
 0x3e2   :  { %v4089_v6 = vrot.slane %v4088_v57, 2  ;;  %v3747_v43 = vsel %vm806_vm1, %v3713_v20, %v3714_v49  ;;  %v3891_v61 = vsel %vm2233_vm3, %v3857_v17, %v3858_v26  ;;  %v3616_v53 = vadd.f32 %v8466_v59, %v3568_v15 }
 0x3e3   :  { %v4098_v2 = vsel %vm927_vm2, %v3950_v51, -inf  ;;  %v3809_v47 = vmax.f32 %v3665_v41, %v3747_v43  ;;  %v3621_v40 = vadd.f32 %v8466_v59, %v3573_v14  ;;  %v3619_v20 = vadd.f32 %v8466_v59, %v3571_v31  ;;  %v5608_v23 = vpop.f32.mrf.mxu1 }
 0x3e4   :  { %v4090_v34 = vmax.f32 %v4088_v57, %v4089_v6  ;;  %v4099_v48 = vmax.f32 %v4097_v50, %v4098_v2  ;;  %v3664_v42 = vmax.f32 %v3616_v53, 0.0  ;;  %v3574_v5 = vadd.f32 %v8758_v33, %v8445_v7 }
 0x3e5   :  { %v3953_v54 = vmax.f32 %v3809_v47, %v3891_v61  ;;  %v3572_v9 = vadd.f32 %v8771_v35, %v8447_v39  ;;  %v3669_v56 = vmax.f32 %v3621_v40, 0.0  ;;  %v3667_v0 = vmax.f32 %v3619_v20, 0.0  ;;  %v3508_v43 = vpop.f32.mrf.mxu1 }
 0x3e6   :  { %v4091_v41 = vrot.slane %v4090_v34, 1  ;;  %v3577_v17 = vadd.f32 %v5604_v11, %v8451_v8  ;;  %v3712_v4 = vrot.slane %v3664_v42, 1  ;;  %v3856_v36 = vrot.slane %v3664_v42, 2 }
 0x3e7   :  { %v8832_v45 = vsel %vm927_vm2, %v3953_v54, -inf  ;;  %v3622_v29 = vadd.f32 %v8466_v59, %v3574_v5  ;;  %v3717_v37 = vrot.slane %v3669_v56, 1  ;;  %v3861_v3 = vrot.slane %v3669_v56, 2 }
 0x3e8   :  { %v4092_v55 = vmax.f32 %v4090_v34, %v4091_v41  ;;  %v3715_v7 = vrot.slane %v3667_v0, 1  ;;  %v3749_v39 = vsel %vm806_vm1, %v3711_v24, %v3712_v4  ;;  %v3893_v33 = vsel %vm2233_vm3, %v3855_v52, %v3856_v36  ;;  %v5609_v41 = vpop.f32.mrf.mxu1 }
 0x3e9   :  { %v3859_v35 = vrot.slane %v3667_v0, 2  ;;  %v3670_v8 = vmax.f32 %v3622_v29, 0.0  ;;  %v3807_v19 = vmax.f32 %v8773_v16, %v3749_v39  ;;  %v3620_v21 = vadd.f32 %v8466_v59, %v3572_v9 }
 0x3ea   :  { %v4164_v11 = vpack.c.bf16 %v4092_v55, %v4092_v55  ;;  %v3746_v30 = vsel %vm806_vm1, %v3714_v49, %v3715_v7  ;;  %v3625_v51 = vadd.f32 %v8466_v59, %v3577_v17  ;;  %v3578_v55 = vadd.f32 %v8818_v63, %v8455_v1 }
 0x3eb   :  { %v3810_v13 = vmax.f32 %v8796_v60, %v3746_v30  ;;  %v3890_v62 = vsel %vm2233_vm3, %v3858_v26, %v3859_v35  ;;  %v3718_v24 = vrot.slane %v3670_v8, 1  ;;  %v3862_v57 = vrot.slane %v3670_v8, 2 }
 0x3ec   :  { %v4200_v10 = vunpack.c.l.b16 %v4164_v11  ;;  %v3951_v52 = vmax.f32 %v3807_v19, %v3893_v33  ;;  %v3668_v28 = vmax.f32 %v3620_v21, 0.0  ;;  %v3575_v60 = vadd.f32 %v8798_v32, %v8453_v12  ;;  %v3511_v19 = vpop.f32.mrf.mxu1 }
 0x3ed   :  { %v3954_v15 = vmax.f32 %v3810_v13, %v3890_v62  ;;  %v3743_v16 = vsel %vm806_vm1, %v3717_v37, %v3718_v24  ;;  %v3887_v49 = vsel %vm2233_vm3, %v3861_v3, %v3862_v57  ;;  %v8861_v61 = vmax.f32 %v3625_v51, 0.0  ;;  %v9403_v62 = vld [vmem:[#allocation25_spill] sm:$0xff]  ;;  %v9404_v57 = vld [vmem:[#allocation22_spill] sm:$0xff] }
 0x3ee   :  { %v8855_v26 = vsel %vm4209_vm8, %v4200_v10, %v8802_v25  ;;  %v4005_v14 = vsel %vm3975_vm5, %v3951_v52, 0.0  ;;  %v3813_v6 = vmax.f32 %v3669_v56, %v3743_v16  ;;  %v3716_v50 = vrot.slane %v3668_v28, 1 }
 0x3ef   :  { %v4100_v31 = vsel %vm927_vm2, %v4005_v14, -inf  ;;  %v4111_v2 = vsel %vm927_vm2, %v3954_v15, -inf  ;;  %v3860_v47 = vrot.slane %v3668_v28, 2  ;;  %v3721_v9 = vrot.slane %v8861_v61, 1 }
 0x3f0   :  { %v4101_v53 = vmax.f32 %v4099_v48, %v4100_v31  ;;  %v4112_v12 = vmax.f32 %v8832_v45, %v4111_v2  ;;  %v3957_v32 = vmax.f32 %v3813_v6, %v3887_v49  ;;  %v3744_v25 = vsel %vm806_vm1, %v3716_v50, %v3717_v37  ;;  %v5612_v6 = vpop.f32.mrf.mxu1 }
 0x3f1   :  { %v3745_v34 = vsel %vm806_vm1, %v3715_v7, %v3716_v50  ;;  %v3812_v40 = vmax.f32 %v3668_v28, %v3744_v25  ;;  %v3888_v20 = vsel %vm2233_vm3, %v3860_v47, %v3861_v3  ;;  %v3889_v54 = vsel %vm2233_vm3, %v3859_v35, %v3860_v47 }
 0x3f2   :  { %v4103_v42 = vmax.f32 %v4101_v53, %v8361_v22  ;;  %v4011_v48 = vsel %vm3975_vm5, %v3957_v32, 0.0  ;;  %v3811_v5 = vmax.f32 %v3667_v0, %v3745_v34  ;;  %v3865_v45 = vrot.slane %v8861_v61, 2 }
 0x3f3   :  { %v4117_v56 = vsel %vm927_vm2, %v4011_v48, -inf  ;;  %v3956_v17 = vmax.f32 %v3812_v40, %v3888_v20  ;;  %v3623_v4 = vadd.f32 %v8466_v59, %v3575_v60  ;;  %v3576_v37 = vadd.f32 %v3495_v44, %v8457_v46 }
 0x3f4   :  { %v4104_v36 = vrot.slane %v4103_v42, 4  ;;  %v3955_v29 = vmax.f32 %v3811_v5, %v3889_v54  ;;  %v3581_v7 = vadd.f32 %v5608_v23, %v8459_v18  ;;  %v3579_v39 = vadd.f32 %v3508_v43, %v8461_v58  ;;  %v3524_v5 = vpop.f32.mrf.mxu1 }
 0x3f5   :  { %v4115_v3 = vsel %vm927_vm2, %v3956_v17, -inf  ;;  %v3671_v0 = vmax.f32 %v3623_v4, 0.0  ;;  %v3626_v8 = vadd.f32 %v8466_v59, %v3578_v55  ;;  %v3624_v11 = vadd.f32 %v8466_v59, %v3576_v37 }
 0x3f6   :  { %v4105_v33 = vmax.f32 %v4103_v42, %v4104_v36  ;;  %v4113_v35 = vsel %vm927_vm2, %v3955_v29, -inf  ;;  %v3629_v46 = vadd.f32 %v8466_v59, %v3581_v7  ;;  %v3627_v18 = vadd.f32 %v8466_v59, %v3579_v39 }
 0x3f7   :  { %v4114_v30 = vmax.f32 %v4112_v12, %v4113_v35  ;;  %v3719_v21 = vrot.slane %v3671_v0, 1  ;;  %v3863_v1 = vrot.slane %v3671_v0, 2  ;;  %v3674_v44 = vmax.f32 %v3626_v8, 0.0  ;;  %v5613_v8 = vpop.f32.mrf.mxu1 }
 0x3f8   :  { %v4106_v63 = vrot.slane %v4105_v33, 2  ;;  %v3672_v13 = vmax.f32 %v3624_v11, 0.0  ;;  %v8890_v23 = vmax.f32 %v3629_v46, 0.0  ;;  %v3582_v24 = vadd.f32 %v5609_v41, %v9403_v62 }
 0x3f9   :  { %v4116_v58 = vmax.f32 %v4114_v30, %v4115_v3  ;;  %v3580_v10 = vadd.f32 %v3511_v19, %v9404_v57  ;;  %v3722_v28 = vrot.slane %v3674_v44, 1  ;;  %v3866_v51 = vrot.slane %v3674_v44, 2 }
 0x3fa   :  { %v4107_v52 = vmax.f32 %v4105_v33, %v4106_v63  ;;  %v3720_v15 = vrot.slane %v3672_v13, 1  ;;  %v3864_v49 = vrot.slane %v3672_v13, 2  ;;  %v3725_v60 = vrot.slane %v8890_v23, 1 }
 0x3fb   :  { %v4118_v16 = vmax.f32 %v4116_v58, %v4117_v56  ;;  %v3869_v14 = vrot.slane %v8890_v23, 2  ;;  %v3739_v50 = vsel %vm806_vm1, %v3721_v9, %v3722_v28  ;;  %v3883_v43 = vsel %vm2233_vm3, %v3865_v45, %v3866_v51 }
 0x3fc   :  { %v4108_v59 = vrot.slane %v4107_v52, 1  ;;  %v3740_v31 = vsel %vm806_vm1, %v3720_v15, %v3721_v9  ;;  %v3817_v47 = vmax.f32 %v8861_v61, %v3739_v50  ;;  %v3741_v53 = vsel %vm806_vm1, %v3719_v21, %v3720_v15  ;;  %v5748_v61 = vld [vmem:[%s9129_s4] ss:$0 sm:$0xff] }
 0x3fd   :  { %v4120_v2 = vmax.f32 %v4118_v16, %v8361_v22  ;;  %v3816_v12 = vmax.f32 %v3672_v13, %v3740_v31  ;;  %v3815_v25 = vmax.f32 %v3671_v0, %v3741_v53  ;;  %v3884_v34 = vsel %vm2233_vm3, %v3864_v49, %v3865_v45  ;;  %v9406_v50 = vld [vmem:[#allocation26_spill] sm:$0xff] }
 0x3fe   :  { %v4109_v32 = vmax.f32 %v4107_v52, %v4108_v59  ;;  %v3885_v40 = vsel %vm2233_vm3, %v3863_v1, %v3864_v49  ;;  %v3961_v54 = vmax.f32 %v3817_v47, %v3883_v43  ;;  %v3675_v48 = vmax.f32 %v3627_v18, 0.0  ;;  %v9408_v47 = vld [vmem:[#allocation3_spill] sm:$0xff] }
 0x3ff   :  { %v4121_v20 = vrot.slane %v4120_v2, 4  ;;  %v3960_v42 = vmax.f32 %v3816_v12, %v3884_v34  ;;  %v3959_v41 = vmax.f32 %v3815_v25, %v3885_v40  ;;  %v3630_v56 = vadd.f32 %v5748_v61, %v3582_v24  ;;  %v9405_v24 = vld [vmem:[#allocation24_spill] sm:$0xff] }
 0x400   :  { %v4165_v9 = vpack.c.bf16 %v4109_v32, %v4109_v32  ;;  %v3628_v17 = vadd.f32 %v5748_v61, %v3580_v10  ;;  %v4130_v36 = vsel %vm927_vm2, %v3961_v54, -inf  ;;  %v3723_v29 = vrot.slane %v3675_v48, 1 }
 0x401   :  { %v4122_v4 = vmax.f32 %v4120_v2, %v4121_v20  ;;  %v4128_v45 = vsel %vm927_vm2, %v3960_v42, -inf  ;;  %v4127_v37 = vsel %vm927_vm2, %v3959_v41, -inf  ;;  %v3867_v3 = vrot.slane %v3675_v48, 2  ;;  %v9407_v2 = vld [vmem:[#allocation27_spill] sm:$0xff] }
 0x402   :  { %v4201_v55 = vunpack.c.l.b16 %v4165_v9  ;;  %v8916_v0 = vmax.f32 %v3630_v56, 0.0  ;;  %v4129_v39 = vmax.f32 %v4127_v37, %v4128_v45  ;;  %v3738_v33 = vsel %vm806_vm1, %v3722_v28, %v3723_v29  ;;  %v3527_v28 = vpop.f32.mrf.mxu1 }
 0x403   :  { %v4123_v7 = vrot.slane %v4122_v4, 2  ;;  %v3676_v35 = vmax.f32 %v3628_v17, 0.0  ;;  %v3818_v19 = vmax.f32 %v3674_v44, %v3738_v33  ;;  %v3882_v30 = vsel %vm2233_vm3, %v3866_v51, %v3867_v3 }
 0x404   :  { %v4212_v11 = vsel %vm4211_vm9, %v4201_v55, %v8855_v26  ;;  %v3726_v21 = vrot.slane %v8916_v0, 1  ;;  %v4131_v46 = vmax.f32 %v4129_v39, %v4130_v36  ;;  %v3870_v63 = vrot.slane %v8916_v0, 2 }
 0x405   :  { %v4124_v1 = vmax.f32 %v4122_v4, %v4123_v7  ;;  %v3724_v13 = vrot.slane %v3676_v35, 1  ;;  %v3962_v18 = vmax.f32 %v3818_v19, %v3882_v30  ;;  %v3868_v62 = vrot.slane %v3676_v35, 2 }
 0x406   :  { %v3735_v58 = vsel %vm806_vm1, %v3725_v60, %v3726_v21  ;;  %v3585_v57 = vadd.f32 %v5612_v6, %v9405_v24  ;;  %v3879_v44 = vsel %vm2233_vm3, %v3869_v14, %v3870_v63  ;;  %v3583_v43 = vadd.f32 %v3524_v5, %v9406_v50 }
 0x407   :  { %v4125_v10 = vrot.slane %v4124_v1, 1  ;;  %v3821_v26 = vmax.f32 %v8890_v23, %v3735_v58  ;;  %v3737_v52 = vsel %vm806_vm1, %v3723_v29, %v3724_v13  ;;  %v4132_v51 = vsel %vm927_vm2, %v3962_v18, -inf }
 0x408   :  { %v3819_v15 = vmax.f32 %v3675_v48, %v3737_v52  ;;  %v3881_v16 = vsel %vm2233_vm3, %v3867_v3, %v3868_v62  ;;  %v3633_v49 = vadd.f32 %v5748_v61, %v3585_v57  ;;  %v4133_v59 = vmax.f32 %v4131_v46, %v4132_v51 }
 0x409   :  { %v4126_v60 = vmax.f32 %v4124_v1, %v4125_v10  ;;  %v3965_v6 = vmax.f32 %v3821_v26, %v3879_v44  ;;  %v3586_v14 = vadd.f32 %v5613_v8, %v9407_v2  ;;  %v3584_v53 = vadd.f32 %v3527_v28, %v9408_v47 }
 0x40a   :  { %v3963_v23 = vmax.f32 %v3819_v15, %v3881_v16  ;;  %v3681_v31 = vmax.f32 %v3633_v49, 0.0  ;;  %v3631_v32 = vadd.f32 %v5748_v61, %v3583_v43  ;;  %v5751_v40 = vmov 0  }
 0x40b   :  { %v4166_v12 = vpack.c.bf16 %v4126_v60, %v4126_v60  ;;  %v3634_v34 = vadd.f32 %v5748_v61, %v3586_v14  ;;  %4295 = vmatprep.mubr.bf16.mxu0 %v5751_v40  ;;  %v3632_v48 = vadd.f32 %v5748_v61, %v3584_v53  ;;  %v4144_v18 = vsel %vm927_vm2, %v3965_v6, -inf }
 0x40c   :  { %v4017_v25 = vsel %vm3975_vm5, %v3963_v23, 0.0  ;;  %v3679_v42 = vmax.f32 %v3631_v32, 0.0  ;;  %v3729_v9 = vrot.slane %v3681_v31, 1  ;;  %v3873_v29 = vrot.slane %v3681_v31, 2 }
 0x40d   :  { %v4202_v20 = vunpack.c.l.b16 %v4166_v12  ;;  %v4134_v54 = vsel %vm927_vm2, %v4017_v25, -inf  ;;  %v3682_v41 = vmax.f32 %v3634_v34, 0.0  ;;  %v3680_v36 = vmax.f32 %v3632_v48, 0.0  ;;  %v5681_v48 = vld [vmem:[%s9131_s7 + $0x54] ss:$8 sps:$4 sm:$0xff]  }
 0x40e   :  { %v4135_v5 = vmax.f32 %v4133_v59, %v4134_v54  ;;  %v3727_v17 = vrot.slane %v3679_v42, 1  ;;  %v3871_v4 = vrot.slane %v3679_v42, 2 }
 0x40f   :  { %v4214_v56 = vsel %vm4213_vm10, %v4202_v20, %v4212_v11  ;;  %v3730_v55 = vrot.slane %v3682_v41, 1  ;;  %v3874_v37 = vrot.slane %v3682_v41, 2  ;;  %v3728_v39 = vrot.slane %v3680_v36, 1  ;;  %v5673_v20 = vld [vmem:[%s9131_s7 + $0x70] ss:$8 sps:$4 sm:$0xff]  }
 0x410   :  { %v4137_v45 = vmax.f32 %v4135_v5, %v8361_v22  ;;  %v3734_v3 = vsel %vm806_vm1, %v3726_v21, %v3727_v17  ;;  %v3878_v7 = vsel %vm2233_vm3, %v3870_v63, %v3871_v4  ;;  %v3872_v61 = vrot.slane %v3680_v36, 2  ;;  %v5679_v5 = vld [vmem:[%s9131_s7 + $0x50] ss:$8 sps:$4 sm:$0xff]   ;;  %v5682_v41 = vld [vmem:[%s9131_s7 + $0x40] ss:$8 sps:$4 sm:$0xff]  }
 0x411   :  { %v3822_v35 = vmax.f32 %v8916_v0, %v3734_v3  ;;  %v3731_v8 = vsel %vm806_vm1, %v3729_v9, %v3730_v55  ;;  %v3875_v11 = vsel %vm2233_vm3, %v3873_v29, %v3874_v37  ;;  %v3732_v30 = vsel %vm806_vm1, %v3728_v39, %v3729_v9  ;;  %v5684_v9 = vld [vmem:[%s9131_s7 + $0x44] ss:$8 sps:$4 sm:$0xff]   ;;  %v5694_v37 = vld [vmem:[%s9131_s7] ss:$8 sps:$4 sm:$0xff]   ;;  %v5699_v3 = vld [vmem:[%s9131_s7 + $0xf4] ss:$8 sps:$4 sm:$0xff]  }
 0x412   :  { %v4138_v33 = vrot.slane %v4137_v45, 4  ;;  %v3825_v19 = vmax.f32 %v3681_v31, %v3731_v8  ;;  %v3733_v21 = vsel %vm806_vm1, %v3727_v17, %v3728_v39  ;;  %v3876_v1 = vsel %vm2233_vm3, %v3872_v61, %v3873_v29  ;;  %v5685_v17 = vld [vmem:[%s9131_s7 + $0x30] ss:$8 sps:$4 sm:$0xff]   ;;  %v5696_v55 = vld [vmem:[%s9131_s7 + $0x4] ss:$8 sps:$4 sm:$0xff]  }
 0x413   :  { %v3966_v63 = vmax.f32 %v3822_v35, %v3878_v7  ;;  %v3823_v13 = vmax.f32 %v3679_v42, %v3733_v21  ;;  %v3824_v0 = vmax.f32 %v3680_v36, %v3732_v30  ;;  %v3877_v62 = vsel %vm2233_vm3, %v3871_v4, %v3872_v61  ;;  %v5676_v42 = vld [vmem:[%s9131_s7 + $0x60] ss:$8 sps:$4 sm:$0xff]   ;;  %v5690_v4 = vld [vmem:[%s9131_s7 + $0x24] ss:$8 sps:$4 sm:$0xff]   ;;  %v5691_v29 = vld [vmem:[%s9131_s7 + $0x10] ss:$8 sps:$4 sm:$0xff]  }
 0x414   :  { %v4139_v46 = vmax.f32 %v4137_v45, %v4138_v33  ;;  %v3969_v58 = vmax.f32 %v3825_v19, %v3875_v11  ;;  %v5688_v36 = vld [vmem:[%s9131_s7 + $0x20] ss:$8 sps:$4 sm:$0xff]   ;;  %v5693_v45 = vld [vmem:[%s9131_s7 + $0x14] ss:$8 sps:$4 sm:$0xff]   ;;  %v5697_v7 = vld [vmem:[%s9131_s7 + $0xf0] ss:$8 sps:$4 sm:$0xff]  }
 0x415   :  { %v4145_v57 = vsel %vm927_vm2, %v3966_v63, -inf  ;;  %v3967_v10 = vmax.f32 %v3823_v13, %v3877_v62  ;;  %v3968_v26 = vmax.f32 %v3824_v0, %v3876_v1  ;;  %v5702_v39 = vld [vmem:[%s9131_s7 + $0xe4] ss:$8 sps:$4 sm:$0xff]   ;;  %v5700_v61 = vld [vmem:[%s9131_s7 + $0xe0] ss:$8 sps:$4 sm:$0xff]   ;;  %v5723_v62 = vld [vmem:[%s9132_s9 + $0x70] sm:$0xff]  }
 0x416   :  { %v4140_v24 = vrot.slane %v4139_v46, 2  ;;  %v4146_v44 = vmax.f32 %v4144_v18, %v4145_v57  ;;  %v4023_v51 = vsel %vm3975_vm5, %v3969_v58, 0.0  ;;  %v5705_v33 = vld [vmem:[%s9131_s7 + $0xd4] ss:$8 sps:$4 sm:$0xff]   ;;  %v5703_v35 = vld [vmem:[%s9131_s7 + $0xd0] ss:$8 sps:$4 sm:$0xff]  }
 0x417   :  { %v4147_v28 = vsel %vm927_vm2, %v3967_v10, -inf  ;;  %v4149_v49 = vsel %vm927_vm2, %v3968_v26, -inf  ;;  %v4151_v6 = vsel %vm927_vm2, %v4023_v51, -inf  ;;  %v5708_v8 = vld [vmem:[%s9131_s7 + $0xc4] ss:$8 sps:$4 sm:$0xff]   ;;  %v5721_v18 = vld [vmem:[%s9132_s9 + $0x78] sm:$0xff]  }
 0x418   :  { %v4141_v52 = vmax.f32 %v4139_v46, %v4140_v24  ;;  %v4148_v15 = vmax.f32 %v4146_v44, %v4147_v28  ;;  %v5706_v11 = vld [vmem:[%s9131_s7 + $0xc0] ss:$8 sps:$4 sm:$0xff]   ;;  %v5711_v19 = vld [vmem:[%s9131_s7 + $0xb4] ss:$8 sps:$4 sm:$0xff]   ;;  %v5709_v30 = vld [vmem:[%s9131_s7 + $0xb0] ss:$8 sps:$4 sm:$0xff]   ;;  %5192 = vmatprep.subr.bf16.mxu1 %v5721_v18 }
 0x419   :  { %v5714_v21 = vld [vmem:[%s9131_s7 + $0xa4] ss:$8 sps:$4 sm:$0xff]   ;;  %v5712_v1 = vld [vmem:[%s9131_s7 + $0xa0] ss:$8 sps:$4 sm:$0xff]   ;;  %v5715_v46 = vld [vmem:[%s9131_s7 + $0x90] ss:$8 sps:$4 sm:$0xff]  }
 0x41a   :  { %v4142_v16 = vrot.slane %v4141_v52, 1  ;;  %v4150_v60 = vmax.f32 %v4148_v15, %v4149_v49  ;;  %v5717_v63 = vld [vmem:[%s9131_s7 + $0x94] ss:$8 sps:$4 sm:$0xff]   ;;  %v5720_v13 = vld [vmem:[%s9131_s7 + $0x84] ss:$8 sps:$4 sm:$0xff]  }
 0x41b   :  { %v5718_v0 = vld [vmem:[%s9131_s7 + $0x80] ss:$8 sps:$4 sm:$0xff]   ;;  %v5722_v58 = vld [vmem:[%s9132_s9 + $0x38] sm:$0xff]   ;;  %v5724_v24 = vld [vmem:[%s9132_s9 + $0x30] sm:$0xff]  }
 0x41c   :  { %v4143_v59 = vmax.f32 %v4141_v52, %v4142_v16  ;;  %v4152_v50 = vmax.f32 %v4150_v60, %v4151_v6  ;;  %5193 = vmatpush3.bf16.msra.mxu1 %v5722_v58  ;;  %v5725_v57 = vld [vmem:[%s9132_s9 + $0x68] sm:$0xff]   ;;  %v5727_v26 = vld [vmem:[%s9132_s9 + $0x60] sm:$0xff]   ;;  %v5729_v52 = vld [vmem:[%s9132_s9 + $0x58] sm:$0xff]   ;;  %v4181_v6 = vsub.s32 0, %v9392_v27 }
 0x41d   :  { %5194 = vmatprep.subr.bf16.mxu1 %v5723_v62  ;;  %v5726_v10 = vld [vmem:[%s9132_s9 + $0x28] sm:$0xff]   ;;  %v5728_v44 = vld [vmem:[%s9132_s9 + $0x20] sm:$0xff]   ;;  %v5730_v28 = vld [vmem:[%s9132_s9 + $0x18] sm:$0xff]  }
 0x41e   :  { %v4167_v43 = vpack.c.bf16 %v4143_v59, %v4143_v59  ;;  %v4154_v23 = vmax.f32 %v4152_v50, %v8361_v22  ;;  %v5678_v22 = vld [vmem:[%s9131_s7 + $0x64] ss:$8 sps:$4 sm:$0xff]   ;;  %v5731_v51 = vld [vmem:[%s9132_s9 + $0x50] sm:$0xff]   ;;  %v4177_v50 = vld [vmem:[%s9133_s6] sm:$0x3] }
 0x41f   :  { %v5732_v15 = vld [vmem:[%s9132_s9 + $0x10] sm:$0xff]   ;;  %v5733_v16 = vld [vmem:[%s9132_s9 + $0x48] sm:$0xff]   ;;  %v5735_v60 = vld [vmem:[%s9132_s9 + $0x40] sm:$0xff]  }
 0x420   :  { %v4203_v31 = vunpack.c.l.b16 %v4167_v43  ;;  %v4155_v2 = vrot.slane %v4154_v23, 4  ;;  %5195 = vmatpush3.bf16.msra.mxu1 %v5724_v24  ;;  %v5734_v49 = vld [vmem:[%s9132_s9 + $0x8] sm:$0xff]   ;;  %v5736_v59 = vld [vmem:[%s9132_s9] sm:$0xff]   ;;  %v4185_v43 = vsub.s32 1, %v9392_v27 }
 0x421   :  { %5196 = vmatprep.subr.bf16.mxu1 %v5725_v57 }
 0x422   :  { %v4216_v14 = vsel %vm4215_vm11, %v4203_v31, %v4214_v56  ;;  %v4156_v47 = vmax.f32 %v4154_v23, %v4155_v2  ;;  %v5687_v56 = vld [vmem:[%s9131_s7 + $0x34] ss:$8 sps:$4 sm:$0xff]   ;;  %v4182_v23 = vrot.slane %v4177_v50, %v4181_v6  ;;  %v4186_v31 = vrot.slane %v4177_v50, %v4185_v43 }
 0x424   :  { %v4157_v53 = vrot.slane %v4156_v47, 2  ;;  %5197 = vmatpush3.bf16.msra.mxu1 %v5726_v10 }
 0x425   :  { %5198 = vmatprep.subr.bf16.mxu1 %v5727_v26 }
 0x426   :  { %v4158_v38 = vmax.f32 %v4156_v47, %v4157_v53 }
 0x428   :  { %v4159_v12 = vrot.slane %v4158_v38, 1  ;;  %5199 = vmatpush3.bf16.msra.mxu1 %v5728_v44 }
 0x429   :  { %5200 = vmatprep.subr.bf16.mxu1 %v5729_v52 }
 0x42a   :  { %v4160_v32 = vmax.f32 %v4158_v38, %v4159_v12 }
 0x42c   :  { %v4168_v25 = vpack.c.bf16 %v4160_v32, %v4160_v32  ;;  %5201 = vmatpush3.bf16.msra.mxu1 %v5730_v28 }
 0x42d   :  { %5202 = vmatprep.subr.bf16.mxu1 %v5731_v51 }
 0x42e   :  { %v4204_v34 = vunpack.c.l.b16 %v4168_v25 }
 0x430   :  { %v4218_v40 = vsel %vm4217_vm12, %v4204_v34, %v4216_v14  ;;  %5203 = vmatpush3.bf16.msra.mxu1 %v5732_v15 }
 0x431   :  { %v4219_v54 = vpack.c.b16 %v4218_v40, %v4218_v40  ;;  %5204 = vmatprep.subr.bf16.mxu1 %v5733_v16 }
 0x433   :  { %4941 = vmatmul.mubr.msk.bf16.vlgmr.msra.gmra.mxu0 %vm927_vm2, %v4219_v54 }
 0x434   :  { %4513 = vmatpush1.bf16.msra.mxu0 %v5673_v20  ;;  %5205 = vmatpush3.bf16.msra.mxu1 %v5734_v49  ;;  %v4340_v20 = vld [vmem:[%s9134_s8] sm:$0x3] }
 0x435   :  { %4514 = vmatprep.subr.bf16.mxu0 %v5678_v22  ;;  %5206 = vmatprep.subr.bf16.mxu1 %v5735_v60  ;;  %v4345_v54 = vrot.slane %v4340_v20, %v4181_v6  ;;  %v4349_v27 = vrot.slane %v4340_v20, %v4185_v43 }
 0x438   :  { %4515 = vmatpush1.bf16.msra.mxu0 %v5676_v42  ;;  %5207 = vmatpush3.bf16.msra.mxu1 %v5736_v59 }
 0x439   :  { %4516 = vmatprep.subr.bf16.mxu0 %v5681_v48 }
 0x43c   :  { %4517 = vmatpush1.bf16.msra.mxu0 %v5679_v5 }
 0x43d   :  { %4518 = vmatprep.subr.bf16.mxu0 %v5684_v9 }
 0x440   :  { %4519 = vmatpush1.bf16.msra.mxu0 %v5682_v41 }
 0x441   :  { %4520 = vmatprep.subr.bf16.mxu0 %v5687_v56 }
 0x444   :  { %4521 = vmatpush1.bf16.msra.mxu0 %v5685_v17 }
 0x445   :  { %4522 = vmatprep.subr.bf16.mxu0 %v5690_v4 }
 0x448   :  { %4523 = vmatpush1.bf16.msra.mxu0 %v5688_v36 }
 0x449   :  { %4524 = vmatprep.subr.bf16.mxu0 %v5693_v45 }
 0x44c   :  { %4525 = vmatpush1.bf16.msra.mxu0 %v5691_v29  ;;  %v4974_v29 = vld [vmem:[%s9135_s10] ss:$0 sm:$0xff] }
 0x44d   :  { %4526 = vmatprep.subr.bf16.mxu0 %v5696_v55 }
 0x450   :  { %4527 = vmatpush1.bf16.msra.mxu0 %v5694_v37 }
 0x451   :  { %4528 = vmatprep.subr.bf16.mxu0 %v5699_v3 }
 0x454   :  { %4529 = vmatpush2.bf16.msra.mxu0 %v5697_v7 }
 0x455   :  { %4530 = vmatprep.subr.bf16.mxu0 %v5702_v39 }
 0x458   :  { %4531 = vmatpush2.bf16.msra.mxu0 %v5700_v61 }
 0x459   :  { %4532 = vmatprep.subr.bf16.mxu0 %v5705_v33 }
 0x45c   :  { %4533 = vmatpush2.bf16.msra.mxu0 %v5703_v35 }
 0x45d   :  { %4534 = vmatprep.subr.bf16.mxu0 %v5708_v8 }
 0x460   :  { %4535 = vmatpush2.bf16.msra.mxu0 %v5706_v11 }
 0x461   :  { %4536 = vmatprep.subr.bf16.mxu0 %v5711_v19 }
 0x464   :  { %4537 = vmatpush2.bf16.msra.mxu0 %v5709_v30 }
 0x465   :  { %4538 = vmatprep.subr.bf16.mxu0 %v5714_v21 }
 0x468   :  { %4539 = vmatpush2.bf16.msra.mxu0 %v5712_v1 }
 0x469   :  { %4540 = vmatprep.subr.bf16.mxu0 %v5717_v63 }
 0x46c   :  { %4541 = vmatpush2.bf16.msra.mxu0 %v5715_v46 }
 0x46d   :  { %4542 = vmatprep.subr.bf16.mxu0 %v5720_v13 }
 0x470   :  { %4543 = vmatpush2.bf16.msra.mxu0 %v5718_v0 }
 0x4f3   :  { %v4297_v2 = vpop.f32.mrf.mxu0 }
 0x4f4   :  { %v4298_v14 = vadd.f32 %v4297_v2, %v4182_v23 }
 0x4f5   :  { %v4299_v47 = vpop.f32.mrf.mxu0 }
 0x4f6   :  { %v4300_v53 = vadd.f32 %v4299_v47, %v4186_v31  ;;  %v4304_v38 = vmax.f32 %v4298_v14, 0.0 }
 0x4f7   :  { %v4301_v12 = vpop.f32.mrf.mxu0 }
 0x4f8   :  { %v4305_v32 = vmax.f32 %v4300_v53, 0.0  ;;  %v4306_v40 = vpack.c.bf16 %v4304_v38, %v4304_v38 }
 0x4f9   :  { %v4302_v25 = vpop.f32.mrf.mxu0 }
 0x4fa   :  { %v4307_v34 = vpack.c.bf16 %v4305_v32, %v4305_v32 }
 0x4fc   :  { %4544 = vmatprep.mubr.bf16.mxu0 %v4307_v34 }
 0x4fd   :  { %4545 = vmatmul.mubr.bf16.vlgmr.msra.gmra.mxu0 %v4306_v40 }
 0x5bd   :  { %v4546_v22 = vpop.f32.mrf.mxu0 }
 0x5be   :  { %v4547_v42 = vadd.f32 %v4546_v22, %v4345_v54 }
 0x5bf   :  { %v4548_v48 = vpop.f32.mrf.mxu0 }
 0x5c0   :  { %v4549_v5 = vadd.f32 %v4548_v48, %v4349_v27  ;;  %v4553_v9 = vmax.f32 %v4547_v42, 0.0 }
 0x5c1   :  { %v4550_v41 = vpop.f32.mrf.mxu0 }
 0x5c2   :  { %v4554_v56 = vmax.f32 %v4549_v5, 0.0  ;;  %v4555_v36 = vpack.c.bf16 %v4553_v9, %v4553_v9 }
 0x5c3   :  { %v4551_v17 = vpop.f32.mrf.mxu0 }
 0x5c4   :  { %v4556_v4 = vpack.c.bf16 %v4554_v56, %v4554_v56 }
 0x5c6   :  { %4724 = vmatprep.mubr.bf16.mxu1 %v4556_v4 }
 0x5c7   :  { %4725 = vmatmul.mubr.bf16.vlgmr.msra.gmra.mxu1 %v4555_v36 }
 0x687   :  { %v5208_v45 = vpop.f32.mrf.mxu1 }
 0x689   :  { %v5209_v55 = vpop.f32.mrf.mxu1 }
 0x68a   :  { %v5210_v37 = vadd.f32 %v5209_v55, %v5208_v45 }
 0x68b   :  { %v5211_v3 = vpop.f32.mrf.mxu1 }
 0x68c   :  { %v4727_v7 = vadd.f32 %v5210_v37, %v4974_v29 }
 0x68d   :  { %v5212_v39 = vpop.f32.mrf.mxu1 }
 0x68e   :  { %v4991_v61 = vmul.f32 -1.442695, %v4727_v7 }
 0x690   :  { %5737 = vpow2.f32 %v4991_v61 }
 0x69d   :  { %v5738_v33 = vpop.eup %5737 }
 0x69e   :  { %v4735_v35 = vadd.f32 1.0, %v5738_v33 }
 0x6a0   :  { %5739 = vrcp.f32 %v4735_v35 }
 0x6ad   :  { %v5740_v8 = vpop.eup %5739 }
 0x6ae   :  { %4738 = vst [vmem:[%s9136_s11] sm:$0xff] %v5740_v8 }

</bundles_post_ra>
